<compile_context>
chip_gen: v5e
topology: v5e:2x2
jax: 0.10.0
libtpu: 0.0.40
codegen_flags: <defaults>
</compile_context>

<pallas_src>
import functools

import numpy as np
import jax
import jax.numpy as jnp
from jax.experimental import pallas as pl
from jax.experimental.pallas import tpu as pltpu


# ----------------------------- Pallas kernel ------------------------------ #

def _hbma_argmin_kernel(d, ref_ref, tgt_ref, tnorm_ref, cx_ref, cy_ref,
                        nx_ref, ny_ref, out_ref, acc_ref, min_ref, idx_ref):
    """Fused Gram-matmul + search-window mask + running row argmin.

    Grid = (i_tiles, j_tiles, k_tiles); i = reference-block rows (parallel),
    j = candidate columns (reduced into a running argmin), k = flattened-block
    contraction axis (MXU accumulation).
    """
    j = pl.program_id(1)
    k = pl.program_id(2)
    nj = pl.num_programs(1)
    nk = pl.num_programs(2)

    @pl.when((j == 0) & (k == 0))
    def _():
        min_ref[...] = jnp.full(min_ref.shape, 3.0e38, min_ref.dtype)
        idx_ref[...] = jnp.zeros(idx_ref.shape, idx_ref.dtype)

    @pl.when(k == 0)
    def _():
        acc_ref[...] = jnp.zeros(acc_ref.shape, acc_ref.dtype)

    # r_i . t_j : contract the flattened-block axis on the MXU (f32 accumulate).
    acc_ref[...] += jnp.dot(ref_ref[...], tgt_ref[...],
                            preferred_element_type=jnp.float32)

    @pl.when(k == nk - 1)
    def _():
        tm, tn = acc_ref.shape
        # score(i, j) = ||t_j||^2 - 2 r_i.t_j  (same argmin as the block MSE)
        score = jnp.broadcast_to(tnorm_ref[...], (tm, tn)) - 2.0 * acc_ref[...]
        # search-window mask: |nx - cx| <= d and |ny - cy| <= d
        dx = jnp.abs(jnp.broadcast_to(nx_ref[...], (tm, tn))
                     - jnp.broadcast_to(cx_ref[...], (tm, tn)))
        dy = jnp.abs(jnp.broadcast_to(ny_ref[...], (tm, tn))
                     - jnp.broadcast_to(cy_ref[...], (tm, tn)))
        valid = (dx <= d) & (dy <= d)
        score = jnp.where(valid, score, jnp.float32(1.0e30))
        # running first-occurrence (lowest raster index) argmin across j tiles
        local_min = jnp.min(score, axis=1, keepdims=True)                # (tm, 1)
        col = (jax.lax.broadcasted_iota(jnp.int32, (tm, tn), 1)
               + j * tn).astype(jnp.float32)
        cand = jnp.where(score == local_min, col, jnp.float32(1.0e9))
        local_arg = jnp.min(cand, axis=1, keepdims=True)                 # (tm, 1)
        take = local_min < min_ref[...]
        min_ref[...] = jnp.where(take, local_min, min_ref[...])
        idx_ref[...] = jnp.where(take, local_arg, idx_ref[...])

    @pl.when((j == nj - 1) & (k == nk - 1))
    def _():
        out_ref[...] = jnp.broadcast_to(idx_ref[...], out_ref.shape).astype(jnp.int32)


def _round_up(x, m):
    return ((x + m - 1) // m) * m


def hbma_level_best(ref_blocks, tgt_blocks, cx, cy, nx, ny, d, *,
                    compute_dtype=jnp.float32):
    """Best matching candidate (flat block index) per reference block.

    ref_blocks / tgt_blocks: (R, F) f32 block-major frames.
    cx, cy: (R,) int search-window center block coords per reference block.
    nx, ny: (R,) int block coords of candidate column j.
    d: static python int max search distance.
    Returns (R,) int32 flat candidate indices (= nx*BY + ny).
    """
    R, F = ref_blocks.shape

    # Lane/sublane-aligned padding and tile sizes (256-wide when possible for the
    # v6e/v7x 256x256 MXU; 128 is still native on v5e's 128x128 MXU).  F is only
    # padded to a multiple of 128 so small levels don't double their MXU work.
    R_pad = _round_up(max(R, 128), 128)
    F_pad = _round_up(max(F, 128), 128)
    tm = 256 if R_pad % 256 == 0 else 128
    tn = tm
    tk = 512 if F_pad % 512 == 0 else (256 if F_pad % 256 == 0 else 128)

    refp = jnp.zeros((R_pad, F_pad), jnp.float32).at[:R, :F].set(ref_blocks)
    # Target laid out transposed (F_pad, R_pad): the kernel runs a standard
    # (tm,tk)x(tk,tn) MXU matmul with no in-kernel transpose.
    tgtp = jnp.zeros((F_pad, R_pad), jnp.float32).at[:F, :R].set(tgt_blocks.T)
    # ||t_j||^2 in f32 (padded columns are zero -> masked out anyway).
    tnorm = jnp.sum(jnp.square(tgtp), axis=0, keepdims=True)            # (1, R_pad)

    # NOTE: pass compute_dtype=jnp.bfloat16 to halve DMA bytes / double MXU rate
    # (production setting); the default stays f32 so near-tie argmins match the
    # exact reference.
    refc = refp.astype(compute_dtype)
    tgtc = tgtp.astype(compute_dtype)

    cxp = jnp.zeros((R_pad, 1), jnp.float32).at[:R, 0].set(cx.astype(jnp.float32))
    cyp = jnp.zeros((R_pad, 1), jnp.float32).at[:R, 0].set(cy.astype(jnp.float32))
    far = jnp.float32(1.0e6)   # padded candidate columns are never in the window
    nxp = jnp.full((1, R_pad), far, jnp.float32).at[0, :R].set(nx.astype(jnp.float32))
    nyp = jnp.full((1, R_pad), far, jnp.float32).at[0, :R].set(ny.astype(jnp.float32))

    grid = (R_pad // tm, R_pad // tn, F_pad // tk)

    out = pl.pallas_call(
        functools.partial(_hbma_argmin_kernel, float(d)),
        out_shape=jax.ShapeDtypeStruct((R_pad, 128), jnp.int32),
        grid_spec=pltpu.PrefetchScalarGridSpec(
            num_scalar_prefetch=0,
            grid=grid,
            in_specs=[
                pl.BlockSpec((tm, tk), lambda i, j, k: (i, k)),   # reference blocks
                pl.BlockSpec((tk, tn), lambda i, j, k: (k, j)),   # target blocks (T)
                pl.BlockSpec((1, tn), lambda i, j, k: (0, j)),    # ||t_j||^2
                pl.BlockSpec((tm, 1), lambda i, j, k: (i, 0)),    # window center x
                pl.BlockSpec((tm, 1), lambda i, j, k: (i, 0)),    # window center y
                pl.BlockSpec((1, tn), lambda i, j, k: (0, j)),    # candidate x
                pl.BlockSpec((1, tn), lambda i, j, k: (0, j)),    # candidate y
            ],
            out_specs=pl.BlockSpec((tm, 128), lambda i, j, k: (i, 0)),
            scratch_shapes=[
                pltpu.VMEM((tm, tn), jnp.float32),   # dot accumulator
                pltpu.VMEM((tm, 1), jnp.float32),    # running min score
                pltpu.VMEM((tm, 1), jnp.float32),    # running argmin (as f32)
            ],
        ),
        compiler_params=pltpu.CompilerParams(
            dimension_semantics=("parallel", "arbitrary", "arbitrary"),
            vmem_limit_bytes=32 * 1024 * 1024),
    )(refc, tgtc, tnorm, cxp, cyp, nxp, nyp)

    return out[:R, 0]


# ------------------------------- JAX glue --------------------------------- #

def _to_blocks(x, bh, bw):
    """(N, C, H, W) -> (BX*BY, N*C*bh*bw), block r = bx*BY + by."""
    N, C, H, W = x.shape
    BX, BY = H // bh, W // bw
    xb = x.reshape(N, C, BX, bh, BY, bw)
    xb = jnp.transpose(xb, (2, 4, 0, 1, 3, 5))        # (BX, BY, N, C, bh, bw)
    return xb.reshape(BX * BY, N * C * bh * bw)


def hbma_forward(reference_frame, target_frame, block_size, max_search_dist,
                 levels, compute_dtype=jnp.float32):
    """Reproduces HBMA_Naive.forward. Returns (motion_vectors, predicted_frame)."""
    N, C, H, W = reference_frame.shape
    level_bs = [(block_size[0] * 2 ** (levels - i - 1),
                 block_size[1] * 2 ** (levels - i - 1)) for i in range(levels)]
    block_count = [(H // level_bs[i][0], W // level_bs[i][1]) for i in range(levels)]
    dists = [max_search_dist // (2 ** i) for i in range(levels)]

    best_nx = best_ny = None
    for level in range(levels):
        bh, bw = level_bs[level]
        BX, BY = block_count[level]
        R = BX * BY

        ref_blocks = _to_blocks(reference_frame, bh, bw).astype(jnp.float32)
        tgt_blocks = _to_blocks(target_frame, bh, bw).astype(jnp.float32)

        bx = jnp.arange(R, dtype=jnp.int32) // BY
        by = jnp.arange(R, dtype=jnp.int32) % BY
        if level == 0:
            cx, cy = bx, by
        else:
            # Child block's candidate window is centered at 2*(parent's best match),
            # mirroring the LUT propagation in the PyTorch module.
            cx = 2 * best_nx[bx // 2, by // 2]
            cy = 2 * best_ny[bx // 2, by // 2]

        # TODO(synk): tie-break differs from PyTorch (set-iteration order there);
        # here ties resolve to the lowest raster index (nx, ny).
        # TODO(synk): a further optimization is window-restricted compute via a
        # scalar-prefetched data-dependent tgt index_map (only (2d+1)^2 candidates
        # per row); the fused in-kernel mask+argmin already avoids any R^2 HBM
        # writeback, so the full-column MXU sweep is kept here for simplicity.
        best_t = hbma_level_best(ref_blocks, tgt_blocks, cx, cy, bx, by,
                                 dists[level], compute_dtype=compute_dtype)
        best_nx = (best_t // BY).reshape(BX, BY)
        best_ny = (best_t % BY).reshape(BX, BY)

    # final-level outputs
    BX, BY = block_count[-1]
    bh, bw = level_bs[-1]
    mv_x = (best_nx - jnp.arange(BX)[:, None]).astype(reference_frame.dtype)
    mv_y = (best_ny - jnp.arange(BY)[None, :]).astype(reference_frame.dtype)
    motion_vectors = jnp.broadcast_to(
        jnp.stack([mv_x, mv_y], axis=0)[None], (N, 2, BX, BY))

    tgt_b6 = jnp.transpose(target_frame.reshape(N, C, BX, bh, BY, bw),
                           (2, 4, 0, 1, 3, 5))                     # (BX, BY, N, C, bh, bw)
    gathered = tgt_b6[best_nx, best_ny]                            # (BX, BY, N, C, bh, bw)
    predicted = jnp.transpose(gathered, (2, 3, 0, 4, 1, 5)).reshape(N, C, H, W)
    predicted = predicted.astype(reference_frame.dtype)
    return motion_vectors, predicted


# --------------------- numpy reference (mirrors torch) -------------------- #

def numpy_reference(ref, tgt, block_size, max_dist, levels):
    N, C, H, W = ref.shape
    bs = [(block_size[0] * 2 ** (levels - i - 1),
           block_size[1] * 2 ** (levels - i - 1)) for i in range(levels)]
    bc = [(H // bs[i][0], W // bs[i][1]) for i in range(levels)]
    d = [max_dist // (2 ** i) for i in range(levels)]
    lut = []
    for level in range(levels):
        D = {}
        for i in range(bc[level][0]):
            for j in range(bc[level][1]):
                D[(i, j)] = set((i + dx, j + dy)
                                for dx in range(-d[level], d[level] + 1)
                                for dy in range(-d[level], d[level] + 1)
                                if 0 <= i + dx < bc[level][0] and 0 <= j + dy < bc[level][1])
        lut.append(D)
    mv = np.zeros((N, 2, bc[-1][0], bc[-1][1]), dtype=ref.dtype)
    pred = np.zeros_like(tgt)
    for level in range(levels):
        final = level == levels - 1
        new_lut = {}
        bh, bw = bs[level]
        for px in range(0, H, bh):
            for py in range(0, W, bw):
                bx, by = px // bh, py // bw
                lc, lci = float('inf'), None
                for (nx, ny) in sorted(lut[level][(bx, by)]):
                    rb = ref[:, :, bx * bh:(bx + 1) * bh, by * bw:(by + 1) * bw]
                    tb = tgt[:, :, nx * bh:(nx + 1) * bh, ny * bw:(ny + 1) * bw]
                    cost = float(np.mean((rb - tb) ** 2))
                    if cost < lc:
                        lc, lci = cost, (nx, ny)
                if final:
                    mv[:, 0, bx, by] = lci[0] - bx
                    mv[:, 1, bx, by] = lci[1] - by
                    pred[:, :, px:px + bh, py:py + bw] = \
                        tgt[:, :, lci[0] * bh:(lci[0] + 1) * bh, lci[1] * bw:(lci[1] + 1) * bw]
                else:
                    for k in range(2):
                        for l in range(2):
                            cx, cy = bx * 2 + k, by * 2 + l
                            if 0 <= cx < bc[level + 1][0] and 0 <= cy < bc[level + 1][1]:
                                new_lut[(cx, cy)] = lut[level + 1][(2 * lci[0], 2 * lci[1])]
        if not final:
            lut[level + 1] = new_lut
    return mv, pred


# ---------------------------------- main ----------------------------------- #

if __name__ == "__main__":
    key = jax.random.PRNGKey(0)
    k1, k2 = jax.random.split(key)

    N, C, H, W = 2, 4, 16, 16
    block_size = (4, 4)
    max_search_dist = 2
    levels = 2

    reference_frame = jax.random.normal(k1, (N, C, H, W), dtype=jnp.float32)
    target_frame = jax.random.normal(k2, (N, C, H, W), dtype=jnp.float32)

    # One jit over the whole multi-level forward (both levels' pallas_calls and
    # the block re-layout / transpose / casts fuse into a single XLA program).
    fwd = jax.jit(functools.partial(hbma_forward,
                                    block_size=block_size,
                                    max_search_dist=max_search_dist,
                                    levels=levels,
                                    compute_dtype=jnp.float32))

    mv, pred = fwd(reference_frame, target_frame)
    mv = jax.block_until_ready(mv)
    pred = jax.block_until_ready(pred)

    # sanity check against a numpy port of the PyTorch module
    mv_ref, pred_ref = numpy_reference(np.asarray(reference_frame),
                                       np.asarray(target_frame),
                                       block_size, max_search_dist, levels)
    np.testing.assert_allclose(np.asarray(mv), mv_ref, atol=0, rtol=0)
    np.testing.assert_allclose(np.asarray(pred), pred_ref, atol=1e-6, rtol=1e-6)

    print("KERNEL_OK")
</pallas_src>

<mosaic_0001>
module attributes {stable_mosaic.version = 11 : i64} {
  func.func @_hbma_argmin_kernel(%arg0: i32, %arg1: i32, %arg2: i32, %arg3: memref<128x512xf32, #tpu.memory_space<vmem>>, %arg4: memref<512x128xf32, #tpu.memory_space<vmem>>, %arg5: memref<1x128xf32, #tpu.memory_space<vmem>>, %arg6: memref<128x1xf32, #tpu.memory_space<vmem>>, %arg7: memref<128x1xf32, #tpu.memory_space<vmem>>, %arg8: memref<1x128xf32, #tpu.memory_space<vmem>>, %arg9: memref<1x128xf32, #tpu.memory_space<vmem>>, %arg10: memref<128x128xi32, #tpu.memory_space<vmem>>, %arg11: memref<128x128xf32, #tpu.memory_space<vmem>>, %arg12: memref<128x1xf32, #tpu.memory_space<vmem>>, %arg13: memref<128x1xf32, #tpu.memory_space<vmem>>) attributes {dimension_semantics = [#tpu.dimension_semantics<parallel>, #tpu.dimension_semantics<arbitrary>, #tpu.dimension_semantics<arbitrary>], iteration_bounds = array<i64: 1, 1, 1>, scalar_prefetch = 0 : i64, scratch_operands = 3 : i64, tpu.core_type = #tpu.core_type<tc>, window_params = [{transform_indices = @transform_0, window_bounds = array<i64: 128, 512>}, {transform_indices = @transform_1, window_bounds = array<i64: 512, 128>}, {transform_indices = @transform_2, window_bounds = array<i64: 1, 128>}, {transform_indices = @transform_3, window_bounds = array<i64: 128, 1>}, {transform_indices = @transform_4, window_bounds = array<i64: 128, 1>}, {transform_indices = @transform_5, window_bounds = array<i64: 1, 128>}, {transform_indices = @transform_6, window_bounds = array<i64: 1, 128>}, {transform_indices = @transform_7, window_bounds = array<i64: 128, 128>}]} {
    %c0_i32 = arith.constant 0 : i32
    %0 = arith.cmpi eq, %arg1, %c0_i32 : i32
    %c0_i32_0 = arith.constant 0 : i32
    %1 = arith.cmpi eq, %arg2, %c0_i32_0 : i32
    %2 = arith.andi %0, %1 : i1
    %3 = arith.extui %2 : i1 to i32
    %c0_i32_1 = arith.constant 0 : i32
    %4 = arith.cmpi ne, %3, %c0_i32_1 : i32
    scf.if %4 {
      %cst_16 = arith.constant 3.000000e+38 : f32
      %22 = vector.broadcast %cst_16 : f32 to vector<128x1xf32>
      %c0_17 = arith.constant 0 : index
      %c0_18 = arith.constant 0 : index
      %23 = vector.load %arg12[%c0_17, %c0_18] : memref<128x1xf32, #tpu.memory_space<vmem>>, vector<128x1xf32>
      tpu.vector_store %arg12[%c0_17, %c0_18], %22 {strides = array<i32>} : memref<128x1xf32, #tpu.memory_space<vmem>>, vector<128x1xf32>,
      %cst_19 = arith.constant 0.000000e+00 : f32
      %24 = vector.broadcast %cst_19 : f32 to vector<128x1xf32>
      %c0_20 = arith.constant 0 : index
      %c0_21 = arith.constant 0 : index
      %25 = vector.load %arg13[%c0_20, %c0_21] : memref<128x1xf32, #tpu.memory_space<vmem>>, vector<128x1xf32>
      tpu.vector_store %arg13[%c0_20, %c0_21], %24 {strides = array<i32>} : memref<128x1xf32, #tpu.memory_space<vmem>>, vector<128x1xf32>,
    } else {
    }
    %c0_i32_2 = arith.constant 0 : i32
    %5 = arith.cmpi eq, %arg2, %c0_i32_2 : i32
    %6 = arith.extui %5 : i1 to i32
    %c0_i32_3 = arith.constant 0 : i32
    %7 = arith.cmpi ne, %6, %c0_i32_3 : i32
    scf.if %7 {
      %cst_16 = arith.constant 0.000000e+00 : f32
      %22 = vector.broadcast %cst_16 : f32 to vector<128x128xf32>
      %c0_17 = arith.constant 0 : index
      %c0_18 = arith.constant 0 : index
      %23 = vector.load %arg11[%c0_17, %c0_18] : memref<128x128xf32, #tpu.memory_space<vmem>>, vector<128x128xf32>
      tpu.vector_store %arg11[%c0_17, %c0_18], %22 {strides = array<i32>} : memref<128x128xf32, #tpu.memory_space<vmem>>, vector<128x128xf32>,
    } else {
    }
    %c0 = arith.constant 0 : index
    %c0_4 = arith.constant 0 : index
    %8 = vector.load %arg11[%c0, %c0_4] : memref<128x128xf32, #tpu.memory_space<vmem>>, vector<128x128xf32>
    %c0_5 = arith.constant 0 : index
    %c0_6 = arith.constant 0 : index
    %9 = vector.load %arg3[%c0_5, %c0_6] : memref<128x512xf32, #tpu.memory_space<vmem>>, vector<128x512xf32>
    %c0_7 = arith.constant 0 : index
    %c0_8 = arith.constant 0 : index
    %10 = vector.load %arg4[%c0_7, %c0_8] : memref<512x128xf32, #tpu.memory_space<vmem>>, vector<512x128xf32>
    %cst = arith.constant dense<0.000000e+00> : vector<128x128xf32>
    %11 = tpu.matmul %9, %10, %cst {dimension_numbers = #tpu.dot_dimension_numbers<[1], [0], [0], [1], [0, 0, 1, 1], [], []>} : vector<128x512xf32>, vector<512x128xf32>, vector<128x128xf32> -> vector<128x128xf32>
    %12 = arith.addf %8, %11 : vector<128x128xf32>
    %c0_9 = arith.constant 0 : index
    %c0_10 = arith.constant 0 : index
    %13 = vector.load %arg11[%c0_9, %c0_10] : memref<128x128xf32, #tpu.memory_space<vmem>>, vector<128x128xf32>
    tpu.vector_store %arg11[%c0_9, %c0_10], %12 {strides = array<i32>} : memref<128x128xf32, #tpu.memory_space<vmem>>, vector<128x128xf32>,
    %c0_i32_11 = arith.constant 0 : i32
    %14 = arith.cmpi eq, %arg2, %c0_i32_11 : i32
    %15 = arith.extui %14 : i1 to i32
    %c0_i32_12 = arith.constant 0 : i32
    %16 = arith.cmpi ne, %15, %c0_i32_12 : i32
    scf.if %16 {
      %c0_16 = arith.constant 0 : index
      %c0_17 = arith.constant 0 : index
      %22 = vector.load %arg5[%c0_16, %c0_17] : memref<1x128xf32, #tpu.memory_space<vmem>>, vector<1x128xf32>
      %23 = vector.shape_cast %22 : vector<1x128xf32> to vector<1x128xf32>
      %24 = vector.broadcast %23 : vector<1x128xf32> to vector<128x128xf32>
      %c0_18 = arith.constant 0 : index
      %c0_19 = arith.constant 0 : index
      %25 = vector.load %arg11[%c0_18, %c0_19] : memref<128x128xf32, #tpu.memory_space<vmem>>, vector<128x128xf32>
      %cst_20 = arith.constant 2.000000e+00 : f32
      %26 = vector.broadcast %cst_20 : f32 to vector<128x128xf32>
      %27 = arith.mulf %26, %25 : vector<128x128xf32>
      %28 = arith.subf %24, %27 : vector<128x128xf32>
      %c0_21 = arith.constant 0 : index
      %c0_22 = arith.constant 0 : index
      %29 = vector.load %arg8[%c0_21, %c0_22] : memref<1x128xf32, #tpu.memory_space<vmem>>, vector<1x128xf32>
      %30 = vector.shape_cast %29 : vector<1x128xf32> to vector<1x128xf32>
      %31 = vector.broadcast %30 : vector<1x128xf32> to vector<128x128xf32>
      %c0_23 = arith.constant 0 : index
      %c0_24 = arith.constant 0 : index
      %32 = vector.load %arg6[%c0_23, %c0_24] : memref<128x1xf32, #tpu.memory_space<vmem>>, vector<128x1xf32>
      %33 = vector.shape_cast %32 : vector<128x1xf32> to vector<128x1xf32>
      %34 = vector.broadcast %33 : vector<128x1xf32> to vector<128x128xf32>
      %35 = arith.subf %31, %34 : vector<128x128xf32>
      %36 = math.absf %35 : vector<128x128xf32>
      %c0_25 = arith.constant 0 : index
      %c0_26 = arith.constant 0 : index
      %37 = vector.load %arg9[%c0_25, %c0_26] : memref<1x128xf32, #tpu.memory_space<vmem>>, vector<1x128xf32>
      %38 = vector.shape_cast %37 : vector<1x128xf32> to vector<1x128xf32>
      %39 = vector.broadcast %38 : vector<1x128xf32> to vector<128x128xf32>
      %c0_27 = arith.constant 0 : index
      %c0_28 = arith.constant 0 : index
      %40 = vector.load %arg7[%c0_27, %c0_28] : memref<128x1xf32, #tpu.memory_space<vmem>>, vector<128x1xf32>
      %41 = vector.shape_cast %40 : vector<128x1xf32> to vector<128x1xf32>
      %42 = vector.broadcast %41 : vector<128x1xf32> to vector<128x128xf32>
      %43 = arith.subf %39, %42 : vector<128x128xf32>
      %44 = math.absf %43 : vector<128x128xf32>
      %cst_29 = arith.constant 2.000000e+00 : f32
      %45 = vector.broadcast %cst_29 : f32 to vector<128x128xf32>
      %46 = arith.cmpf ole, %36, %45 : vector<128x128xf32>
      %cst_30 = arith.constant 2.000000e+00 : f32
      %47 = vector.broadcast %cst_30 : f32 to vector<128x128xf32>
      %48 = arith.cmpf ole, %44, %47 : vector<128x128xf32>
      %49 = arith.andi %46, %48 : vector<128x128xi1>
      %cst_31 = arith.constant 1.000000e+30 : f32
      %50 = vector.broadcast %cst_31 : f32 to vector<128x128xf32>
      %51 = arith.select %49, %28, %50 : vector<128x128xi1>, vector<128x128xf32>
      %cst_32 = arith.constant dense<0x7F800000> : vector<128xf32>
      %52 = vector.multi_reduction <minimumf>, %51, %cst_32 [1] : vector<128x128xf32> to vector<128xf32>
      %53 = vector.shape_cast %52 : vector<128xf32> to vector<128x1xf32>
      %54 = tpu.iota {dimensions = array<i32: 1>} : vector<128x128xi32>
      %c128_i32 = arith.constant 128 : i32
      %55 = arith.muli %arg1, %c128_i32 : i32
      %56 = vector.broadcast %55 : i32 to vector<128x128xi32>
      %57 = arith.addi %54, %56 : vector<128x128xi32>
      %58 = arith.sitofp %57 : vector<128x128xi32> to vector<128x128xf32>
      %59 = vector.broadcast %53 : vector<128x1xf32> to vector<128x128xf32>
      %60 = arith.cmpf oeq, %51, %59 : vector<128x128xf32>
      %cst_33 = arith.constant 1.000000e+09 : f32
      %61 = vector.broadcast %cst_33 : f32 to vector<128x128xf32>
      %62 = arith.select %60, %58, %61 : vector<128x128xi1>, vector<128x128xf32>
      %cst_34 = arith.constant dense<0x7F800000> : vector<128xf32>
      %63 = vector.multi_reduction <minimumf>, %62, %cst_34 [1] : vector<128x128xf32> to vector<128xf32>
      %64 = vector.shape_cast %63 : vector<128xf32> to vector<128x1xf32>
      %c0_35 = arith.constant 0 : index
      %c0_36 = arith.constant 0 : index
      %65 = vector.load %arg12[%c0_35, %c0_36] : memref<128x1xf32, #tpu.memory_space<vmem>>, vector<128x1xf32>
      %66 = arith.cmpf olt, %53, %65 : vector<128x1xf32>
      %c0_37 = arith.constant 0 : index
      %c0_38 = arith.constant 0 : index
      %67 = vector.load %arg12[%c0_37, %c0_38] : memref<128x1xf32, #tpu.memory_space<vmem>>, vector<128x1xf32>
      %68 = arith.select %66, %53, %67 : vector<128x1xi1>, vector<128x1xf32>
      %c0_39 = arith.constant 0 : index
      %c0_40 = arith.constant 0 : index
      %69 = vector.load %arg12[%c0_39, %c0_40] : memref<128x1xf32, #tpu.memory_space<vmem>>, vector<128x1xf32>
      tpu.vector_store %arg12[%c0_39, %c0_40], %68 {strides = array<i32>} : memref<128x1xf32, #tpu.memory_space<vmem>>, vector<128x1xf32>,
      %c0_41 = arith.constant 0 : index
      %c0_42 = arith.constant 0 : index
      %70 = vector.load %arg13[%c0_41, %c0_42] : memref<128x1xf32, #tpu.memory_space<vmem>>, vector<128x1xf32>
      %71 = arith.select %66, %64, %70 : vector<128x1xi1>, vector<128x1xf32>
      %c0_43 = arith.constant 0 : index
      %c0_44 = arith.constant 0 : index
      %72 = vector.load %arg13[%c0_43, %c0_44] : memref<128x1xf32, #tpu.memory_space<vmem>>, vector<128x1xf32>
      tpu.vector_store %arg13[%c0_43, %c0_44], %71 {strides = array<i32>} : memref<128x1xf32, #tpu.memory_space<vmem>>, vector<128x1xf32>,
    } else {
    }
    %c0_i32_13 = arith.constant 0 : i32
    %17 = arith.cmpi eq, %arg1, %c0_i32_13 : i32
    %c0_i32_14 = arith.constant 0 : i32
    %18 = arith.cmpi eq, %arg2, %c0_i32_14 : i32
    %19 = arith.andi %17, %18 : i1
    %20 = arith.extui %19 : i1 to i32
    %c0_i32_15 = arith.constant 0 : i32
    %21 = arith.cmpi ne, %20, %c0_i32_15 : i32
    scf.if %21 {
      %c0_16 = arith.constant 0 : index
      %c0_17 = arith.constant 0 : index
      %22 = vector.load %arg13[%c0_16, %c0_17] : memref<128x1xf32, #tpu.memory_space<vmem>>, vector<128x1xf32>
      %23 = vector.shape_cast %22 : vector<128x1xf32> to vector<128x1xf32>
      %24 = vector.broadcast %23 : vector<128x1xf32> to vector<128x128xf32>
      %25 = arith.fptosi %24 : vector<128x128xf32> to vector<128x128xi32>
      %c0_18 = arith.constant 0 : index
      %c0_19 = arith.constant 0 : index
      %26 = vector.load %arg10[%c0_18, %c0_19] : memref<128x128xi32, #tpu.memory_space<vmem>>, vector<128x128xi32>
      tpu.vector_store %arg10[%c0_18, %c0_19], %25 {strides = array<i32>} : memref<128x128xi32, #tpu.memory_space<vmem>>, vector<128x128xi32>,
    } else {
    }
    return
  }
  func.func @transform_0(%arg0: i32, %arg1: i32, %arg2: i32) -> (i32, i32) {
    %c0_i32 = arith.constant 0 : i32
    return %arg0, %arg2 : i32, i32
  }
  func.func @transform_1(%arg0: i32, %arg1: i32, %arg2: i32) -> (i32, i32) {
    %c0_i32 = arith.constant 0 : i32
    return %arg2, %arg1 : i32, i32
  }
  func.func @transform_2(%arg0: i32, %arg1: i32, %arg2: i32) -> (i32, i32) {
    %c0_i32 = arith.constant 0 : i32
    %c0_i32_0 = arith.constant 0 : i32
    return %c0_i32, %arg1 : i32, i32
  }
  func.func @transform_3(%arg0: i32, %arg1: i32, %arg2: i32) -> (i32, i32) {
    %c0_i32 = arith.constant 0 : i32
    %c0_i32_0 = arith.constant 0 : i32
    return %arg0, %c0_i32 : i32, i32
  }
  func.func @transform_4(%arg0: i32, %arg1: i32, %arg2: i32) -> (i32, i32) {
    %c0_i32 = arith.constant 0 : i32
    %c0_i32_0 = arith.constant 0 : i32
    return %arg0, %c0_i32 : i32, i32
  }
  func.func @transform_5(%arg0: i32, %arg1: i32, %arg2: i32) -> (i32, i32) {
    %c0_i32 = arith.constant 0 : i32
    %c0_i32_0 = arith.constant 0 : i32
    return %c0_i32, %arg1 : i32, i32
  }
  func.func @transform_6(%arg0: i32, %arg1: i32, %arg2: i32) -> (i32, i32) {
    %c0_i32 = arith.constant 0 : i32
    %c0_i32_0 = arith.constant 0 : i32
    return %c0_i32, %arg1 : i32, i32
  }
  func.func @transform_7(%arg0: i32, %arg1: i32, %arg2: i32) -> (i32, i32) {
    %c0_i32 = arith.constant 0 : i32
    %c0_i32_0 = arith.constant 0 : i32
    return %arg0, %c0_i32 : i32, i32
  }
}

module attributes {stable_mosaic.version = 11 : i64} {
  func.func @_hbma_argmin_kernel(%arg0: i32, %arg1: i32, %arg2: i32, %arg3: memref<128x128xf32, #tpu.memory_space<vmem>>, %arg4: memref<128x128xf32, #tpu.memory_space<vmem>>, %arg5: memref<1x128xf32, #tpu.memory_space<vmem>>, %arg6: memref<128x1xf32, #tpu.memory_space<vmem>>, %arg7: memref<128x1xf32, #tpu.memory_space<vmem>>, %arg8: memref<1x128xf32, #tpu.memory_space<vmem>>, %arg9: memref<1x128xf32, #tpu.memory_space<vmem>>, %arg10: memref<128x128xi32, #tpu.memory_space<vmem>>, %arg11: memref<128x128xf32, #tpu.memory_space<vmem>>, %arg12: memref<128x1xf32, #tpu.memory_space<vmem>>, %arg13: memref<128x1xf32, #tpu.memory_space<vmem>>) attributes {dimension_semantics = [#tpu.dimension_semantics<parallel>, #tpu.dimension_semantics<arbitrary>, #tpu.dimension_semantics<arbitrary>], iteration_bounds = array<i64: 1, 1, 1>, scalar_prefetch = 0 : i64, scratch_operands = 3 : i64, tpu.core_type = #tpu.core_type<tc>, window_params = [{transform_indices = @transform_0, window_bounds = array<i64: 128, 128>}, {transform_indices = @transform_1, window_bounds = array<i64: 128, 128>}, {transform_indices = @transform_2, window_bounds = array<i64: 1, 128>}, {transform_indices = @transform_3, window_bounds = array<i64: 128, 1>}, {transform_indices = @transform_4, window_bounds = array<i64: 128, 1>}, {transform_indices = @transform_5, window_bounds = array<i64: 1, 128>}, {transform_indices = @transform_6, window_bounds = array<i64: 1, 128>}, {transform_indices = @transform_7, window_bounds = array<i64: 128, 128>}]} {
    %c0_i32 = arith.constant 0 : i32
    %0 = arith.cmpi eq, %arg1, %c0_i32 : i32
    %c0_i32_0 = arith.constant 0 : i32
    %1 = arith.cmpi eq, %arg2, %c0_i32_0 : i32
    %2 = arith.andi %0, %1 : i1
    %3 = arith.extui %2 : i1 to i32
    %c0_i32_1 = arith.constant 0 : i32
    %4 = arith.cmpi ne, %3, %c0_i32_1 : i32
    scf.if %4 {
      %cst_16 = arith.constant 3.000000e+38 : f32
      %22 = vector.broadcast %cst_16 : f32 to vector<128x1xf32>
      %c0_17 = arith.constant 0 : index
      %c0_18 = arith.constant 0 : index
      %23 = vector.load %arg12[%c0_17, %c0_18] : memref<128x1xf32, #tpu.memory_space<vmem>>, vector<128x1xf32>
      tpu.vector_store %arg12[%c0_17, %c0_18], %22 {strides = array<i32>} : memref<128x1xf32, #tpu.memory_space<vmem>>, vector<128x1xf32>,
      %cst_19 = arith.constant 0.000000e+00 : f32
      %24 = vector.broadcast %cst_19 : f32 to vector<128x1xf32>
      %c0_20 = arith.constant 0 : index
      %c0_21 = arith.constant 0 : index
      %25 = vector.load %arg13[%c0_20, %c0_21] : memref<128x1xf32, #tpu.memory_space<vmem>>, vector<128x1xf32>
      tpu.vector_store %arg13[%c0_20, %c0_21], %24 {strides = array<i32>} : memref<128x1xf32, #tpu.memory_space<vmem>>, vector<128x1xf32>,
    } else {
    }
    %c0_i32_2 = arith.constant 0 : i32
    %5 = arith.cmpi eq, %arg2, %c0_i32_2 : i32
    %6 = arith.extui %5 : i1 to i32
    %c0_i32_3 = arith.constant 0 : i32
    %7 = arith.cmpi ne, %6, %c0_i32_3 : i32
    scf.if %7 {
      %cst_16 = arith.constant 0.000000e+00 : f32
      %22 = vector.broadcast %cst_16 : f32 to vector<128x128xf32>
      %c0_17 = arith.constant 0 : index
      %c0_18 = arith.constant 0 : index
      %23 = vector.load %arg11[%c0_17, %c0_18] : memref<128x128xf32, #tpu.memory_space<vmem>>, vector<128x128xf32>
      tpu.vector_store %arg11[%c0_17, %c0_18], %22 {strides = array<i32>} : memref<128x128xf32, #tpu.memory_space<vmem>>, vector<128x128xf32>,
    } else {
    }
    %c0 = arith.constant 0 : index
    %c0_4 = arith.constant 0 : index
    %8 = vector.load %arg11[%c0, %c0_4] : memref<128x128xf32, #tpu.memory_space<vmem>>, vector<128x128xf32>
    %c0_5 = arith.constant 0 : index
    %c0_6 = arith.constant 0 : index
    %9 = vector.load %arg3[%c0_5, %c0_6] : memref<128x128xf32, #tpu.memory_space<vmem>>, vector<128x128xf32>
    %c0_7 = arith.constant 0 : index
    %c0_8 = arith.constant 0 : index
    %10 = vector.load %arg4[%c0_7, %c0_8] : memref<128x128xf32, #tpu.memory_space<vmem>>, vector<128x128xf32>
    %cst = arith.constant dense<0.000000e+00> : vector<128x128xf32>
    %11 = tpu.matmul %9, %10, %cst {dimension_numbers = #tpu.dot_dimension_numbers<[1], [0], [0], [1], [0, 0, 1, 1], [], []>} : vector<128x128xf32>, vector<128x128xf32>, vector<128x128xf32> -> vector<128x128xf32>
    %12 = arith.addf %8, %11 : vector<128x128xf32>
    %c0_9 = arith.constant 0 : index
    %c0_10 = arith.constant 0 : index
    %13 = vector.load %arg11[%c0_9, %c0_10] : memref<128x128xf32, #tpu.memory_space<vmem>>, vector<128x128xf32>
    tpu.vector_store %arg11[%c0_9, %c0_10], %12 {strides = array<i32>} : memref<128x128xf32, #tpu.memory_space<vmem>>, vector<128x128xf32>,
    %c0_i32_11 = arith.constant 0 : i32
    %14 = arith.cmpi eq, %arg2, %c0_i32_11 : i32
    %15 = arith.extui %14 : i1 to i32
    %c0_i32_12 = arith.constant 0 : i32
    %16 = arith.cmpi ne, %15, %c0_i32_12 : i32
    scf.if %16 {
      %c0_16 = arith.constant 0 : index
      %c0_17 = arith.constant 0 : index
      %22 = vector.load %arg5[%c0_16, %c0_17] : memref<1x128xf32, #tpu.memory_space<vmem>>, vector<1x128xf32>
      %23 = vector.shape_cast %22 : vector<1x128xf32> to vector<1x128xf32>
      %24 = vector.broadcast %23 : vector<1x128xf32> to vector<128x128xf32>
      %c0_18 = arith.constant 0 : index
      %c0_19 = arith.constant 0 : index
      %25 = vector.load %arg11[%c0_18, %c0_19] : memref<128x128xf32, #tpu.memory_space<vmem>>, vector<128x128xf32>
      %cst_20 = arith.constant 2.000000e+00 : f32
      %26 = vector.broadcast %cst_20 : f32 to vector<128x128xf32>
      %27 = arith.mulf %26, %25 : vector<128x128xf32>
      %28 = arith.subf %24, %27 : vector<128x128xf32>
      %c0_21 = arith.constant 0 : index
      %c0_22 = arith.constant 0 : index
      %29 = vector.load %arg8[%c0_21, %c0_22] : memref<1x128xf32, #tpu.memory_space<vmem>>, vector<1x128xf32>
      %30 = vector.shape_cast %29 : vector<1x128xf32> to vector<1x128xf32>
      %31 = vector.broadcast %30 : vector<1x128xf32> to vector<128x128xf32>
      %c0_23 = arith.constant 0 : index
      %c0_24 = arith.constant 0 : index
      %32 = vector.load %arg6[%c0_23, %c0_24] : memref<128x1xf32, #tpu.memory_space<vmem>>, vector<128x1xf32>
      %33 = vector.shape_cast %32 : vector<128x1xf32> to vector<128x1xf32>
      %34 = vector.broadcast %33 : vector<128x1xf32> to vector<128x128xf32>
      %35 = arith.subf %31, %34 : vector<128x128xf32>
      %36 = math.absf %35 : vector<128x128xf32>
      %c0_25 = arith.constant 0 : index
      %c0_26 = arith.constant 0 : index
      %37 = vector.load %arg9[%c0_25, %c0_26] : memref<1x128xf32, #tpu.memory_space<vmem>>, vector<1x128xf32>
      %38 = vector.shape_cast %37 : vector<1x128xf32> to vector<1x128xf32>
      %39 = vector.broadcast %38 : vector<1x128xf32> to vector<128x128xf32>
      %c0_27 = arith.constant 0 : index
      %c0_28 = arith.constant 0 : index
      %40 = vector.load %arg7[%c0_27, %c0_28] : memref<128x1xf32, #tpu.memory_space<vmem>>, vector<128x1xf32>
      %41 = vector.shape_cast %40 : vector<128x1xf32> to vector<128x1xf32>
      %42 = vector.broadcast %41 : vector<128x1xf32> to vector<128x128xf32>
      %43 = arith.subf %39, %42 : vector<128x128xf32>
      %44 = math.absf %43 : vector<128x128xf32>
      %cst_29 = arith.constant 1.000000e+00 : f32
      %45 = vector.broadcast %cst_29 : f32 to vector<128x128xf32>
      %46 = arith.cmpf ole, %36, %45 : vector<128x128xf32>
      %cst_30 = arith.constant 1.000000e+00 : f32
      %47 = vector.broadcast %cst_30 : f32 to vector<128x128xf32>
      %48 = arith.cmpf ole, %44, %47 : vector<128x128xf32>
      %49 = arith.andi %46, %48 : vector<128x128xi1>
      %cst_31 = arith.constant 1.000000e+30 : f32
      %50 = vector.broadcast %cst_31 : f32 to vector<128x128xf32>
      %51 = arith.select %49, %28, %50 : vector<128x128xi1>, vector<128x128xf32>
      %cst_32 = arith.constant dense<0x7F800000> : vector<128xf32>
      %52 = vector.multi_reduction <minimumf>, %51, %cst_32 [1] : vector<128x128xf32> to vector<128xf32>
      %53 = vector.shape_cast %52 : vector<128xf32> to vector<128x1xf32>
      %54 = tpu.iota {dimensions = array<i32: 1>} : vector<128x128xi32>
      %c128_i32 = arith.constant 128 : i32
      %55 = arith.muli %arg1, %c128_i32 : i32
      %56 = vector.broadcast %55 : i32 to vector<128x128xi32>
      %57 = arith.addi %54, %56 : vector<128x128xi32>
      %58 = arith.sitofp %57 : vector<128x128xi32> to vector<128x128xf32>
      %59 = vector.broadcast %53 : vector<128x1xf32> to vector<128x128xf32>
      %60 = arith.cmpf oeq, %51, %59 : vector<128x128xf32>
      %cst_33 = arith.constant 1.000000e+09 : f32
      %61 = vector.broadcast %cst_33 : f32 to vector<128x128xf32>
      %62 = arith.select %60, %58, %61 : vector<128x128xi1>, vector<128x128xf32>
      %cst_34 = arith.constant dense<0x7F800000> : vector<128xf32>
      %63 = vector.multi_reduction <minimumf>, %62, %cst_34 [1] : vector<128x128xf32> to vector<128xf32>
      %64 = vector.shape_cast %63 : vector<128xf32> to vector<128x1xf32>
      %c0_35 = arith.constant 0 : index
      %c0_36 = arith.constant 0 : index
      %65 = vector.load %arg12[%c0_35, %c0_36] : memref<128x1xf32, #tpu.memory_space<vmem>>, vector<128x1xf32>
      %66 = arith.cmpf olt, %53, %65 : vector<128x1xf32>
      %c0_37 = arith.constant 0 : index
      %c0_38 = arith.constant 0 : index
      %67 = vector.load %arg12[%c0_37, %c0_38] : memref<128x1xf32, #tpu.memory_space<vmem>>, vector<128x1xf32>
      %68 = arith.select %66, %53, %67 : vector<128x1xi1>, vector<128x1xf32>
      %c0_39 = arith.constant 0 : index
      %c0_40 = arith.constant 0 : index
      %69 = vector.load %arg12[%c0_39, %c0_40] : memref<128x1xf32, #tpu.memory_space<vmem>>, vector<128x1xf32>
      tpu.vector_store %arg12[%c0_39, %c0_40], %68 {strides = array<i32>} : memref<128x1xf32, #tpu.memory_space<vmem>>, vector<128x1xf32>,
      %c0_41 = arith.constant 0 : index
      %c0_42 = arith.constant 0 : index
      %70 = vector.load %arg13[%c0_41, %c0_42] : memref<128x1xf32, #tpu.memory_space<vmem>>, vector<128x1xf32>
      %71 = arith.select %66, %64, %70 : vector<128x1xi1>, vector<128x1xf32>
      %c0_43 = arith.constant 0 : index
      %c0_44 = arith.constant 0 : index
      %72 = vector.load %arg13[%c0_43, %c0_44] : memref<128x1xf32, #tpu.memory_space<vmem>>, vector<128x1xf32>
      tpu.vector_store %arg13[%c0_43, %c0_44], %71 {strides = array<i32>} : memref<128x1xf32, #tpu.memory_space<vmem>>, vector<128x1xf32>,
    } else {
    }
    %c0_i32_13 = arith.constant 0 : i32
    %17 = arith.cmpi eq, %arg1, %c0_i32_13 : i32
    %c0_i32_14 = arith.constant 0 : i32
    %18 = arith.cmpi eq, %arg2, %c0_i32_14 : i32
    %19 = arith.andi %17, %18 : i1
    %20 = arith.extui %19 : i1 to i32
    %c0_i32_15 = arith.constant 0 : i32
    %21 = arith.cmpi ne, %20, %c0_i32_15 : i32
    scf.if %21 {
      %c0_16 = arith.constant 0 : index
      %c0_17 = arith.constant 0 : index
      %22 = vector.load %arg13[%c0_16, %c0_17] : memref<128x1xf32, #tpu.memory_space<vmem>>, vector<128x1xf32>
      %23 = vector.shape_cast %22 : vector<128x1xf32> to vector<128x1xf32>
      %24 = vector.broadcast %23 : vector<128x1xf32> to vector<128x128xf32>
      %25 = arith.fptosi %24 : vector<128x128xf32> to vector<128x128xi32>
      %c0_18 = arith.constant 0 : index
      %c0_19 = arith.constant 0 : index
      %26 = vector.load %arg10[%c0_18, %c0_19] : memref<128x128xi32, #tpu.memory_space<vmem>>, vector<128x128xi32>
      tpu.vector_store %arg10[%c0_18, %c0_19], %25 {strides = array<i32>} : memref<128x128xi32, #tpu.memory_space<vmem>>, vector<128x128xi32>,
    } else {
    }
    return
  }
  func.func @transform_0(%arg0: i32, %arg1: i32, %arg2: i32) -> (i32, i32) {
    %c0_i32 = arith.constant 0 : i32
    return %arg0, %arg2 : i32, i32
  }
  func.func @transform_1(%arg0: i32, %arg1: i32, %arg2: i32) -> (i32, i32) {
    %c0_i32 = arith.constant 0 : i32
    return %arg2, %arg1 : i32, i32
  }
  func.func @transform_2(%arg0: i32, %arg1: i32, %arg2: i32) -> (i32, i32) {
    %c0_i32 = arith.constant 0 : i32
    %c0_i32_0 = arith.constant 0 : i32
    return %c0_i32, %arg1 : i32, i32
  }
  func.func @transform_3(%arg0: i32, %arg1: i32, %arg2: i32) -> (i32, i32) {
    %c0_i32 = arith.constant 0 : i32
    %c0_i32_0 = arith.constant 0 : i32
    return %arg0, %c0_i32 : i32, i32
  }
  func.func @transform_4(%arg0: i32, %arg1: i32, %arg2: i32) -> (i32, i32) {
    %c0_i32 = arith.constant 0 : i32
    %c0_i32_0 = arith.constant 0 : i32
    return %arg0, %c0_i32 : i32, i32
  }
  func.func @transform_5(%arg0: i32, %arg1: i32, %arg2: i32) -> (i32, i32) {
    %c0_i32 = arith.constant 0 : i32
    %c0_i32_0 = arith.constant 0 : i32
    return %c0_i32, %arg1 : i32, i32
  }
  func.func @transform_6(%arg0: i32, %arg1: i32, %arg2: i32) -> (i32, i32) {
    %c0_i32 = arith.constant 0 : i32
    %c0_i32_0 = arith.constant 0 : i32
    return %c0_i32, %arg1 : i32, i32
  }
  func.func @transform_7(%arg0: i32, %arg1: i32, %arg2: i32) -> (i32, i32) {
    %c0_i32 = arith.constant 0 : i32
    %c0_i32_0 = arith.constant 0 : i32
    return %arg0, %c0_i32 : i32, i32
  }
}

</mosaic_0001>

<bundles_post_ra>
// kernel: hbma_forward.3
= control target key start
LH: loop header
LB: loop body
LE: loop exit
PB: predicated region body
PF: predicated region fallthrough
CT: control target
= control target key end

     0   :  { %v1098_v0 = vmov 0   ;;  %s1953_s3 = inlined_call_operand.vmem [shape: f32[128,1], index: 3, kind: input, shape index: {}]   ;;  %s1954_s1 = inlined_call_operand.vmem [shape: f32[128,128], index: 1, kind: input, shape index: {}]   ;;  %s1955_s5 = inlined_call_operand.vmem [shape: f32[1,128], index: 5, kind: input, shape index: {}]   ;;  %s1956_s6 = inlined_call_operand.vmem [shape: f32[1,128], index: 6, kind: input, shape index: {}]   ;;  %s1957_s0 = inlined_call_operand.vmem [shape: f32[128,128], index: 0, kind: input, shape index: {}]   ;;  %s1958_s2 = inlined_call_operand.vmem [shape: f32[1,128], index: 2, kind: input, shape index: {}]   ;;  %s1959_s4 = inlined_call_operand.vmem [shape: f32[128,1], index: 4, kind: input, shape index: {}]   ;;  %s1960_s7 = inlined_call_operand.vmem [shape: s32[128,128], index: 7, kind: output, shape index: {}]  }
   0x1   :  { %1094 = vset.pattern.permute.xlu2 %v1098_v0  ;;  %1093 = vset.pattern.permute.xlu1 %v1098_v0  ;;  %v292_v1 = vld [vmem:[%s1953_s3 + $0x20] sm:$0xff]  ;;  %v290_v2 = vld [vmem:[%s1953_s3 + $0x10] sm:$0xff]  ;;  %v131_v4 = vld [vmem:[%s1954_s1 + $0x78] sm:$0xff] }
   0x2   :  { %v288_v3 = vld [vmem:[%s1953_s3] sm:$0xff]  ;;  %1092 = vset.pattern.permute.xlu0 %v1098_v0  ;;  %326 = vperm.xlu2 %1094, %v292_v1   ;;  %v130_v5 = vld [vmem:[%s1954_s1 + $0x70] sm:$0xff]  ;;  %v129_v6 = vld [vmem:[%s1954_s1 + $0x68] sm:$0xff] }
   0x3   :  { %316 = vperm.xlu1 %1093, %v290_v2   ;;  %306 = vperm.xlu0 %1092, %v288_v3   ;;  %v128_v7 = vld [vmem:[%s1954_s1 + $0x60] sm:$0xff]  ;;  %v293_v8 = vld [vmem:[%s1953_s3 + $0x28] sm:$0xff]  ;;  %v291_v9 = vld [vmem:[%s1953_s3 + $0x18] sm:$0xff] }
   0x4   :  { %132 = vmatpush.msra.mxu0 %v131_v4  ;;  %961 = vmatpush.msra.mxu1 %v131_v4  ;;  %v289_v10 = vld [vmem:[%s1953_s3 + $0x8] sm:$0xff]  ;;  %v127_v11 = vld [vmem:[%s1954_s1 + $0x58] sm:$0xff]  ;;  %v126_v12 = vld [vmem:[%s1954_s1 + $0x50] sm:$0xff] }
   0x5   :  { %962 = vmatpush.msra.mxu2 %v131_v4  ;;  %963 = vmatpush.msra.mxu3 %v131_v4  ;;  %v125_v13 = vld [vmem:[%s1954_s1 + $0x48] sm:$0xff]  ;;  %v124_v14 = vld [vmem:[%s1954_s1 + $0x40] sm:$0xff]  ;;  %v295_v16 = vld [vmem:[%s1953_s3 + $0x38] sm:$0xff] }
   0x6   :  { %133 = vmatpush.msra.mxu0 %v130_v5  ;;  %964 = vmatpush.msra.mxu1 %v130_v5  ;;  %v296_v15 = vld [vmem:[%s1953_s3 + $0x40] sm:$0xff]  ;;  %v294_v17 = vld [vmem:[%s1953_s3 + $0x30] sm:$0xff]  ;;  %v123_v18 = vld [vmem:[%s1954_s1 + $0x38] sm:$0xff] }
   0x7   :  { %965 = vmatpush.msra.mxu2 %v130_v5  ;;  %966 = vmatpush.msra.mxu3 %v130_v5  ;;  %v122_v19 = vld [vmem:[%s1954_s1 + $0x30] sm:$0xff]  ;;  %v121_v20 = vld [vmem:[%s1954_s1 + $0x28] sm:$0xff]  ;;  %v120_v21 = vld [vmem:[%s1954_s1 + $0x20] sm:$0xff] }
   0x8   :  { %134 = vmatpush.msra.mxu0 %v129_v6  ;;  %967 = vmatpush.msra.mxu1 %v129_v6  ;;  %v299_v22 = vld [vmem:[%s1953_s3 + $0x58] sm:$0xff]  ;;  %v298_v23 = vld [vmem:[%s1953_s3 + $0x50] sm:$0xff]  ;;  %v297_v24 = vld [vmem:[%s1953_s3 + $0x48] sm:$0xff] }
   0x9   :  { %968 = vmatpush.msra.mxu2 %v129_v6  ;;  %969 = vmatpush.msra.mxu3 %v129_v6  ;;  %v119_v25 = vld [vmem:[%s1954_s1 + $0x18] sm:$0xff]  ;;  %v118_v26 = vld [vmem:[%s1954_s1 + $0x10] sm:$0xff]  ;;  %v117_v27 = vld [vmem:[%s1954_s1 + $0x8] sm:$0xff] }
   0xa   :  { %135 = vmatpush.msra.mxu0 %v128_v7  ;;  %970 = vmatpush.msra.mxu1 %v128_v7  ;;  %v116_v28 = vld [vmem:[%s1954_s1] sm:$0xff]  ;;  %v302_v33 = vld [vmem:[%s1953_s3 + $0x70] sm:$0xff]  ;;  %v301_v34 = vld [vmem:[%s1953_s3 + $0x68] sm:$0xff] }
   0xb   :  { %971 = vmatpush.msra.mxu2 %v128_v7  ;;  %972 = vmatpush.msra.mxu3 %v128_v7  ;;  %v100_v29 = vld [vmem:[%s1957_s0] sm:$0xff]  ;;  %v101_v36 = vld [vmem:[%s1957_s0 + $0x8] sm:$0xff]  ;;  %v303_v42 = vld [vmem:[%s1953_s3 + $0x78] sm:$0xff] }
   0xc   :  { %331 = vperm.xlu2 %1094, %v293_v8   ;;  %321 = vperm.xlu1 %1093, %v291_v9   ;;  %v104_v30 = vld [vmem:[%s1957_s0 + $0x20] sm:$0xff]  ;;  %v105_v37 = vld [vmem:[%s1957_s0 + $0x28] sm:$0xff]  ;;  %v102_v43 = vld [vmem:[%s1957_s0 + $0x10] sm:$0xff] }
   0xd   :  { %311 = vperm.xlu0 %1092, %v289_v10   ;;  %136 = vmatpush.msra.mxu0 %v127_v11  ;;  %v108_v31 = vld [vmem:[%s1957_s0 + $0x40] sm:$0xff]  ;;  %v109_v38 = vld [vmem:[%s1957_s0 + $0x48] sm:$0xff]  ;;  %v106_v44 = vld [vmem:[%s1957_s0 + $0x30] sm:$0xff] }
   0xe   :  { %973 = vmatpush.msra.mxu1 %v127_v11  ;;  %974 = vmatpush.msra.mxu2 %v127_v11  ;;  %v112_v32 = vld [vmem:[%s1957_s0 + $0x60] sm:$0xff]  ;;  %v113_v39 = vld [vmem:[%s1957_s0 + $0x68] sm:$0xff]  ;;  %v110_v45 = vld [vmem:[%s1957_s0 + $0x50] sm:$0xff] }
   0xf   :  { %975 = vmatpush.msra.mxu3 %v127_v11  ;;  %137 = vmatpush.msra.mxu0 %v126_v12  ;;  %v300_v35 = vld [vmem:[%s1953_s3 + $0x60] sm:$0xff]  ;;  %v421_v40 = vld [vmem:[%s1959_s4 + $0x8] sm:$0xff]  ;;  %v114_v47 = vld [vmem:[%s1957_s0 + $0x70] sm:$0xff] }
  0x10   :  { %976 = vmatpush.msra.mxu1 %v126_v12  ;;  %977 = vmatpush.msra.mxu2 %v126_v12  ;;  %v420_v41 = vld [vmem:[%s1959_s4] sm:$0xff]  ;;  %v423_v48 = vld [vmem:[%s1959_s4 + $0x18] sm:$0xff]  ;;  %v422_v49 = vld [vmem:[%s1959_s4 + $0x10] sm:$0xff] }
  0x11   :  { %978 = vmatpush.msra.mxu3 %v126_v12  ;;  %138 = vmatpush.msra.mxu0 %v125_v13  ;;  %v424_v46 = vld [vmem:[%s1959_s4 + $0x20] sm:$0xff]  ;;  %v103_v50 = vld [vmem:[%s1957_s0 + $0x18] sm:$0xff]  ;;  %v426_v55 = vld [vmem:[%s1959_s4 + $0x30] sm:$0xff] }
  0x12   :  { %979 = vmatpush.msra.mxu1 %v125_v13  ;;  %980 = vmatpush.msra.mxu2 %v125_v13  ;;  %v107_v51 = vld [vmem:[%s1957_s0 + $0x38] sm:$0xff]  ;;  %v425_v56 = vld [vmem:[%s1959_s4 + $0x28] sm:$0xff]  ;;  %v430_v57 = vld [vmem:[%s1959_s4 + $0x50] sm:$0xff] }
  0x13   :  { %981 = vmatpush.msra.mxu3 %v125_v13  ;;  %139 = vmatpush.msra.mxu0 %v124_v14  ;;  %v111_v52 = vld [vmem:[%s1957_s0 + $0x58] sm:$0xff]  ;;  %v429_v58 = vld [vmem:[%s1959_s4 + $0x48] sm:$0xff]  ;;  %v428_v59 = vld [vmem:[%s1959_s4 + $0x40] sm:$0xff] }
  0x14   :  { %982 = vmatpush.msra.mxu1 %v124_v14  ;;  %983 = vmatpush.msra.mxu2 %v124_v14  ;;  %v427_v53 = vld [vmem:[%s1959_s4 + $0x38] sm:$0xff]  ;;  %v433_v60 = vld [vmem:[%s1959_s4 + $0x68] sm:$0xff]  ;;  %v432_v61 = vld [vmem:[%s1959_s4 + $0x60] sm:$0xff] }
  0x15   :  { %984 = vmatpush.msra.mxu3 %v124_v14  ;;  %346 = vperm.xlu2 %1094, %v296_v15   ;;  %v115_v54 = vld [vmem:[%s1957_s0 + $0x78] sm:$0xff]  ;;  %v434_v0 = vld [vmem:[%s1959_s4 + $0x70] sm:$0xff]  ;;  %v1336_v1 = vld [vmem:[%s1955_s5] ss:$0 sm:$0xff] }
  0x16   :  { %341 = vperm.xlu1 %1093, %v295_v16   ;;  %336 = vperm.xlu0 %1092, %v294_v17   ;;  %v431_v62 = vld [vmem:[%s1959_s4 + $0x58] sm:$0xff] }
  0x17   :  { %140 = vmatpush.msra.mxu0 %v123_v18  ;;  %985 = vmatpush.msra.mxu1 %v123_v18  ;;  %v435_v63 = vld [vmem:[%s1959_s4 + $0x78] sm:$0xff] }
  0x18   :  { %986 = vmatpush.msra.mxu2 %v123_v18  ;;  %987 = vmatpush.msra.mxu3 %v123_v18 }
  0x19   :  { %141 = vmatpush.msra.mxu0 %v122_v19  ;;  %988 = vmatpush.msra.mxu1 %v122_v19 }
  0x1a   :  { %989 = vmatpush.msra.mxu2 %v122_v19  ;;  %990 = vmatpush.msra.mxu3 %v122_v19 }
  0x1b   :  { %142 = vmatpush.msra.mxu0 %v121_v20  ;;  %991 = vmatpush.msra.mxu1 %v121_v20 }
  0x1c   :  { %992 = vmatpush.msra.mxu2 %v121_v20  ;;  %993 = vmatpush.msra.mxu3 %v121_v20 }
  0x1d   :  { %143 = vmatpush.msra.mxu0 %v120_v21  ;;  %994 = vmatpush.msra.mxu1 %v120_v21 }
  0x1e   :  { %995 = vmatpush.msra.mxu2 %v120_v21  ;;  %996 = vmatpush.msra.mxu3 %v120_v21 }
  0x1f   :  { %361 = vperm.xlu2 %1094, %v299_v22   ;;  %356 = vperm.xlu1 %1093, %v298_v23  }
  0x20   :  { %351 = vperm.xlu0 %1092, %v297_v24   ;;  %144 = vmatpush.msra.mxu0 %v119_v25 }
  0x21   :  { %997 = vmatpush.msra.mxu1 %v119_v25  ;;  %998 = vmatpush.msra.mxu2 %v119_v25 }
  0x22   :  { %999 = vmatpush.msra.mxu3 %v119_v25  ;;  %145 = vmatpush.msra.mxu0 %v118_v26 }
  0x23   :  { %1000 = vmatpush.msra.mxu1 %v118_v26  ;;  %1001 = vmatpush.msra.mxu2 %v118_v26 }
  0x24   :  { %1002 = vmatpush.msra.mxu3 %v118_v26  ;;  %146 = vmatpush.msra.mxu0 %v117_v27 }
  0x25   :  { %1003 = vmatpush.msra.mxu1 %v117_v27  ;;  %1004 = vmatpush.msra.mxu2 %v117_v27 }
  0x26   :  { %1005 = vmatpush.msra.mxu3 %v117_v27  ;;  %147 = vmatpush.msra.mxu0 %v116_v28 }
  0x27   :  { %1006 = vmatpush.msra.mxu1 %v116_v28  ;;  %1007 = vmatpush.msra.mxu2 %v116_v28 }
  0x28   :  { %1008 = vmatpush.msra.mxu3 %v116_v28  ;;  %148 = vmatmul.f32.vlgmr.msra.gmra.mxu0 %v100_v29 }
  0x29   :  { %160 = vmatmul.f32.vlgmr.msra.gmra.mxu1 %v104_v30  ;;  %172 = vmatmul.f32.vlgmr.msra.gmra.mxu2 %v108_v31  ;;  %v1387_v31 = vld [vmem:[%s1956_s6] ss:$0 sm:$0xff] }
  0x2a   :  { %184 = vmatmul.f32.vlgmr.msra.gmra.mxu3 %v112_v32  ;;  %376 = vperm.xlu2 %1094, %v302_v33  }
  0x2b   :  { %371 = vperm.xlu1 %1093, %v301_v34   ;;  %366 = vperm.xlu0 %1092, %v300_v35   ;;  %v1394_v35 = vld [vmem:[%s1958_s2] ss:$0 sm:$0xff] }
  0x30   :  { %151 = vmatmul.f32.gmra.mxu0 %v101_v36 }
  0x31   :  { %163 = vmatmul.f32.gmra.mxu1 %v105_v37  ;;  %175 = vmatmul.f32.gmra.mxu2 %v109_v38 }
  0x32   :  { %187 = vmatmul.f32.gmra.mxu3 %v113_v39  ;;  %443 = vperm.xlu2 %1094, %v421_v40  }
  0x33   :  { %438 = vperm.xlu1 %1093, %v420_v41   ;;  %381 = vperm.xlu0 %1092, %v303_v42  }
  0x38   :  { %154 = vmatmul.f32.gmra.mxu0 %v102_v43 }
  0x39   :  { %166 = vmatmul.f32.gmra.mxu1 %v106_v44  ;;  %178 = vmatmul.f32.gmra.mxu2 %v110_v45 }
  0x3a   :  { %458 = vperm.xlu2 %1094, %v424_v46   ;;  %190 = vmatmul.f32.gmra.mxu3 %v114_v47 }
  0x3b   :  { %453 = vperm.xlu1 %1093, %v423_v48   ;;  %448 = vperm.xlu0 %1092, %v422_v49  }
  0x40   :  { %157 = vmatmul.f32.gmra.mxu0 %v103_v50 }
  0x41   :  { %169 = vmatmul.f32.gmra.mxu1 %v107_v51  ;;  %181 = vmatmul.f32.gmra.mxu2 %v111_v52 }
  0x42   :  { %473 = vperm.xlu2 %1094, %v427_v53   ;;  %193 = vmatmul.f32.gmra.mxu3 %v115_v54 }
  0x43   :  { %468 = vperm.xlu1 %1093, %v426_v55   ;;  %463 = vperm.xlu0 %1092, %v425_v56  }
  0x4a   :  { %488 = vperm.xlu2 %1094, %v430_v57  }
  0x4b   :  { %483 = vperm.xlu1 %1093, %v429_v58   ;;  %478 = vperm.xlu0 %1092, %v428_v59  }
  0x52   :  { %503 = vperm.xlu2 %1094, %v433_v60  }
  0x53   :  { %498 = vperm.xlu1 %1093, %v432_v61   ;;  %493 = vperm.xlu0 %1092, %v431_v62  }
  0x5b   :  { %513 = vperm.xlu1 %1093, %v435_v63   ;;  %508 = vperm.xlu0 %1092, %v434_v0  }
  0x5c   :  { %v327_v2 = vpop.permute.xlu2 %326 }
  0x5d   :  { %v388_v3 = vsub.f32 %v1336_v1, %v327_v2 }
  0x5f   :  { %v404_v52 = vand.u32 2147483647, %v388_v3 }
  0x61   :  { %vm552_vm4 = vcmp.le.f32.partialorder %v404_v52, 1.0 }
  0x66   :  { %v1339_v4 = vpop.permute.xlu2 %331 }
  0x67   :  { %v389_v5 = vsub.f32 %v1336_v1, %v1339_v4 }
  0x6f   :  { %v1343_v6 = vpop.permute.xlu2 %346 }
  0x70   :  { %v392_v7 = vsub.f32 %v1336_v1, %v1343_v6 }
  0x75   :  { %v1347_v8 = vpop.permute.xlu1 %316  ;;  %v307_v9 = vpop.permute.xlu0 %306 }
  0x76   :  { %v386_v10 = vsub.f32 %v1336_v1, %v1347_v8  ;;  %v384_v30 = vsub.f32 %v1336_v1, %v307_v9 }
  0x78   :  { %v400_v36 = vand.u32 2147483647, %v384_v30 }
  0x79   :  { %v1351_v11 = vpop.permute.xlu2 %361 }
  0x7a   :  { %v395_v12 = vsub.f32 %v1336_v1, %v1351_v11  ;;  %vm548_vm0 = vcmp.le.f32.partialorder %v400_v36, 1.0 }
  0x7e   :  { %v1355_v13 = vpop.permute.xlu1 %321 }
  0x7f   :  { %v387_v14 = vsub.f32 %v1336_v1, %v1355_v13  ;;  %v1359_v15 = vpop.permute.xlu0 %311 }
  0x80   :  { %v385_v16 = vsub.f32 %v1336_v1, %v1359_v15 }
  0x81   :  { %v403_v15 = vand.u32 2147483647, %v387_v14 }
  0x84   :  { %v1363_v17 = vpop.permute.xlu2 %376 }
  0x85   :  { %v398_v18 = vsub.f32 %v1336_v1, %v1363_v17 }
  0x88   :  { %v1367_v19 = vpop.permute.xlu1 %341  ;;  %v1369_v20 = vpop.permute.xlu0 %336 }
  0x89   :  { %v391_v21 = vsub.f32 %v1336_v1, %v1367_v19  ;;  %v390_v22 = vsub.f32 %v1336_v1, %v1369_v20 }
  0x8c   :  { %v1375_v23 = vpop.permute.xlu2 %443 }
  0x91   :  { %v357_v24 = vpop.permute.xlu1 %356 }
  0x92   :  { %v1377_v25 = vpop.permute.xlu0 %351 }
  0x94   :  { %v459_v26 = vpop.permute.xlu2 %458 }
  0x95   :  { %v520_v41 = vsub.f32 %v1387_v31, %v459_v26 }
  0x97   :  { %v536_v45 = vand.u32 2147483647, %v520_v41 }
  0x99   :  { %vm568_vm3 = vcmp.le.f32.partialorder %v536_v45, 1.0 }
  0x9a   :  { %vm584_vm5 = vmand %vm552_vm4, %vm568_vm3 }
  0x9c   :  { %v1379_v27 = vpop.permute.xlu2 %473 }
  0x9d   :  { %v372_v28 = vpop.permute.xlu1 %371  ;;  %v1381_v29 = vpop.permute.xlu0 %366 }
  0x9e   :  { %v397_v57 = vsub.f32 %v1336_v1, %v372_v28  ;;  %v394_v28 = vsub.f32 %v1336_v1, %v357_v24  ;;  %v396_v6 = vsub.f32 %v1336_v1, %v1381_v29 }
  0xa0   :  { %v413_v0 = vand.u32 2147483647, %v397_v57 }
  0xa2   :  { %vm561_vm7 = vcmp.le.f32.partialorder %v413_v0, 1.0 }
  0xa4   :  { %v489_v32 = vpop.permute.xlu2 %488 }
  0xa5   :  { %v439_v33 = vpop.permute.xlu1 %438  ;;  %v1389_v34 = vpop.permute.xlu0 %381  ;;  %v526_v3 = vsub.f32 %v1387_v31, %v489_v32  ;;  %v408_v32 = vand.u32 2147483647, %v392_v7 }
  0xa6   :  { %v516_v37 = vsub.f32 %v1387_v31, %v439_v33  ;;  %v399_v38 = vsub.f32 %v1336_v1, %v1389_v34  ;;  %v149_v39 = vpop.f32.mrf.mxu0  ;;  %v161_v43 = vpop.f32.mrf.mxu1  ;;  %v414_v34 = vand.u32 2147483647, %v398_v18 }
  0xa7   :  { %v252_v40 = vmul.f32 2.0, %v149_v39  ;;  %v256_v46 = vmul.f32 2.0, %v161_v43  ;;  %v542_v33 = vand.u32 2147483647, %v526_v3  ;;  %vm556_vm11 = vcmp.le.f32.partialorder %v408_v32, 1.0 }
  0xa8   :  { %v532_v42 = vand.u32 2147483647, %v516_v37 }
  0xa9   :  { %v268_v44 = vsub.f32 %v1394_v35, %v252_v40  ;;  %v272_v56 = vsub.f32 %v1394_v35, %v256_v46  ;;  %v410_v40 = vand.u32 2147483647, %v394_v28  ;;  %vm574_vm9 = vcmp.le.f32.partialorder %v542_v33, 1.0 }
  0xaa   :  { %vm564_vm1 = vcmp.le.f32.partialorder %v532_v42, 1.0 }
  0xab   :  { %vm580_vm2 = vmand %vm548_vm0, %vm564_vm1  ;;  %v1413_v61 = vsel %vm584_vm5, %v272_v56, 1e+30  ;;  %vm558_vm10 = vcmp.le.f32.partialorder %v410_v40, 1.0  ;;  %vm551_vm5 = vcmp.le.f32.partialorder %v403_v15, 1.0  ;;  %v406_v15 = vand.u32 2147483647, %v390_v22 }
  0xac   :  { %v504_v47 = vpop.permute.xlu2 %503  ;;  %v173_v48 = vpop.f32.mrf.mxu2  ;;  %v1401_v49 = vsel %vm580_vm2, %v268_v44, 1e+30  ;;  %v517_v44 = vsub.f32 %v1387_v31, %v1375_v23  ;;  %vm590_vm13 = vmand %vm558_vm10, %vm574_vm9  ;;  %vm32_vm9 = vcmask 7168   ;;  %v644_v22 = vlaneseq }
  0xad   :  { %v454_v50 = vpop.permute.xlu1 %453  ;;  %v1403_v51 = vpop.permute.xlu0 %448  ;;  %612 = vmin.xlane.f32.xlu2 %v1401_v49  ;;  %v529_v55 = vsub.f32 %v1387_v31, %v504_v47  ;;  %v260_v36 = vmul.f32 2.0, %v173_v48 }
  0xae   :  { %v185_v53 = vpop.f32.mrf.mxu3  ;;  %v152_v54 = vpop.f32.mrf.mxu0  ;;  %v533_v23 = vand.u32 2147483647, %v517_v44  ;;  %v518_v19 = vsub.f32 %v1387_v31, %v1403_v51 }
  0xaf   :  { %v545_v58 = vand.u32 2147483647, %v529_v55  ;;  %v1409_v59 = vpop.f32.mrf.mxu1  ;;  %v276_v47 = vsub.f32 %v1394_v35, %v260_v36  ;;  %v519_v55 = vsub.f32 %v1387_v31, %v454_v50  ;;  %v253_v56 = vmul.f32 2.0, %v152_v54 }
  0xb0   :  { %v264_v57 = vmul.f32 2.0, %v185_v53  ;;  %v401_v50 = vand.u32 2147483647, %v385_v16  ;;  %v393_v53 = vsub.f32 %v1336_v1, %v1377_v25  ;;  %v412_v54 = vand.u32 2147483647, %v396_v6 }
  0xb1   :  { %vm577_vm6 = vcmp.le.f32.partialorder %v545_v58, 1.0  ;;  %v535_v3 = vand.u32 2147483647, %v519_v55  ;;  %vm565_vm15 = vcmp.le.f32.partialorder %v533_v23, 1.0  ;;  %v523_v16 = vsub.f32 %v1387_v31, %v1379_v27 }
  0xb2   :  { %vm593_vm8 = vmand %vm561_vm7, %vm577_vm6  ;;  %v269_v33 = vsub.f32 %v1394_v35, %v253_v56  ;;  %v280_v40 = vsub.f32 %v1394_v35, %v264_v57  ;;  %v405_v25 = vand.u32 2147483647, %v389_v5  ;;  %vm549_vm0 = vcmp.le.f32.partialorder %v401_v50, 1.0 }
  0xb3   :  { %vm567_vm1 = vcmp.le.f32.partialorder %v535_v3, 1.0  ;;  %v409_v14 = vand.u32 2147483647, %v393_v53  ;;  %vm560_vm2 = vcmp.le.f32.partialorder %v412_v54, 1.0  ;;  %vm581_vm4 = vmand %vm549_vm0, %vm565_vm15  ;;  %v257_v32 = vmul.f32 2.0, %v1409_v59 }
  0xb4   :  { %v1411_v60 = vpop.f32.mrf.mxu2  ;;  %v407_v55 = vand.u32 2147483647, %v391_v21  ;;  %v415_v23 = vand.u32 2147483647, %v399_v38  ;;  %v534_v3 = vand.u32 2147483647, %v518_v19 }
  0xb5   :  { %v1415_v62 = vpop.permute.xlu1 %468  ;;  %v464_v63 = vpop.permute.xlu0 %463  ;;  %620 = vmin.xlane.f32.xlu2 %v1413_v61  ;;  %v261_v4 = vmul.f32 2.0, %v1411_v60  ;;  %v273_v57 = vsub.f32 %v1394_v35, %v257_v32  ;;  %v402_v54 = vand.u32 2147483647, %v386_v10 }
  0xb6   :  { %v188_v2 = vpop.f32.mrf.mxu3  ;;  %v1419_v26 = vpop.f32.mrf.mxu0  ;;  %v521_v58 = vsub.f32 %v1387_v31, %v464_v63  ;;  %vm555_vm0 = vcmp.le.f32.partialorder %v407_v55, 1.0 }
  0xb7   :  { %v265_v9 = vmul.f32 2.0, %v188_v2  ;;  %v1432_v45 = vpop.f32.mrf.mxu1  ;;  %v277_v56 = vsub.f32 %v1394_v35, %v261_v4  ;;  %v254_v17 = vmul.f32 2.0, %v1419_v26  ;;  %v522_v26 = vsub.f32 %v1387_v31, %v1415_v62 }
  0xb8   :  { %v537_v36 = vand.u32 2147483647, %v521_v58 }
  0xb9   :  { %v281_v30 = vsub.f32 %v1394_v35, %v265_v9  ;;  %v538_v8 = vand.u32 2147483647, %v522_v26 }
  0xba   :  { %vm569_vm7 = vcmp.le.f32.partialorder %v537_v36, 1.0 }
  0xbb   :  { %v1423_v39 = vsel %vm593_vm8, %v281_v30, 1e+30  ;;  %vm583_vm8 = vmand %vm551_vm5, %vm567_vm1 }
  0xbc   :  { %v179_v37 = vpop.f32.mrf.mxu2 }
  0xbd   :  { %v484_v41 = vpop.permute.xlu1 %483  ;;  %v479_v42 = vpop.permute.xlu0 %478  ;;  %v262_v43 = vmul.f32 2.0, %v179_v37  ;;  %638 = vmin.xlane.f32.xlu2 %v1423_v39 }
  0xbe   :  { %v524_v24 = vsub.f32 %v1387_v31, %v479_v42  ;;  %v1436_v52 = vpop.f32.mrf.mxu3  ;;  %v158_v7 = vpop.f32.mrf.mxu0  ;;  %v525_v63 = vsub.f32 %v1387_v31, %v484_v41 }
  0xbf   :  { %v278_v48 = vsub.f32 %v1394_v35, %v262_v43  ;;  %v255_v9 = vmul.f32 2.0, %v158_v7  ;;  %v170_v13 = vpop.f32.mrf.mxu1  ;;  %v539_v43 = vand.u32 2147483647, %v523_v16  ;;  %v1099_v7 = vmov 3e+38  }
  0xc0   :  { %v540_v46 = vand.u32 2147483647, %v524_v24  ;;  %v541_v42 = vand.u32 2147483647, %v525_v63  ;;  %v1470_v24 = vsel %vm581_vm4, %v269_v33, 1e+30 }
  0xc1   :  { %v1444_v2 = vsel %vm590_vm13, %v278_v48, 1e+30  ;;  %v271_v41 = vsub.f32 %v1394_v35, %v255_v9  ;;  %v259_v5 = vmul.f32 2.0, %v170_v13  ;;  %33 = vst.msk [vmem:[#allocation3] sm:$0xff] %vm32_vm9, %v1099_v7  ;;  %vm571_vm13 = vcmp.le.f32.partialorder %v539_v43, 1.0 }
  0xc2   :  { %vm572_vm12 = vcmp.le.f32.partialorder %v540_v46, 1.0  ;;  %vm573_vm10 = vcmp.le.f32.partialorder %v541_v42, 1.0  ;;  %34 = vst.msk [vmem:[#allocation3 + $0x8] sm:$0xff] %vm32_vm9, %v1099_v7  ;;  %v266_v18 = vmul.f32 2.0, %v1436_v52  ;;  %v258_v16 = vmul.f32 2.0, %v1432_v45 }
  0xc3   :  { %vm588_vm14 = vmand %vm556_vm11, %vm572_vm12  ;;  %v1478_v48 = vsel %vm583_vm8, %v271_v41, 1e+30  ;;  %vm553_vm11 = vcmp.le.f32.partialorder %v405_v25, 1.0  ;;  %vm557_vm12 = vcmp.le.f32.partialorder %v409_v14, 1.0  ;;  %35 = vst.msk [vmem:[#allocation3 + $0x10] sm:$0xff] %vm32_vm9, %v1099_v7  ;;  %v275_v38 = vsub.f32 %v1394_v35, %v259_v5 }
  0xc4   :  { %v1442_v0 = vsel %vm588_vm14, %v276_v47, 1e+30  ;;  %vm1498_vm14 = vmand %vm553_vm11, %vm569_vm7  ;;  %36 = vst.msk [vmem:[#allocation3 + $0x18] sm:$0xff] %vm32_vm9, %v1099_v7  ;;  %vm566_vm7 = vcmp.le.f32.partialorder %v534_v3, 1.0  ;;  %v282_v62 = vsub.f32 %v1394_v35, %v266_v18  ;;  %v182_v10 = vpop.f32.mrf.mxu2  ;;  %v274_v11 = vsub.f32 %v1394_v35, %v258_v16 }
  0xc5   :  { %v499_v29 = vpop.permute.xlu1 %498  ;;  %v1449_v28 = vpop.permute.xlu0 %493  ;;  %628 = vmin.xlane.f32.xlu0 %v1442_v0  ;;  %632 = vmin.xlane.f32.xlu2 %v1444_v2  ;;  %vm589_vm15 = vmand %vm557_vm12, %vm573_vm10  ;;  %37 = vst.msk [vmem:[#allocation3 + $0x20] sm:$0xff] %vm32_vm9, %v1099_v7  ;;  %vm550_vm10 = vcmp.le.f32.partialorder %v402_v54, 1.0  ;;  %v263_v33 = vmul.f32 2.0, %v182_v10  ;;  %vm570_vm12 = vcmp.le.f32.partialorder %v538_v8, 1.0  ;;  %v645_v45 = vand.u32 127, %v644_v22 }
  0xc6   :  { %v528_v30 = vsub.f32 %v1387_v31, %v499_v29  ;;  %v194_v27 = vpop.f32.mrf.mxu3  ;;  %38 = vst.msk [vmem:[#allocation3 + $0x28] sm:$0xff] %vm32_vm9, %v1099_v7  ;;  %v1519_v9 = vsel %vm589_vm15, %v277_v56, 1e+30  ;;  %v1523_v29 = vsel %vm1498_vm14, %v273_v57, 1e+30  ;;  %v527_v63 = vsub.f32 %v1387_v31, %v1449_v28  ;;  %vm582_vm11 = vmand %vm550_vm10, %vm566_vm7 }
  0xc7   :  { %v267_v59 = vmul.f32 2.0, %v194_v27  ;;  %39 = vst.msk [vmem:[#allocation3 + $0x30] sm:$0xff] %vm32_vm9, %v1099_v7  ;;  %v411_v28 = vand.u32 2147483647, %v395_v12  ;;  %vm554_vm14 = vcmp.le.f32.partialorder %v406_v15, 1.0  ;;  %v279_v1 = vsub.f32 %v1394_v35, %v263_v33 }
  0xc8   :  { %v544_v37 = vand.u32 2147483647, %v528_v30  ;;  %40 = vst.msk [vmem:[#allocation3 + $0x38] sm:$0xff] %vm32_vm9, %v1099_v7  ;;  %v270_v30 = vsub.f32 %v1394_v35, %v254_v17  ;;  %v1585_v25 = vcvt.s32.f32 %v645_v45 }
  0xc9   :  { %v283_v51 = vsub.f32 %v1394_v35, %v267_v59  ;;  %41 = vst.msk [vmem:[#allocation3 + $0x40] sm:$0xff] %vm32_vm9, %v1099_v7  ;;  %vm559_vm15 = vcmp.le.f32.partialorder %v411_v28, 1.0 }
  0xca   :  { %vm576_vm3 = vcmp.le.f32.partialorder %v544_v37, 1.0  ;;  %42 = vst.msk [vmem:[#allocation3 + $0x48] sm:$0xff] %vm32_vm9, %v1099_v7  ;;  %v1566_v37 = vsel %vm582_vm11, %v270_v30, 1e+30  ;;  %v1100_v30 = vmov 0.0  }
  0xcb   :  { %vm592_vm6 = vmand %vm560_vm2, %vm576_vm3  ;;  %vm563_vm2 = vcmp.le.f32.partialorder %v415_v23, 1.0  ;;  %43 = vst.msk [vmem:[#allocation3 + $0x50] sm:$0xff] %vm32_vm9, %v1099_v7 }
  0xcc   :  { %v1473_v44 = vsel %vm592_vm6, %v280_v40, 1e+30  ;;  %vm587_vm3 = vmand %vm555_vm0, %vm571_vm13  ;;  %vm562_vm6 = vcmp.le.f32.partialorder %v414_v34, 1.0  ;;  %44 = vst.msk [vmem:[#allocation3 + $0x58] sm:$0xff] %vm32_vm9, %v1099_v7  ;;  %v1583_v40 = vld [vmem:[#allocation3] sm:$0xff] }
  0xcd   :  { %v514_v46 = vpop.permute.xlu1 %513  ;;  %v509_v47 = vpop.permute.xlu0 %508  ;;  %636 = vmin.xlane.f32.xlu1 %v1473_v44  ;;  %614 = vmin.xlane.f32.xlu0 %v1470_v24  ;;  %v1531_v53 = vsel %vm587_vm3, %v275_v38, 1e+30  ;;  %45 = vst.msk [vmem:[#allocation3 + $0x60] sm:$0xff] %vm32_vm9, %v1099_v7  ;;  %vm586_vm0 = vmand %vm554_vm14, %vm570_vm12  ;;  %v1600_v14 = vld [vmem:[#allocation3 + $0x20] sm:$0xff]  ;;  %v1700_v38 = vld [vmem:[#allocation3 + $0x28] sm:$0xff] }
  0xce   :  { %v531_v60 = vsub.f32 %v1387_v31, %v514_v46  ;;  %v530_v6 = vsub.f32 %v1387_v31, %v509_v47  ;;  %618 = vmin.xlane.f32.xlu2 %v1478_v48  ;;  %v543_v31 = vand.u32 2147483647, %v527_v63  ;;  %46 = vst.msk [vmem:[#allocation3 + $0x68] sm:$0xff] %vm32_vm9, %v1099_v7  ;;  %v1578_v20 = vsel %vm586_vm0, %v274_v11, 1e+30  ;;  %v1779_v33 = vld [vmem:[#allocation3 + $0x30] sm:$0xff] }
  0xcf   :  { %47 = vst.msk [vmem:[#allocation3 + $0x70] sm:$0xff] %vm32_vm9, %v1099_v7 }
  0xd0   :  { %v547_v21 = vand.u32 2147483647, %v531_v60  ;;  %v546_v50 = vand.u32 2147483647, %v530_v6  ;;  %48 = vst.msk [vmem:[#allocation3 + $0x78] sm:$0xff] %vm32_vm9, %v1099_v7  ;;  %vm575_vm13 = vcmp.le.f32.partialorder %v543_v31, 1.0 }
  0xd1   :  { %v1627_v4 = vld [vmem:[#allocation3 + $0x40] sm:$0xff]  ;;  %v1656_v6 = vld [vmem:[#allocation3 + $0x8] sm:$0xff]  ;;  %v1658_v7 = vld [vmem:[#allocation3 + $0x18] sm:$0xff]  ;;  %49 = vst.msk [vmem:[#allocation4] sm:$0xff] %vm32_vm9, %v1100_v30 }
  0xd2   :  { %vm579_vm1 = vcmp.le.f32.partialorder %v547_v21, 1.0  ;;  %vm578_vm5 = vcmp.le.f32.partialorder %v546_v50, 1.0  ;;  %v1629_v5 = vld [vmem:[#allocation3 + $0x50] sm:$0xff]  ;;  %v1698_v34 = vld [vmem:[#allocation3 + $0x48] sm:$0xff]  ;;  %50 = vst.msk [vmem:[#allocation4 + $0x8] sm:$0xff] %vm32_vm9, %v1100_v30 }
  0xd3   :  { %vm595_vm4 = vmand %vm563_vm2, %vm579_vm1  ;;  %51 = vst.msk [vmem:[#allocation4 + $0x10] sm:$0xff] %vm32_vm9, %v1100_v30  ;;  %v1777_v16 = vld [vmem:[#allocation3 + $0x58] sm:$0xff] }
  0xd4   :  { %v1533_v52 = vsel %vm595_vm4, %v283_v51, 1e+30  ;;  %vm594_vm8 = vmand %vm562_vm6, %vm578_vm5  ;;  %v1702_v51 = vld [vmem:[#allocation3 + $0x38] sm:$0xff]  ;;  %52 = vst.msk [vmem:[#allocation4 + $0x18] sm:$0xff] %vm32_vm9, %v1100_v30 }
  0xd5   :  { %630 = vmin.xlane.f32.xlu1 %v1519_v9  ;;  %622 = vmin.xlane.f32.xlu0 %v1523_v29  ;;  %v1564_v36 = vsel %vm594_vm8, %v282_v62, 1e+30  ;;  %vm591_vm1 = vmand %vm559_vm15, %vm575_vm13  ;;  %v1615_v43 = vld [vmem:[#allocation3 + $0x68] sm:$0xff]  ;;  %v1743_v62 = vld [vmem:[#allocation3 + $0x10] sm:$0xff]  ;;  %53 = vst.msk [vmem:[#allocation4 + $0x20] sm:$0xff] %vm32_vm9, %v1100_v30 }
  0xd6   :  { %626 = vmin.xlane.f32.xlu2 %v1531_v53  ;;  %v1576_v12 = vsel %vm591_vm1, %v279_v1, 1e+30  ;;  %v1741_v63 = vld [vmem:[#allocation3 + $0x70] sm:$0xff]  ;;  %54 = vst.msk [vmem:[#allocation4 + $0x28] sm:$0xff] %vm32_vm9, %v1100_v30 }
  0xd7   :  { %55 = vst.msk [vmem:[#allocation4 + $0x30] sm:$0xff] %vm32_vm9, %v1100_v30  ;;  %v1816_v45 = vld [vmem:[#allocation3 + $0x78] sm:$0xff] }
  0xd8   :  { %56 = vst.msk [vmem:[#allocation4 + $0x38] sm:$0xff] %vm32_vm9, %v1100_v30 }
  0xd9   :  { %57 = vst.msk [vmem:[#allocation4 + $0x40] sm:$0xff] %vm32_vm9, %v1100_v30 }
  0xda   :  { %58 = vst.msk [vmem:[#allocation4 + $0x48] sm:$0xff] %vm32_vm9, %v1100_v30 }
  0xdb   :  { %59 = vst.msk [vmem:[#allocation4 + $0x50] sm:$0xff] %vm32_vm9, %v1100_v30 }
  0xdc   :  { %60 = vst.msk [vmem:[#allocation4 + $0x58] sm:$0xff] %vm32_vm9, %v1100_v30 }
  0xdd   :  { %640 = vmin.xlane.f32.xlu0 %v1564_v36  ;;  %616 = vmin.xlane.f32.xlu1 %v1566_v37  ;;  %61 = vst.msk [vmem:[#allocation4 + $0x60] sm:$0xff] %vm32_vm9, %v1100_v30 }
  0xde   :  { %62 = vst.msk [vmem:[#allocation4 + $0x68] sm:$0xff] %vm32_vm9, %v1100_v30 }
  0xdf   :  { %63 = vst.msk [vmem:[#allocation4 + $0x70] sm:$0xff] %vm32_vm9, %v1100_v30 }
  0xe0   :  { %64 = vst.msk [vmem:[#allocation4 + $0x78] sm:$0xff] %vm32_vm9, %v1100_v30 }
  0xe5   :  { %634 = vmin.xlane.f32.xlu0 %v1576_v12  ;;  %624 = vmin.xlane.f32.xlu1 %v1578_v20 }
  0xed   :  { %642 = vmin.xlane.f32.xlu1 %v1533_v52 }
 0x120   :  { %v1587_v41 = vpop.xlane.xlu2 %612 }
 0x121   :  { %vm730_vm2 = vcmp.lt.f32.partialorder %v1587_v41, %v1583_v40  ;;  %vm650_vm3 = vcmp.eq.f32.partialorder %v1401_v49, %v1587_v41 }
 0x122   :  { %v746_v35 = vsel %vm730_vm2, %v1587_v41, %v1583_v40  ;;  %v666_v13 = vsel %vm650_vm3, %v1585_v25, 1e+09  ;;  %v780_v41 = vld [vmem:[#allocation4 + $0x8] sm:$0xff] }
 0x123   :  { %763 = vst.msk [vmem:[#allocation3] sm:$0xff] %vm32_vm9, %v746_v35  ;;  %682 = vmin.xlane.f32.xlu2 %v666_v13 }
 0x128   :  { %v1602_v42 = vpop.xlane.xlu2 %620 }
 0x129   :  { %vm734_vm4 = vcmp.lt.f32.partialorder %v1602_v42, %v1600_v14  ;;  %vm654_vm5 = vcmp.eq.f32.partialorder %v1413_v61, %v1602_v42 }
 0x12a   :  { %v750_v49 = vsel %vm734_vm4, %v1602_v42, %v1600_v14  ;;  %v670_v27 = vsel %vm654_vm5, %v1585_v25, 1e+09 }
 0x12b   :  { %767 = vst.msk [vmem:[#allocation3 + $0x20] sm:$0xff] %vm32_vm9, %v750_v49  ;;  %690 = vmin.xlane.f32.xlu0 %v670_v27  ;;  %v779_v27 = vld [vmem:[#allocation4] sm:$0xff] }
 0x130   :  { %v1617_v32 = vpop.xlane.xlu2 %638 }
 0x131   :  { %vm743_vm6 = vcmp.lt.f32.partialorder %v1617_v32, %v1615_v43  ;;  %vm663_vm0 = vcmp.eq.f32.partialorder %v1423_v39, %v1617_v32 }
 0x132   :  { %v759_v61 = vsel %vm743_vm6, %v1617_v32, %v1615_v43  ;;  %v679_v17 = vsel %vm663_vm0, %v1585_v25, 1e+09  ;;  %v789_v43 = vld [vmem:[#allocation4 + $0x50] sm:$0xff] }
 0x133   :  { %776 = vst.msk [vmem:[#allocation3 + $0x68] sm:$0xff] %vm32_vm9, %v759_v61  ;;  %v781_v32 = vld [vmem:[#allocation4 + $0x10] sm:$0xff] }
 0x138   :  { %v1631_v46 = vpop.xlane.xlu0 %628  ;;  %v1633_v47 = vpop.xlane.xlu2 %632 }
 0x139   :  { %vm738_vm7 = vcmp.lt.f32.partialorder %v1631_v46, %v1627_v4  ;;  %vm740_vm8 = vcmp.lt.f32.partialorder %v1633_v47, %v1629_v5  ;;  %vm658_vm10 = vcmp.eq.f32.partialorder %v1442_v0, %v1631_v46  ;;  %v1654_v0 = vld [vmem:[#allocation3 + $0x60] sm:$0xff] }
 0x13a   :  { %v754_v59 = vsel %vm738_vm7, %v1631_v46, %v1627_v4  ;;  %v756_v55 = vsel %vm740_vm8, %v1633_v47, %v1629_v5  ;;  %v674_v60 = vsel %vm658_vm10, %v1585_v25, 1e+09  ;;  %v792_v4 = vld [vmem:[#allocation4 + $0x68] sm:$0xff] }
 0x13b   :  { %771 = vst.msk [vmem:[#allocation3 + $0x40] sm:$0xff] %vm32_vm9, %v754_v59  ;;  %698 = vmin.xlane.f32.xlu1 %v674_v60  ;;  %v784_v46 = vld [vmem:[#allocation4 + $0x28] sm:$0xff] }
 0x13c   :  { %773 = vst.msk [vmem:[#allocation3 + $0x50] sm:$0xff] %vm32_vm9, %v756_v55  ;;  %v783_v55 = vld [vmem:[#allocation4 + $0x20] sm:$0xff] }
 0x140   :  { %v1660_v23 = vpop.xlane.xlu1 %636  ;;  %v1662_v19 = vpop.xlane.xlu0 %614 }
 0x141   :  { %vm742_vm11 = vcmp.lt.f32.partialorder %v1660_v23, %v1654_v0  ;;  %vm731_vm12 = vcmp.lt.f32.partialorder %v1662_v19, %v1656_v6  ;;  %v1668_v21 = vpop.xlane.xlu2 %618  ;;  %vm651_vm13 = vcmp.eq.f32.partialorder %v1470_v24, %v1662_v19  ;;  %vm662_vm14 = vcmp.eq.f32.partialorder %v1473_v44, %v1660_v23 }
 0x142   :  { %v758_v56 = vsel %vm742_vm11, %v1660_v23, %v1654_v0  ;;  %v747_v57 = vsel %vm731_vm12, %v1662_v19, %v1656_v6  ;;  %vm1961_vm15 = vcmp.lt.f32.partialorder %v1668_v21, %v1658_v7  ;;  %v667_v24 = vsel %vm651_vm13, %v1585_v25, 1e+09 }
 0x143   :  { %775 = vst.msk [vmem:[#allocation3 + $0x60] sm:$0xff] %vm32_vm9, %v758_v56  ;;  %v749_v44 = vsel %vm1961_vm15, %v1668_v21, %v1658_v7  ;;  %684 = vmin.xlane.f32.xlu0 %v667_v24  ;;  %v678_v58 = vsel %vm662_vm14, %v1585_v25, 1e+09  ;;  %vm660_vm14 = vcmp.eq.f32.partialorder %v1444_v2, %v1633_v47 }
 0x144   :  { %764 = vst.msk [vmem:[#allocation3 + $0x8] sm:$0xff] %vm32_vm9, %v747_v57  ;;  %706 = vmin.xlane.f32.xlu2 %v678_v58  ;;  %v676_v28 = vsel %vm660_vm14, %v1585_v25, 1e+09 }
 0x145   :  { %766 = vst.msk [vmem:[#allocation3 + $0x18] sm:$0xff] %vm32_vm9, %v749_v44  ;;  %v791_v44 = vld [vmem:[#allocation4 + $0x60] sm:$0xff] }
 0x148   :  { %v1704_v50 = vpop.xlane.xlu1 %630  ;;  %v1706_v3 = vpop.xlane.xlu0 %622 }
 0x149   :  { %vm739_vm1 = vcmp.lt.f32.partialorder %v1704_v50, %v1698_v34  ;;  %vm735_vm3 = vcmp.lt.f32.partialorder %v1706_v3, %v1700_v38  ;;  %v1713_v18 = vpop.xlane.xlu2 %626  ;;  %vm655_vm5 = vcmp.eq.f32.partialorder %v1523_v29, %v1706_v3  ;;  %vm659_vm10 = vcmp.eq.f32.partialorder %v1519_v9, %v1704_v50 }
 0x14a   :  { %v755_v39 = vsel %vm739_vm1, %v1704_v50, %v1698_v34  ;;  %v751_v26 = vsel %vm735_vm3, %v1706_v3, %v1700_v38  ;;  %vm1962_vm13 = vcmp.lt.f32.partialorder %v1713_v18, %v1702_v51  ;;  %v671_v29 = vsel %vm655_vm5, %v1585_v25, 1e+09 }
 0x14b   :  { %772 = vst.msk [vmem:[#allocation3 + $0x48] sm:$0xff] %vm32_vm9, %v755_v39  ;;  %v753_v9 = vsel %vm1962_vm13, %v1713_v18, %v1702_v51  ;;  %708 = vmin.xlane.f32.xlu0 %v679_v17  ;;  %692 = vmin.xlane.f32.xlu1 %v671_v29  ;;  %v675_v54 = vsel %vm659_vm10, %v1585_v25, 1e+09 }
 0x14c   :  { %768 = vst.msk [vmem:[#allocation3 + $0x28] sm:$0xff] %vm32_vm9, %v751_v26  ;;  %700 = vmin.xlane.f32.xlu2 %v675_v54  ;;  %v788_v26 = vld [vmem:[#allocation4 + $0x48] sm:$0xff] }
 0x14d   :  { %770 = vst.msk [vmem:[#allocation3 + $0x38] sm:$0xff] %vm32_vm9, %v753_v9 }
 0x150   :  { %v1749_v8 = vpop.xlane.xlu0 %640  ;;  %v1751_v10 = vpop.xlane.xlu1 %616 }
 0x151   :  { %vm1963_vm0 = vcmp.lt.f32.partialorder %v1749_v8, %v1741_v63  ;;  %vm732_vm5 = vcmp.lt.f32.partialorder %v1751_v10, %v1743_v62  ;;  %vm652_vm10 = vcmp.eq.f32.partialorder %v1566_v37, %v1751_v10  ;;  %vm664_vm14 = vcmp.eq.f32.partialorder %v1564_v36, %v1749_v8 }
 0x152   :  { %v760_v2 = vsel %vm1963_vm0, %v1749_v8, %v1741_v63  ;;  %v748_v31 = vsel %vm732_vm5, %v1751_v10, %v1743_v62  ;;  %v668_v15 = vsel %vm652_vm10, %v1585_v25, 1e+09  ;;  %vm657_vm10 = vcmp.eq.f32.partialorder %v1531_v53, %v1713_v18 }
 0x153   :  { %777 = vst.msk [vmem:[#allocation3 + $0x70] sm:$0xff] %vm32_vm9, %v760_v2  ;;  %702 = vmin.xlane.f32.xlu0 %v676_v28  ;;  %686 = vmin.xlane.f32.xlu1 %v668_v15  ;;  %v680_v11 = vsel %vm664_vm14, %v1585_v25, 1e+09  ;;  %vm653_vm14 = vcmp.eq.f32.partialorder %v1478_v48, %v1668_v21  ;;  %v793_v28 = vld [vmem:[#allocation4 + $0x70] sm:$0xff] }
 0x154   :  { %765 = vst.msk [vmem:[#allocation3 + $0x10] sm:$0xff] %vm32_vm9, %v748_v31  ;;  %v669_v48 = vsel %vm653_vm14, %v1585_v25, 1e+09  ;;  %v785_v15 = vld [vmem:[#allocation4 + $0x30] sm:$0xff] }
 0x158   :  { %v1785_v37 = vpop.xlane.xlu0 %634  ;;  %v1787_v1 = vpop.xlane.xlu1 %624 }
 0x159   :  { %vm1964_vm15 = vcmp.lt.f32.partialorder %v1785_v37, %v1777_v16  ;;  %vm736_vm13 = vcmp.lt.f32.partialorder %v1787_v1, %v1779_v33  ;;  %vm656_vm0 = vcmp.eq.f32.partialorder %v1578_v20, %v1787_v1  ;;  %v673_v20 = vsel %vm657_vm10, %v1585_v25, 1e+09 }
 0x15a   :  { %v757_v36 = vsel %vm1964_vm15, %v1785_v37, %v1777_v16  ;;  %v752_v53 = vsel %vm736_vm13, %v1787_v1, %v1779_v33  ;;  %v672_v22 = vsel %vm656_vm0, %v1585_v25, 1e+09  ;;  %vm661_vm0 = vcmp.eq.f32.partialorder %v1576_v12, %v1785_v37 }
 0x15b   :  { %774 = vst.msk [vmem:[#allocation3 + $0x58] sm:$0xff] %vm32_vm9, %v757_v36  ;;  %710 = vmin.xlane.f32.xlu1 %v680_v11  ;;  %694 = vmin.xlane.f32.xlu2 %v672_v22  ;;  %v677_v13 = vsel %vm661_vm0, %v1585_v25, 1e+09  ;;  %v786_v36 = vld [vmem:[#allocation4 + $0x38] sm:$0xff] }
 0x15c   :  { %769 = vst.msk [vmem:[#allocation3 + $0x30] sm:$0xff] %vm32_vm9, %v752_v53  ;;  %696 = vmin.xlane.f32.xlu0 %v673_v20 }
 0x160   :  { %v1824_v35 = vpop.xlane.xlu1 %642 }
 0x161   :  { %vm745_vm10 = vcmp.lt.f32.partialorder %v1824_v35, %v1816_v45  ;;  %vm665_vm15 = vcmp.eq.f32.partialorder %v1533_v52, %v1824_v35 }
 0x162   :  { %v761_v12 = vsel %vm745_vm10, %v1824_v35, %v1816_v45  ;;  %v681_v49 = vsel %vm665_vm15, %v1585_v25, 1e+09  ;;  %v787_v25 = vld [vmem:[#allocation4 + $0x40] sm:$0xff] }
 0x163   :  { %778 = vst.msk [vmem:[#allocation3 + $0x78] sm:$0xff] %vm32_vm9, %v761_v12  ;;  %704 = vmin.xlane.f32.xlu1 %v677_v13  ;;  %688 = vmin.xlane.f32.xlu2 %v669_v48  ;;  %v794_v48 = vld [vmem:[#allocation4 + $0x78] sm:$0xff] }
 0x16b   :  { %712 = vmin.xlane.f32.xlu2 %v681_v49 }
 0x196   :  { %v683_v61 = vpop.xlane.xlu2 %682 }
 0x197   :  { %v795_v59 = vsel %vm730_vm2, %v683_v61, %v779_v27  ;;  %vm1967_vm2 = vcmp.lt.f32.partialorder %v1749_v8, %v1741_v63  ;;  %v790_v63 = vld [vmem:[#allocation4 + $0x58] sm:$0xff] }
 0x198   :  { %811 = vst.msk [vmem:[#allocation4] sm:$0xff] %vm32_vm9, %v795_v59  ;;  %v782_v8 = vld [vmem:[#allocation4 + $0x18] sm:$0xff] }
 0x19e   :  { %v691_v60 = vpop.xlane.xlu0 %690 }
 0x19f   :  { %v799_v56 = vsel %vm734_vm4, %v691_v60, %v783_v55  ;;  %v829_v57 = vld [vmem:[#allocation4] sm:$0xff]  ;;  %vm1968_vm4 = vcmp.lt.f32.partialorder %v1713_v18, %v1702_v51 }
 0x1a0   :  { %815 = vst.msk [vmem:[#allocation4 + $0x20] sm:$0xff] %vm32_vm9, %v799_v56  ;;  %847 = vperm.xlu0 %1092, %v829_v57  }
 0x1a7   :  { %v833_v52 = vld [vmem:[#allocation4 + $0x20] sm:$0xff] }
 0x1a8   :  { %867 = vperm.xlu1 %1093, %v833_v52  }
 0x1ae   :  { %v699_v24 = vpop.xlane.xlu1 %698 }
 0x1af   :  { %v803_v40 = vsel %vm738_vm7, %v699_v24, %v787_v25  ;;  %vm1970_vm7 = vcmp.lt.f32.partialorder %v1668_v21, %v1658_v7 }
 0x1b0   :  { %819 = vst.msk [vmem:[#allocation4 + $0x40] sm:$0xff] %vm32_vm9, %v803_v40 }
 0x1b6   :  { %v685_v58 = vpop.xlane.xlu0 %684 }
 0x1b7   :  { %v796_v14 = vsel %vm731_vm12, %v685_v58, %v780_v41  ;;  %v707_v42 = vpop.xlane.xlu2 %706  ;;  %v837_v17 = vld [vmem:[#allocation4 + $0x40] sm:$0xff] }
 0x1b8   :  { %812 = vst.msk [vmem:[#allocation4 + $0x8] sm:$0xff] %vm32_vm9, %v796_v14  ;;  %v807_v39 = vsel %vm742_vm11, %v707_v42, %v791_v44  ;;  %887 = vperm.xlu0 %1092, %v837_v17  }
 0x1b9   :  { %823 = vst.msk [vmem:[#allocation4 + $0x60] sm:$0xff] %vm32_vm9, %v807_v39 }
 0x1be   :  { %v709_v29 = vpop.xlane.xlu0 %708  ;;  %v693_v9 = vpop.xlane.xlu1 %692 }
 0x1bf   :  { %v808_v6 = vsel %vm743_vm6, %v709_v29, %v792_v4  ;;  %v800_v19 = vsel %vm735_vm3, %v693_v9, %v784_v46  ;;  %v701_v54 = vpop.xlane.xlu2 %700  ;;  %v830_v30 = vld [vmem:[#allocation4 + $0x8] sm:$0xff]  ;;  %vm1969_vm6 = vcmp.lt.f32.partialorder %v1785_v37, %v1777_v16 }
 0x1c0   :  { %824 = vst.msk [vmem:[#allocation4 + $0x68] sm:$0xff] %vm32_vm9, %v808_v6  ;;  %v804_v0 = vsel %vm739_vm1, %v701_v54, %v788_v26  ;;  %852 = vperm.xlu1 %1093, %v830_v30   ;;  %v841_v23 = vld [vmem:[#allocation4 + $0x60] sm:$0xff] }
 0x1c1   :  { %816 = vst.msk [vmem:[#allocation4 + $0x28] sm:$0xff] %vm32_vm9, %v800_v19  ;;  %907 = vperm.xlu2 %1094, %v841_v23  }
 0x1c2   :  { %820 = vst.msk [vmem:[#allocation4 + $0x48] sm:$0xff] %vm32_vm9, %v804_v0 }
 0x1c6   :  { %v703_v2 = vpop.xlane.xlu0 %702  ;;  %v687_v38 = vpop.xlane.xlu1 %686 }
 0x1c7   :  { %v805_v3 = vsel %vm740_vm8, %v703_v2, %v789_v43  ;;  %v797_v34 = vsel %vm732_vm5, %v687_v38, %v781_v32  ;;  %v842_v16 = vld [vmem:[#allocation4 + $0x68] sm:$0xff] }
 0x1c8   :  { %821 = vst.msk [vmem:[#allocation4 + $0x50] sm:$0xff] %vm32_vm9, %v805_v3  ;;  %v834_v50 = vld [vmem:[#allocation4 + $0x28] sm:$0xff] }
 0x1c9   :  { %813 = vst.msk [vmem:[#allocation4 + $0x10] sm:$0xff] %vm32_vm9, %v797_v34  ;;  %872 = vperm.xlu0 %1092, %v834_v50   ;;  %v838_v31 = vld [vmem:[#allocation4 + $0x48] sm:$0xff] }
 0x1ca   :  { %892 = vperm.xlu2 %1094, %v838_v31  }
 0x1ce   :  { %v711_v53 = vpop.xlane.xlu1 %710  ;;  %v695_v11 = vpop.xlane.xlu2 %694 }
 0x1cf   :  { %v809_v5 = vsel %vm1967_vm2, %v711_v53, %v793_v28  ;;  %v697_v47 = vpop.xlane.xlu0 %696  ;;  %v801_v62 = vsel %vm736_vm13, %v695_v11, %v785_v15  ;;  %v839_v10 = vld [vmem:[#allocation4 + $0x50] sm:$0xff] }
 0x1d0   :  { %825 = vst.msk [vmem:[#allocation4 + $0x70] sm:$0xff] %vm32_vm9, %v809_v5  ;;  %v802_v22 = vsel %vm1968_vm4, %v697_v47, %v786_v36  ;;  %897 = vperm.xlu1 %1093, %v839_v10   ;;  %v831_v20 = vld [vmem:[#allocation4 + $0x10] sm:$0xff] }
 0x1d1   :  { %818 = vst.msk [vmem:[#allocation4 + $0x38] sm:$0xff] %vm32_vm9, %v802_v22 }
 0x1d2   :  { %817 = vst.msk [vmem:[#allocation4 + $0x30] sm:$0xff] %vm32_vm9, %v801_v62  ;;  %857 = vperm.xlu2 %1094, %v831_v20  }
 0x1d6   :  { %v705_v12 = vpop.xlane.xlu1 %704  ;;  %v689_v13 = vpop.xlane.xlu2 %688 }
 0x1d7   :  { %v806_v33 = vsel %vm1969_vm6, %v705_v12, %v790_v63  ;;  %v798_v51 = vsel %vm1970_vm7, %v689_v13, %v782_v8  ;;  %v843_v61 = vld [vmem:[#allocation4 + $0x70] sm:$0xff] }
 0x1d8   :  { %822 = vst.msk [vmem:[#allocation4 + $0x58] sm:$0xff] %vm32_vm9, %v806_v33  ;;  %v836_v18 = vld [vmem:[#allocation4 + $0x38] sm:$0xff] }
 0x1d9   :  { %814 = vst.msk [vmem:[#allocation4 + $0x18] sm:$0xff] %vm32_vm9, %v798_v51  ;;  %882 = vperm.xlu1 %1093, %v836_v18   ;;  %v835_v1 = vld [vmem:[#allocation4 + $0x30] sm:$0xff] }
 0x1da   :  { %877 = vperm.xlu2 %1094, %v835_v1  }
 0x1de   :  { %v713_v49 = vpop.xlane.xlu2 %712 }
 0x1df   :  { %v810_v27 = vsel %vm745_vm10, %v713_v49, %v794_v48  ;;  %v840_v21 = vld [vmem:[#allocation4 + $0x58] sm:$0xff] }
 0x1e0   :  { %826 = vst.msk [vmem:[#allocation4 + $0x78] sm:$0xff] %vm32_vm9, %v810_v27  ;;  %v832_v37 = vld [vmem:[#allocation4 + $0x18] sm:$0xff] }
 0x1e1   :  { %912 = vperm.xlu1 %1093, %v842_v16   ;;  %862 = vperm.xlu0 %1092, %v832_v37  }
 0x1e7   :  { %v844_v7 = vld [vmem:[#allocation4 + $0x78] sm:$0xff] }
 0x1e8   :  { %922 = vperm.xlu2 %1094, %v844_v7  }
 0x1e9   :  { %902 = vperm.xlu0 %1092, %v840_v21  }
 0x1f1   :  { %917 = vperm.xlu0 %1092, %v843_v61  }
 0x212   :  { %v848_v59 = vpop.permute.xlu0 %847 }
 0x213   :  { %vm1009_vm8 = vcmp.lt.s32.totalorder %v848_v59, 0  ;;  %v1010_v55 = vceil.f32 %v848_v59  ;;  %v1011_v60 = vfloor.f32 %v848_v59 }
 0x215   :  { %v1012_v56 = vsel %vm1009_vm8, %v1010_v55, %v1011_v60 }
 0x216   :  { %v1013_v57 = vcvt.f32.s32 %v1012_v56 }
 0x218   :  { %941 = vst [vmem:[%s1960_s7] sm:$0xff] %v1013_v57 }
 0x21a   :  { %v868_v45 = vpop.permute.xlu1 %867 }
 0x21b   :  { %vm1029_vm9 = vcmp.lt.s32.totalorder %v868_v45, 0  ;;  %v1030_v35 = vceil.f32 %v868_v45  ;;  %v1031_v52 = vfloor.f32 %v868_v45  ;;  %v908_v25 = vpop.permute.xlu2 %907 }
 0x21c   :  { %vm1069_vm11 = vcmp.lt.s32.totalorder %v908_v25, 0  ;;  %v1070_v24 = vceil.f32 %v908_v25  ;;  %v1071_v40 = vfloor.f32 %v908_v25 }
 0x21d   :  { %v1032_v41 = vsel %vm1029_vm9, %v1030_v35, %v1031_v52 }
 0x21e   :  { %v1033_v44 = vcvt.f32.s32 %v1032_v41  ;;  %v1072_v58 = vsel %vm1069_vm11, %v1070_v24, %v1071_v40 }
 0x21f   :  { %v1073_v14 = vcvt.f32.s32 %v1072_v58 }
 0x220   :  { %945 = vst [vmem:[%s1960_s7 + $0x20] sm:$0xff] %v1033_v44 }
 0x221   :  { %953 = vst [vmem:[%s1960_s7 + $0x60] sm:$0xff] %v1073_v14 }
 0x224   :  { %v893_v42 = vpop.permute.xlu2 %892 }
 0x225   :  { %vm1054_vm12 = vcmp.lt.s32.totalorder %v893_v42, 0  ;;  %v1055_v17 = vceil.f32 %v893_v42  ;;  %v1056_v39 = vfloor.f32 %v893_v42 }
 0x227   :  { %v1057_v4 = vsel %vm1054_vm12, %v1055_v17, %v1056_v39 }
 0x228   :  { %v1058_v46 = vcvt.f32.s32 %v1057_v4 }
 0x22a   :  { %950 = vst [vmem:[%s1960_s7 + $0x48] sm:$0xff] %v1058_v46  ;;  %v888_v26 = vpop.permute.xlu0 %887 }
 0x22b   :  { %vm1049_vm15 = vcmp.lt.s32.totalorder %v888_v26, 0  ;;  %v1050_v29 = vceil.f32 %v888_v26  ;;  %v1051_v9 = vfloor.f32 %v888_v26 }
 0x22c   :  { %v858_v6 = vpop.permute.xlu2 %857 }
 0x22d   :  { %v1052_v19 = vsel %vm1049_vm15, %v1050_v29, %v1051_v9  ;;  %vm1019_vm1 = vcmp.lt.s32.totalorder %v858_v6, 0  ;;  %v1020_v54 = vceil.f32 %v858_v6  ;;  %v1021_v30 = vfloor.f32 %v858_v6 }
 0x22e   :  { %v1053_v0 = vcvt.f32.s32 %v1052_v19 }
 0x22f   :  { %v1022_v23 = vsel %vm1019_vm1, %v1020_v54, %v1021_v30 }
 0x230   :  { %949 = vst [vmem:[%s1960_s7 + $0x40] sm:$0xff] %v1053_v0  ;;  %v1023_v43 = vcvt.f32.s32 %v1022_v23 }
 0x232   :  { %943 = vst [vmem:[%s1960_s7 + $0x10] sm:$0xff] %v1023_v43  ;;  %v853_v32 = vpop.permute.xlu1 %852 }
 0x233   :  { %vm1014_vm3 = vcmp.lt.s32.totalorder %v853_v32, 0  ;;  %v1015_v2 = vceil.f32 %v853_v32  ;;  %v1016_v38 = vfloor.f32 %v853_v32 }
 0x234   :  { %v878_v3 = vpop.permute.xlu2 %877 }
 0x235   :  { %v1017_v34 = vsel %vm1014_vm3, %v1015_v2, %v1016_v38  ;;  %vm1039_vm13 = vcmp.lt.s32.totalorder %v878_v3, 0  ;;  %v1040_v50 = vceil.f32 %v878_v3  ;;  %v1041_v31 = vfloor.f32 %v878_v3 }
 0x236   :  { %v1018_v28 = vcvt.f32.s32 %v1017_v34 }
 0x237   :  { %v1042_v15 = vsel %vm1039_vm13, %v1040_v50, %v1041_v31 }
 0x238   :  { %942 = vst [vmem:[%s1960_s7 + $0x8] sm:$0xff] %v1018_v28  ;;  %v1043_v36 = vcvt.f32.s32 %v1042_v15 }
 0x23a   :  { %947 = vst [vmem:[%s1960_s7 + $0x30] sm:$0xff] %v1043_v36 }
 0x23b   :  { %v873_v53 = vpop.permute.xlu0 %872 }
 0x23c   :  { %vm1034_vm5 = vcmp.lt.s32.totalorder %v873_v53, 0  ;;  %v1035_v11 = vceil.f32 %v873_v53  ;;  %v1036_v5 = vfloor.f32 %v873_v53 }
 0x23e   :  { %v1037_v47 = vsel %vm1034_vm5, %v1035_v11, %v1036_v5 }
 0x23f   :  { %v1038_v62 = vcvt.f32.s32 %v1037_v47 }
 0x241   :  { %946 = vst [vmem:[%s1960_s7 + $0x28] sm:$0xff] %v1038_v62 }
 0x242   :  { %v898_v10 = vpop.permute.xlu1 %897  ;;  %v923_v22 = vpop.permute.xlu2 %922 }
 0x243   :  { %vm1059_vm0 = vcmp.lt.s32.totalorder %v898_v10, 0  ;;  %v1060_v20 = vceil.f32 %v898_v10  ;;  %v1061_v63 = vfloor.f32 %v898_v10  ;;  %vm1084_vm14 = vcmp.lt.s32.totalorder %v923_v22, 0 }
 0x244   :  { %v1085_v8 = vceil.f32 %v923_v22  ;;  %v1086_v12 = vfloor.f32 %v923_v22 }
 0x245   :  { %v1062_v13 = vsel %vm1059_vm0, %v1060_v20, %v1061_v63 }
 0x246   :  { %v1063_v33 = vcvt.f32.s32 %v1062_v13  ;;  %v1087_v51 = vsel %vm1084_vm14, %v1085_v8, %v1086_v12 }
 0x247   :  { %v1088_v18 = vcvt.f32.s32 %v1087_v51 }
 0x248   :  { %951 = vst [vmem:[%s1960_s7 + $0x50] sm:$0xff] %v1063_v33 }
 0x249   :  { %956 = vst [vmem:[%s1960_s7 + $0x78] sm:$0xff] %v1088_v18 }
 0x24b   :  { %v883_v1 = vpop.permute.xlu1 %882 }
 0x24c   :  { %vm1044_vm10 = vcmp.lt.s32.totalorder %v883_v1, 0  ;;  %v1045_v48 = vceil.f32 %v883_v1  ;;  %v1046_v49 = vfloor.f32 %v883_v1 }
 0x24e   :  { %v1047_v27 = vsel %vm1044_vm10, %v1045_v48, %v1046_v49 }
 0x24f   :  { %v1048_v16 = vcvt.f32.s32 %v1047_v27 }
 0x251   :  { %948 = vst [vmem:[%s1960_s7 + $0x38] sm:$0xff] %v1048_v16 }
 0x253   :  { %v913_v37 = vpop.permute.xlu1 %912  ;;  %v863_v7 = vpop.permute.xlu0 %862 }
 0x254   :  { %vm1074_vm2 = vcmp.lt.s32.totalorder %v913_v37, 0  ;;  %v1075_v21 = vceil.f32 %v913_v37  ;;  %v1076_v61 = vfloor.f32 %v913_v37  ;;  %vm1024_vm4 = vcmp.lt.s32.totalorder %v863_v7, 0 }
 0x255   :  { %v1025_v59 = vceil.f32 %v863_v7  ;;  %v1026_v55 = vfloor.f32 %v863_v7 }
 0x256   :  { %v1077_v60 = vsel %vm1074_vm2, %v1075_v21, %v1076_v61 }
 0x257   :  { %v1078_v56 = vcvt.f32.s32 %v1077_v60  ;;  %v1027_v57 = vsel %vm1024_vm4, %v1025_v59, %v1026_v55 }
 0x258   :  { %v1028_v45 = vcvt.f32.s32 %v1027_v57 }
 0x259   :  { %954 = vst [vmem:[%s1960_s7 + $0x68] sm:$0xff] %v1078_v56 }
 0x25a   :  { %944 = vst [vmem:[%s1960_s7 + $0x18] sm:$0xff] %v1028_v45 }
 0x25b   :  { %v903_v35 = vpop.permute.xlu0 %902 }
 0x25c   :  { %vm1064_vm6 = vcmp.lt.s32.totalorder %v903_v35, 0  ;;  %v1065_v52 = vceil.f32 %v903_v35  ;;  %v1066_v25 = vfloor.f32 %v903_v35 }
 0x25e   :  { %v1067_v24 = vsel %vm1064_vm6, %v1065_v52, %v1066_v25 }
 0x25f   :  { %v1068_v40 = vcvt.f32.s32 %v1067_v24 }
 0x261   :  { %952 = vst [vmem:[%s1960_s7 + $0x58] sm:$0xff] %v1068_v40 }
 0x263   :  { %v918_v41 = vpop.permute.xlu0 %917 }
 0x264   :  { %vm1079_vm7 = vcmp.lt.s32.totalorder %v918_v41, 0  ;;  %v1080_v44 = vceil.f32 %v918_v41  ;;  %v1081_v58 = vfloor.f32 %v918_v41 }
 0x266   :  { %v1082_v14 = vsel %vm1079_vm7, %v1080_v44, %v1081_v58 }
 0x267   :  { %v1083_v42 = vcvt.f32.s32 %v1082_v14 }
 0x269   :  { %955 = vst [vmem:[%s1960_s7 + $0x70] sm:$0xff] %v1083_v42 }

// kernel: hbma_forward.2
= control target key start
LH: loop header
LB: loop body
LE: loop exit
PB: predicated region body
PF: predicated region fallthrough
CT: control target
= control target key end

     0   :  { %v1341_v1 = vmov 0   ;;  %s2525_s1 = inlined_call_operand.vmem [shape: f32[512,128], index: 1, kind: input, shape index: {}]   ;;  %s2526_s3 = inlined_call_operand.vmem [shape: f32[128,1], index: 3, kind: input, shape index: {}]   ;;  %s2527_s0 = inlined_call_operand.vmem [shape: f32[128,512], index: 0, kind: input, shape index: {}]   ;;  %s2528_s5 = inlined_call_operand.vmem [shape: f32[1,128], index: 5, kind: input, shape index: {}]   ;;  %s2529_s6 = inlined_call_operand.vmem [shape: f32[1,128], index: 6, kind: input, shape index: {}]   ;;  %s2530_s4 = inlined_call_operand.vmem [shape: f32[128,1], index: 4, kind: input, shape index: {}]   ;;  %s2531_s2 = inlined_call_operand.vmem [shape: f32[1,128], index: 2, kind: input, shape index: {}]   ;;  %s2532_s7 = inlined_call_operand.vmem [shape: s32[128,128], index: 7, kind: output, shape index: {}]  }
   0x1   :  { %v211_v0 = vld [vmem:[%s2525_s1 + $0x178] sm:$0xff]  ;;  %1336 = vset.pattern.permute.xlu1 %v1341_v1  ;;  %1335 = vset.pattern.permute.xlu0 %v1341_v1  ;;  %v581_v2 = vld [vmem:[%s2526_s3 + $0x10] sm:$0xff]  ;;  %v579_v3 = vld [vmem:[%s2526_s3] sm:$0xff] }
   0x2   :  { %358 = vmatpush.msra.mxu2 %v211_v0  ;;  %607 = vperm.xlu1 %1336, %v581_v2   ;;  %v210_v4 = vld [vmem:[%s2525_s1 + $0x170] sm:$0xff]  ;;  %v227_v5 = vld [vmem:[%s2525_s1 + $0x1f8] sm:$0xff]  ;;  %v209_v8 = vld [vmem:[%s2525_s1 + $0x168] sm:$0xff] }
   0x3   :  { %v179_v6 = vld [vmem:[%s2525_s1 + $0x78] sm:$0xff]  ;;  %597 = vperm.xlu0 %1335, %v579_v3   ;;  %423 = vmatpush.msra.mxu3 %v227_v5  ;;  %v226_v9 = vld [vmem:[%s2525_s1 + $0x1f0] sm:$0xff]  ;;  %v208_v12 = vld [vmem:[%s2525_s1 + $0x160] sm:$0xff] }
   0x4   :  { %v195_v7 = vld [vmem:[%s2525_s1 + $0xf8] sm:$0xff]  ;;  %359 = vmatpush.msra.mxu2 %v210_v4  ;;  %228 = vmatpush.msra.mxu0 %v179_v6  ;;  %v178_v10 = vld [vmem:[%s2525_s1 + $0x70] sm:$0xff]  ;;  %v225_v13 = vld [vmem:[%s2525_s1 + $0x1e8] sm:$0xff] }
   0x5   :  { %v194_v11 = vld [vmem:[%s2525_s1 + $0xf0] sm:$0xff]  ;;  %293 = vmatpush.msra.mxu1 %v195_v7  ;;  %424 = vmatpush.msra.mxu3 %v226_v9  ;;  %v177_v14 = vld [vmem:[%s2525_s1 + $0x68] sm:$0xff]  ;;  %v224_v16 = vld [vmem:[%s2525_s1 + $0x1e0] sm:$0xff] }
   0x6   :  { %360 = vmatpush.msra.mxu2 %v209_v8  ;;  %229 = vmatpush.msra.mxu0 %v178_v10  ;;  %v193_v15 = vld [vmem:[%s2525_s1 + $0xe8] sm:$0xff]  ;;  %v207_v17 = vld [vmem:[%s2525_s1 + $0x158] sm:$0xff]  ;;  %v176_v20 = vld [vmem:[%s2525_s1 + $0x60] sm:$0xff] }
   0x7   :  { %294 = vmatpush.msra.mxu1 %v194_v11  ;;  %425 = vmatpush.msra.mxu3 %v225_v13  ;;  %v582_v18 = vld [vmem:[%s2526_s3 + $0x18] sm:$0xff]  ;;  %v580_v19 = vld [vmem:[%s2526_s3 + $0x8] sm:$0xff]  ;;  %v192_v21 = vld [vmem:[%s2525_s1 + $0xe0] sm:$0xff] }
   0x8   :  { %361 = vmatpush.msra.mxu2 %v208_v12  ;;  %230 = vmatpush.msra.mxu0 %v177_v14  ;;  %v206_v22 = vld [vmem:[%s2525_s1 + $0x150] sm:$0xff]  ;;  %v223_v23 = vld [vmem:[%s2525_s1 + $0x1d8] sm:$0xff]  ;;  %v205_v26 = vld [vmem:[%s2525_s1 + $0x148] sm:$0xff] }
   0x9   :  { %295 = vmatpush.msra.mxu1 %v193_v15  ;;  %426 = vmatpush.msra.mxu3 %v224_v16  ;;  %v175_v24 = vld [vmem:[%s2525_s1 + $0x58] sm:$0xff]  ;;  %v222_v27 = vld [vmem:[%s2525_s1 + $0x1d0] sm:$0xff]  ;;  %v204_v30 = vld [vmem:[%s2525_s1 + $0x140] sm:$0xff] }
   0xa   :  { %362 = vmatpush.msra.mxu2 %v207_v17  ;;  %612 = vperm.xlu1 %1336, %v582_v18   ;;  %v191_v25 = vld [vmem:[%s2525_s1 + $0xd8] sm:$0xff]  ;;  %v174_v28 = vld [vmem:[%s2525_s1 + $0x50] sm:$0xff]  ;;  %v221_v31 = vld [vmem:[%s2525_s1 + $0x1c8] sm:$0xff] }
   0xb   :  { %602 = vperm.xlu0 %1335, %v580_v19   ;;  %231 = vmatpush.msra.mxu0 %v176_v20  ;;  %v190_v29 = vld [vmem:[%s2525_s1 + $0xd0] sm:$0xff]  ;;  %v173_v32 = vld [vmem:[%s2525_s1 + $0x48] sm:$0xff]  ;;  %v203_v34 = vld [vmem:[%s2525_s1 + $0x138] sm:$0xff] }
   0xc   :  { %296 = vmatpush.msra.mxu1 %v192_v21  ;;  %363 = vmatpush.msra.mxu2 %v206_v22  ;;  %v189_v33 = vld [vmem:[%s2525_s1 + $0xc8] sm:$0xff]  ;;  %v220_v35 = vld [vmem:[%s2525_s1 + $0x1c0] sm:$0xff]  ;;  %v586_v36 = vld [vmem:[%s2526_s3 + $0x38] sm:$0xff] }
   0xd   :  { %427 = vmatpush.msra.mxu3 %v223_v23  ;;  %232 = vmatpush.msra.mxu0 %v175_v24  ;;  %v585_v37 = vld [vmem:[%s2526_s3 + $0x30] sm:$0xff]  ;;  %v172_v38 = vld [vmem:[%s2525_s1 + $0x40] sm:$0xff]  ;;  %v219_v41 = vld [vmem:[%s2525_s1 + $0x1b8] sm:$0xff] }
   0xe   :  { %297 = vmatpush.msra.mxu1 %v191_v25  ;;  %364 = vmatpush.msra.mxu2 %v205_v26  ;;  %v188_v39 = vld [vmem:[%s2525_s1 + $0xc0] sm:$0xff]  ;;  %v202_v40 = vld [vmem:[%s2525_s1 + $0x130] sm:$0xff]  ;;  %v171_v42 = vld [vmem:[%s2525_s1 + $0x38] sm:$0xff] }
   0xf   :  { %428 = vmatpush.msra.mxu3 %v222_v27  ;;  %233 = vmatpush.msra.mxu0 %v174_v28  ;;  %v187_v43 = vld [vmem:[%s2525_s1 + $0xb8] sm:$0xff]  ;;  %v201_v44 = vld [vmem:[%s2525_s1 + $0x128] sm:$0xff]  ;;  %v218_v45 = vld [vmem:[%s2525_s1 + $0x1b0] sm:$0xff] }
  0x10   :  { %298 = vmatpush.msra.mxu1 %v190_v29  ;;  %365 = vmatpush.msra.mxu2 %v204_v30  ;;  %v170_v46 = vld [vmem:[%s2525_s1 + $0x30] sm:$0xff]  ;;  %v200_v48 = vld [vmem:[%s2525_s1 + $0x120] sm:$0xff]  ;;  %v217_v49 = vld [vmem:[%s2525_s1 + $0x1a8] sm:$0xff] }
  0x11   :  { %429 = vmatpush.msra.mxu3 %v221_v31  ;;  %234 = vmatpush.msra.mxu0 %v173_v32  ;;  %v186_v47 = vld [vmem:[%s2525_s1 + $0xb0] sm:$0xff]  ;;  %v169_v50 = vld [vmem:[%s2525_s1 + $0x28] sm:$0xff]  ;;  %v199_v52 = vld [vmem:[%s2525_s1 + $0x118] sm:$0xff] }
  0x12   :  { %299 = vmatpush.msra.mxu1 %v189_v33  ;;  %366 = vmatpush.msra.mxu2 %v203_v34  ;;  %v185_v51 = vld [vmem:[%s2525_s1 + $0xa8] sm:$0xff]  ;;  %v216_v53 = vld [vmem:[%s2525_s1 + $0x1a0] sm:$0xff]  ;;  %v589_v54 = vld [vmem:[%s2526_s3 + $0x50] sm:$0xff] }
  0x13   :  { %430 = vmatpush.msra.mxu3 %v220_v35  ;;  %632 = vperm.xlu1 %1336, %v586_v36   ;;  %v588_v55 = vld [vmem:[%s2526_s3 + $0x48] sm:$0xff]  ;;  %v168_v56 = vld [vmem:[%s2525_s1 + $0x20] sm:$0xff]  ;;  %v198_v58 = vld [vmem:[%s2525_s1 + $0x110] sm:$0xff] }
  0x14   :  { %627 = vperm.xlu0 %1335, %v585_v37   ;;  %235 = vmatpush.msra.mxu0 %v172_v38  ;;  %v184_v57 = vld [vmem:[%s2525_s1 + $0xa0] sm:$0xff]  ;;  %v215_v59 = vld [vmem:[%s2525_s1 + $0x198] sm:$0xff]  ;;  %v197_v62 = vld [vmem:[%s2525_s1 + $0x108] sm:$0xff] }
  0x15   :  { %300 = vmatpush.msra.mxu1 %v188_v39  ;;  %367 = vmatpush.msra.mxu2 %v202_v40  ;;  %v167_v60 = vld [vmem:[%s2525_s1 + $0x18] sm:$0xff]  ;;  %v214_v63 = vld [vmem:[%s2525_s1 + $0x190] sm:$0xff]  ;;  %v196_v3 = vld [vmem:[%s2525_s1 + $0x100] sm:$0xff] }
  0x16   :  { %431 = vmatpush.msra.mxu3 %v219_v41  ;;  %236 = vmatpush.msra.mxu0 %v171_v42  ;;  %v183_v61 = vld [vmem:[%s2525_s1 + $0x98] sm:$0xff]  ;;  %v166_v0 = vld [vmem:[%s2525_s1 + $0x10] sm:$0xff]  ;;  %v213_v4 = vld [vmem:[%s2525_s1 + $0x188] sm:$0xff] }
  0x17   :  { %301 = vmatpush.msra.mxu1 %v187_v43  ;;  %368 = vmatpush.msra.mxu2 %v201_v44  ;;  %v182_v2 = vld [vmem:[%s2525_s1 + $0x90] sm:$0xff]  ;;  %v165_v6 = vld [vmem:[%s2525_s1 + $0x8] sm:$0xff]  ;;  %v212_v8 = vld [vmem:[%s2525_s1 + $0x180] sm:$0xff] }
  0x18   :  { %432 = vmatpush.msra.mxu3 %v218_v45  ;;  %237 = vmatpush.msra.mxu0 %v170_v46  ;;  %v102_v5 = vld [vmem:[%s2527_s0 + $0x10] sm:$0xff]  ;;  %v181_v7 = vld [vmem:[%s2525_s1 + $0x88] sm:$0xff]  ;;  %v103_v9 = vld [vmem:[%s2527_s0 + $0x18] sm:$0xff] }
  0x19   :  { %302 = vmatpush.msra.mxu1 %v186_v47  ;;  %369 = vmatpush.msra.mxu2 %v200_v48  ;;  %v583_v10 = vld [vmem:[%s2526_s3 + $0x20] sm:$0xff]  ;;  %v592_v11 = vld [vmem:[%s2526_s3 + $0x68] sm:$0xff]  ;;  %v107_v17 = vld [vmem:[%s2527_s0 + $0x38] sm:$0xff] }
  0x1a   :  { %433 = vmatpush.msra.mxu3 %v217_v49  ;;  %238 = vmatpush.msra.mxu0 %v169_v50  ;;  %v591_v12 = vld [vmem:[%s2526_s3 + $0x60] sm:$0xff]  ;;  %v101_v16 = vld [vmem:[%s2527_s0 + $0x8] sm:$0xff]  ;;  %v594_v20 = vld [vmem:[%s2526_s3 + $0x78] sm:$0xff] }
  0x1b   :  { %303 = vmatpush.msra.mxu1 %v185_v51  ;;  %370 = vmatpush.msra.mxu2 %v199_v52  ;;  %v164_v13 = vld [vmem:[%s2525_s1] sm:$0xff]  ;;  %v584_v18 = vld [vmem:[%s2526_s3 + $0x28] sm:$0xff]  ;;  %v110_v23 = vld [vmem:[%s2527_s0 + $0x50] sm:$0xff] }
  0x1c   :  { %434 = vmatpush.msra.mxu3 %v216_v53  ;;  %647 = vperm.xlu1 %1336, %v589_v54   ;;  %v180_v14 = vld [vmem:[%s2525_s1 + $0x80] sm:$0xff]  ;;  %v105_v22 = vld [vmem:[%s2527_s0 + $0x28] sm:$0xff]  ;;  %v111_v24 = vld [vmem:[%s2527_s0 + $0x58] sm:$0xff] }
  0x1d   :  { %642 = vperm.xlu0 %1335, %v588_v55   ;;  %239 = vmatpush.msra.mxu0 %v168_v56  ;;  %v100_v15 = vld [vmem:[%s2527_s0] sm:$0xff]  ;;  %v714_v26 = vld [vmem:[%s2530_s4 + $0x18] sm:$0xff]  ;;  %v713_v27 = vld [vmem:[%s2530_s4 + $0x10] sm:$0xff] }
  0x1e   :  { %304 = vmatpush.msra.mxu1 %v184_v57  ;;  %371 = vmatpush.msra.mxu2 %v198_v58  ;;  %v711_v19 = vld [vmem:[%s2530_s4] sm:$0xff]  ;;  %v109_v29 = vld [vmem:[%s2527_s0 + $0x48] sm:$0xff]  ;;  %v114_v30 = vld [vmem:[%s2527_s0 + $0x70] sm:$0xff] }
  0x1f   :  { %435 = vmatpush.msra.mxu3 %v215_v59  ;;  %240 = vmatpush.msra.mxu0 %v167_v60  ;;  %v104_v21 = vld [vmem:[%s2527_s0 + $0x20] sm:$0xff]  ;;  %v115_v31 = vld [vmem:[%s2527_s0 + $0x78] sm:$0xff]  ;;  %v717_v33 = vld [vmem:[%s2530_s4 + $0x30] sm:$0xff] }
  0x20   :  { %305 = vmatpush.msra.mxu1 %v183_v61  ;;  %372 = vmatpush.msra.mxu2 %v197_v62  ;;  %v587_v25 = vld [vmem:[%s2526_s3 + $0x40] sm:$0xff]  ;;  %v590_v32 = vld [vmem:[%s2526_s3 + $0x58] sm:$0xff]  ;;  %v716_v34 = vld [vmem:[%s2530_s4 + $0x28] sm:$0xff] }
  0x21   :  { %436 = vmatpush.msra.mxu3 %v214_v63  ;;  %241 = vmatpush.msra.mxu0 %v166_v0  ;;  %v108_v28 = vld [vmem:[%s2527_s0 + $0x40] sm:$0xff]  ;;  %v113_v36 = vld [vmem:[%s2527_s0 + $0x68] sm:$0xff]  ;;  %v118_v37 = vld [vmem:[%s2527_s0 + $0x90] sm:$0xff] }
  0x22   :  { %306 = vmatpush.msra.mxu1 %v182_v2  ;;  %373 = vmatpush.msra.mxu2 %v196_v3  ;;  %v112_v35 = vld [vmem:[%s2527_s0 + $0x60] sm:$0xff]  ;;  %v119_v38 = vld [vmem:[%s2527_s0 + $0x98] sm:$0xff]  ;;  %v593_v39 = vld [vmem:[%s2526_s3 + $0x70] sm:$0xff] }
  0x23   :  { %437 = vmatpush.msra.mxu3 %v213_v4  ;;  %374 = vmatmul.f32.vlgmr.msra.gmra.mxu2 %v102_v5  ;;  %v720_v40 = vld [vmem:[%s2530_s4 + $0x48] sm:$0xff]  ;;  %v719_v41 = vld [vmem:[%s2530_s4 + $0x40] sm:$0xff]  ;;  %v122_v44 = vld [vmem:[%s2527_s0 + $0xb0] sm:$0xff] }
  0x24   :  { %242 = vmatpush.msra.mxu0 %v165_v6  ;;  %307 = vmatpush.msra.mxu1 %v181_v7  ;;  %v116_v42 = vld [vmem:[%s2527_s0 + $0x80] sm:$0xff]  ;;  %v117_v43 = vld [vmem:[%s2527_s0 + $0x88] sm:$0xff]  ;;  %v123_v45 = vld [vmem:[%s2527_s0 + $0xb8] sm:$0xff] }
  0x25   :  { %438 = vmatpush.msra.mxu3 %v212_v8  ;;  %1337 = vset.pattern.permute.xlu2 %v1341_v1  ;;  %v106_v1 = vld [vmem:[%s2527_s0 + $0x30] sm:$0xff]  ;;  %v712_v46 = vld [vmem:[%s2530_s4 + $0x8] sm:$0xff]  ;;  %v723_v47 = vld [vmem:[%s2530_s4 + $0x60] sm:$0xff] }
  0x26   :  { %439 = vmatmul.f32.vlgmr.msra.gmra.mxu3 %v103_v9  ;;  %617 = vperm.xlu2 %1337, %v583_v10   ;;  %v722_v48 = vld [vmem:[%s2530_s4 + $0x58] sm:$0xff]  ;;  %v120_v49 = vld [vmem:[%s2527_s0 + $0xa0] sm:$0xff]  ;;  %v121_v50 = vld [vmem:[%s2527_s0 + $0xa8] sm:$0xff] }
  0x27   :  { %662 = vperm.xlu1 %1336, %v592_v11   ;;  %657 = vperm.xlu0 %1335, %v591_v12   ;;  %v126_v51 = vld [vmem:[%s2527_s0 + $0xd0] sm:$0xff]  ;;  %v127_v52 = vld [vmem:[%s2527_s0 + $0xd8] sm:$0xff]  ;;  %v715_v53 = vld [vmem:[%s2530_s4 + $0x20] sm:$0xff] }
  0x28   :  { %243 = vmatpush.msra.mxu0 %v164_v13  ;;  %308 = vmatpush.msra.mxu1 %v180_v14  ;;  %v726_v54 = vld [vmem:[%s2530_s4 + $0x78] sm:$0xff]  ;;  %v725_v55 = vld [vmem:[%s2530_s4 + $0x70] sm:$0xff]  ;;  %v124_v56 = vld [vmem:[%s2527_s0 + $0xc0] sm:$0xff] }
  0x29   :  { %244 = vmatmul.f32.vlgmr.msra.gmra.mxu0 %v100_v15  ;;  %309 = vmatmul.f32.vlgmr.msra.gmra.mxu1 %v101_v16  ;;  %v125_v57 = vld [vmem:[%s2527_s0 + $0xc8] sm:$0xff]  ;;  %v130_v58 = vld [vmem:[%s2527_s0 + $0xf0] sm:$0xff]  ;;  %v131_v59 = vld [vmem:[%s2527_s0 + $0xf8] sm:$0xff] }
  0x2a   :  { %v718_v60 = vld [vmem:[%s2530_s4 + $0x38] sm:$0xff]  ;;  %v128_v61 = vld [vmem:[%s2527_s0 + $0xe0] sm:$0xff]  ;;  %v129_v62 = vld [vmem:[%s2527_s0 + $0xe8] sm:$0xff] }
  0x2b   :  { %377 = vmatmul.f32.gmra.mxu2 %v106_v1  ;;  %v134_v63 = vld [vmem:[%s2527_s0 + $0x110] sm:$0xff]  ;;  %v135_v0 = vld [vmem:[%s2527_s0 + $0x118] sm:$0xff]  ;;  %v132_v3 = vld [vmem:[%s2527_s0 + $0x100] sm:$0xff] }
  0x2c   :  { %v721_v2 = vld [vmem:[%s2530_s4 + $0x50] sm:$0xff]  ;;  %v133_v4 = vld [vmem:[%s2527_s0 + $0x108] sm:$0xff]  ;;  %v139_v6 = vld [vmem:[%s2527_s0 + $0x138] sm:$0xff] }
  0x2d   :  { %v138_v5 = vld [vmem:[%s2527_s0 + $0x130] sm:$0xff]  ;;  %v724_v7 = vld [vmem:[%s2530_s4 + $0x68] sm:$0xff]  ;;  %v136_v8 = vld [vmem:[%s2527_s0 + $0x120] sm:$0xff] }
  0x2e   :  { %442 = vmatmul.f32.gmra.mxu3 %v107_v17  ;;  %622 = vperm.xlu2 %1337, %v584_v18   ;;  %v137_v9 = vld [vmem:[%s2527_s0 + $0x128] sm:$0xff]  ;;  %v142_v10 = vld [vmem:[%s2527_s0 + $0x150] sm:$0xff]  ;;  %v143_v11 = vld [vmem:[%s2527_s0 + $0x158] sm:$0xff] }
  0x2f   :  { %729 = vperm.xlu1 %1336, %v711_v19   ;;  %672 = vperm.xlu0 %1335, %v594_v20   ;;  %v140_v14 = vld [vmem:[%s2527_s0 + $0x140] sm:$0xff]  ;;  %v141_v15 = vld [vmem:[%s2527_s0 + $0x148] sm:$0xff]  ;;  %v146_v16 = vld [vmem:[%s2527_s0 + $0x170] sm:$0xff] }
  0x30   :  { %v147_v1 = vld [vmem:[%s2527_s0 + $0x178] sm:$0xff]  ;;  %v144_v19 = vld [vmem:[%s2527_s0 + $0x160] sm:$0xff]  ;;  %v145_v20 = vld [vmem:[%s2527_s0 + $0x168] sm:$0xff] }
  0x31   :  { %247 = vmatmul.f32.gmra.mxu0 %v104_v21  ;;  %312 = vmatmul.f32.gmra.mxu1 %v105_v22  ;;  %v1830_v21 = vld [vmem:[%s2528_s5] ss:$0 sm:$0xff] }
  0x33   :  { %380 = vmatmul.f32.gmra.mxu2 %v110_v23  ;;  %v150_v23 = vld [vmem:[%s2527_s0 + $0x190] sm:$0xff] }
  0x36   :  { %445 = vmatmul.f32.gmra.mxu3 %v111_v24  ;;  %637 = vperm.xlu2 %1337, %v587_v25   ;;  %v151_v25 = vld [vmem:[%s2527_s0 + $0x198] sm:$0xff] }
  0x37   :  { %744 = vperm.xlu1 %1336, %v714_v26   ;;  %739 = vperm.xlu0 %1335, %v713_v27   ;;  %v148_v27 = vld [vmem:[%s2527_s0 + $0x180] sm:$0xff] }
  0x39   :  { %250 = vmatmul.f32.gmra.mxu0 %v108_v28  ;;  %315 = vmatmul.f32.gmra.mxu1 %v109_v29  ;;  %v149_v28 = vld [vmem:[%s2527_s0 + $0x188] sm:$0xff] }
  0x3b   :  { %383 = vmatmul.f32.gmra.mxu2 %v114_v30 }
  0x3e   :  { %448 = vmatmul.f32.gmra.mxu3 %v115_v31  ;;  %652 = vperm.xlu2 %1337, %v590_v32  }
  0x3f   :  { %759 = vperm.xlu1 %1336, %v717_v33   ;;  %754 = vperm.xlu0 %1335, %v716_v34   ;;  %v154_v33 = vld [vmem:[%s2527_s0 + $0x1b0] sm:$0xff] }
  0x41   :  { %253 = vmatmul.f32.gmra.mxu0 %v112_v35  ;;  %318 = vmatmul.f32.gmra.mxu1 %v113_v36  ;;  %v155_v35 = vld [vmem:[%s2527_s0 + $0x1b8] sm:$0xff]  ;;  %v152_v36 = vld [vmem:[%s2527_s0 + $0x1a0] sm:$0xff] }
  0x43   :  { %386 = vmatmul.f32.gmra.mxu2 %v118_v37  ;;  %v153_v37 = vld [vmem:[%s2527_s0 + $0x1a8] sm:$0xff] }
  0x46   :  { %451 = vmatmul.f32.gmra.mxu3 %v119_v38  ;;  %667 = vperm.xlu2 %1337, %v593_v39  }
  0x47   :  { %774 = vperm.xlu1 %1336, %v720_v40   ;;  %769 = vperm.xlu0 %1335, %v719_v41  }
  0x49   :  { %256 = vmatmul.f32.gmra.mxu0 %v116_v42  ;;  %321 = vmatmul.f32.gmra.mxu1 %v117_v43  ;;  %v158_v43 = vld [vmem:[%s2527_s0 + $0x1d0] sm:$0xff] }
  0x4b   :  { %389 = vmatmul.f32.gmra.mxu2 %v122_v44 }
  0x4e   :  { %454 = vmatmul.f32.gmra.mxu3 %v123_v45  ;;  %734 = vperm.xlu2 %1337, %v712_v46   ;;  %v159_v45 = vld [vmem:[%s2527_s0 + $0x1d8] sm:$0xff]  ;;  %v156_v46 = vld [vmem:[%s2527_s0 + $0x1c0] sm:$0xff] }
  0x4f   :  { %789 = vperm.xlu1 %1336, %v723_v47   ;;  %784 = vperm.xlu0 %1335, %v722_v48   ;;  %v157_v47 = vld [vmem:[%s2527_s0 + $0x1c8] sm:$0xff] }
  0x51   :  { %259 = vmatmul.f32.gmra.mxu0 %v120_v49  ;;  %324 = vmatmul.f32.gmra.mxu1 %v121_v50  ;;  %v162_v49 = vld [vmem:[%s2527_s0 + $0x1f0] sm:$0xff] }
  0x53   :  { %392 = vmatmul.f32.gmra.mxu2 %v126_v51 }
  0x56   :  { %457 = vmatmul.f32.gmra.mxu3 %v127_v52  ;;  %749 = vperm.xlu2 %1337, %v715_v53  }
  0x57   :  { %804 = vperm.xlu1 %1336, %v726_v54   ;;  %799 = vperm.xlu0 %1335, %v725_v55   ;;  %v163_v55 = vld [vmem:[%s2527_s0 + $0x1f8] sm:$0xff] }
  0x59   :  { %262 = vmatmul.f32.gmra.mxu0 %v124_v56  ;;  %327 = vmatmul.f32.gmra.mxu1 %v125_v57  ;;  %v160_v56 = vld [vmem:[%s2527_s0 + $0x1e0] sm:$0xff]  ;;  %v161_v57 = vld [vmem:[%s2527_s0 + $0x1e8] sm:$0xff] }
  0x5b   :  { %395 = vmatmul.f32.gmra.mxu2 %v130_v58  ;;  %v1923_v58 = vld [vmem:[%s2529_s6] ss:$0 sm:$0xff] }
  0x5e   :  { %460 = vmatmul.f32.gmra.mxu3 %v131_v59  ;;  %764 = vperm.xlu2 %1337, %v718_v60  }
  0x61   :  { %265 = vmatmul.f32.gmra.mxu0 %v128_v61  ;;  %330 = vmatmul.f32.gmra.mxu1 %v129_v62 }
  0x63   :  { %398 = vmatmul.f32.gmra.mxu2 %v134_v63 }
  0x66   :  { %463 = vmatmul.f32.gmra.mxu3 %v135_v0  ;;  %779 = vperm.xlu2 %1337, %v721_v2  }
  0x69   :  { %268 = vmatmul.f32.gmra.mxu0 %v132_v3  ;;  %333 = vmatmul.f32.gmra.mxu1 %v133_v4 }
  0x6b   :  { %401 = vmatmul.f32.gmra.mxu2 %v138_v5 }
  0x6e   :  { %466 = vmatmul.f32.gmra.mxu3 %v139_v6  ;;  %794 = vperm.xlu2 %1337, %v724_v7  }
  0x71   :  { %271 = vmatmul.f32.gmra.mxu0 %v136_v8  ;;  %336 = vmatmul.f32.gmra.mxu1 %v137_v9 }
  0x73   :  { %404 = vmatmul.f32.gmra.mxu2 %v142_v10 }
  0x74   :  { %v1801_v12 = vpop.permute.xlu1 %607 }
  0x75   :  { %v1803_v13 = vpop.permute.xlu0 %597 }
  0x76   :  { %469 = vmatmul.f32.gmra.mxu3 %v143_v11  ;;  %v675_v63 = vsub.f32 %v1830_v21, %v1803_v13 }
  0x78   :  { %v691_v3 = vand.u32 2147483647, %v675_v63 }
  0x79   :  { %274 = vmatmul.f32.gmra.mxu0 %v140_v14  ;;  %339 = vmatmul.f32.gmra.mxu1 %v141_v15 }
  0x7a   :  { %vm839_vm0 = vcmp.le.f32.partialorder %v691_v3, 2.0 }
  0x7b   :  { %407 = vmatmul.f32.gmra.mxu2 %v146_v16 }
  0x7c   :  { %v1817_v17 = vpop.permute.xlu1 %612 }
  0x7d   :  { %v1819_v18 = vpop.permute.xlu0 %602  ;;  %v678_v3 = vsub.f32 %v1830_v21, %v1817_v17 }
  0x7e   :  { %472 = vmatmul.f32.gmra.mxu3 %v147_v1  ;;  %v676_v13 = vsub.f32 %v1830_v21, %v1819_v18 }
  0x80   :  { %v1832_v22 = vpop.permute.xlu2 %617 }
  0x81   :  { %277 = vmatmul.f32.gmra.mxu0 %v144_v19  ;;  %342 = vmatmul.f32.gmra.mxu1 %v145_v20  ;;  %v679_v24 = vsub.f32 %v1830_v21, %v1832_v22  ;;  %v1942_v19 = vld [vmem:[%s2531_s2] ss:$0 sm:$0xff] }
  0x83   :  { %410 = vmatmul.f32.gmra.mxu2 %v150_v23 }
  0x85   :  { %v1842_v26 = vpop.permute.xlu1 %632 }
  0x86   :  { %475 = vmatmul.f32.gmra.mxu3 %v151_v25  ;;  %v682_v29 = vsub.f32 %v1830_v21, %v1842_v26  ;;  %v1852_v30 = vpop.permute.xlu0 %627 }
  0x87   :  { %v681_v31 = vsub.f32 %v1830_v21, %v1852_v30 }
  0x88   :  { %v1856_v32 = vpop.permute.xlu2 %622 }
  0x89   :  { %280 = vmatmul.f32.gmra.mxu0 %v148_v27  ;;  %345 = vmatmul.f32.gmra.mxu1 %v149_v28  ;;  %v680_v34 = vsub.f32 %v1830_v21, %v1856_v32  ;;  %v692_v27 = vand.u32 2147483647, %v676_v13 }
  0x8b   :  { %413 = vmatmul.f32.gmra.mxu2 %v154_v33  ;;  %vm840_vm3 = vcmp.le.f32.partialorder %v692_v27, 2.0 }
  0x8e   :  { %478 = vmatmul.f32.gmra.mxu3 %v155_v35  ;;  %v1872_v38 = vpop.permute.xlu1 %647 }
  0x8f   :  { %v685_v39 = vsub.f32 %v1830_v21, %v1872_v38  ;;  %v1876_v40 = vpop.permute.xlu0 %642 }
  0x90   :  { %v1878_v41 = vpop.permute.xlu2 %637  ;;  %v684_v42 = vsub.f32 %v1830_v21, %v1876_v40 }
  0x91   :  { %283 = vmatmul.f32.gmra.mxu0 %v152_v36  ;;  %348 = vmatmul.f32.gmra.mxu1 %v153_v37  ;;  %v683_v44 = vsub.f32 %v1830_v21, %v1878_v41  ;;  %v694_v41 = vand.u32 2147483647, %v678_v3 }
  0x93   :  { %416 = vmatmul.f32.gmra.mxu2 %v158_v43  ;;  %vm842_vm14 = vcmp.le.f32.partialorder %v694_v41, 2.0  ;;  %v2545_v41 = vmov 0 }
  0x96   :  { %481 = vmatmul.f32.gmra.mxu3 %v159_v45 }
  0x98   :  { %v1896_v48 = vpop.permute.xlu2 %652 }
  0x99   :  { %286 = vmatmul.f32.gmra.mxu0 %v156_v46  ;;  %351 = vmatmul.f32.gmra.mxu1 %v157_v47  ;;  %v686_v50 = vsub.f32 %v1830_v21, %v1896_v48  ;;  %v1903_v51 = vpop.permute.xlu1 %662  ;;  %v1905_v52 = vpop.permute.xlu0 %657  ;;  %v677_v47 = vsub.f32 %v1830_v21, %v1801_v12 }
  0x9a   :  { %v688_v53 = vsub.f32 %v1830_v21, %v1903_v51  ;;  %v687_v54 = vsub.f32 %v1830_v21, %v1905_v52 }
  0x9b   :  { %419 = vmatmul.f32.gmra.mxu2 %v162_v49 }
  0x9c   :  { %v703_v38 = vand.u32 2147483647, %v687_v54 }
  0x9e   :  { %484 = vmatmul.f32.gmra.mxu3 %v163_v55 }
  0xa0   :  { %v1925_v59 = vpop.permute.xlu2 %667 }
  0xa1   :  { %289 = vmatmul.f32.gmra.mxu0 %v160_v56  ;;  %354 = vmatmul.f32.gmra.mxu1 %v161_v57  ;;  %v689_v60 = vsub.f32 %v1830_v21, %v1925_v59  ;;  %v730_v61 = vpop.permute.xlu1 %729  ;;  %v1929_v62 = vpop.permute.xlu0 %672 }
  0xa2   :  { %v690_v0 = vsub.f32 %v1830_v21, %v1929_v62  ;;  %v807_v2 = vsub.f32 %v1923_v58, %v730_v61  ;;  %v693_v61 = vand.u32 2147483647, %v677_v47  ;;  %v702_v47 = vand.u32 2147483647, %v686_v50 }
  0xa4   :  { %v823_v6 = vand.u32 2147483647, %v807_v2  ;;  %vm841_vm6 = vcmp.le.f32.partialorder %v693_v61, 2.0  ;;  %v706_v51 = vand.u32 2147483647, %v690_v0 }
  0xa6   :  { %v245_v4 = vpop.f32.mrf.mxu0  ;;  %v310_v5 = vpop.f32.mrf.mxu1  ;;  %vm855_vm1 = vcmp.le.f32.partialorder %v823_v6, 2.0 }
  0xa7   :  { %v311_v7 = vadd.f32 %v310_v5, %v245_v4  ;;  %v375_v8 = vpop.f32.mrf.mxu2  ;;  %vm871_vm2 = vmand %vm839_vm0, %vm855_vm1 }
  0xa8   :  { %v735_v9 = vpop.permute.xlu2 %734 }
  0xa9   :  { %v376_v10 = vadd.f32 %v375_v8, %v311_v7  ;;  %v745_v11 = vpop.permute.xlu1 %744  ;;  %v740_v14 = vpop.permute.xlu0 %739  ;;  %v808_v16 = vsub.f32 %v1923_v58, %v735_v9  ;;  %v699_v7 = vand.u32 2147483647, %v683_v44  ;;  %v700_v9 = vand.u32 2147483647, %v684_v42 }
  0xaa   :  { %v440_v15 = vpop.f32.mrf.mxu3  ;;  %v809_v55 = vsub.f32 %v1923_v58, %v740_v14  ;;  %v810_v17 = vsub.f32 %v1923_v58, %v745_v11 }
  0xab   :  { %v441_v1 = vadd.f32 %v440_v15, %v376_v10  ;;  %v824_v28 = vand.u32 2147483647, %v808_v16  ;;  %vm847_vm8 = vcmp.le.f32.partialorder %v699_v7, 2.0  ;;  %vm848_vm9 = vcmp.le.f32.partialorder %v700_v9, 2.0 }
  0xac   :  { %v825_v4 = vand.u32 2147483647, %v809_v55 }
  0xad   :  { %v543_v20 = vmul.f32 2.0, %v441_v1  ;;  %vm856_vm4 = vcmp.le.f32.partialorder %v824_v28, 2.0  ;;  %v701_v28 = vand.u32 2147483647, %v685_v39 }
  0xae   :  { %v248_v23 = vpop.f32.mrf.mxu0  ;;  %v313_v25 = vpop.f32.mrf.mxu1  ;;  %vm872_vm5 = vmand %vm840_vm3, %vm856_vm4  ;;  %vm857_vm7 = vcmp.le.f32.partialorder %v825_v4, 2.0  ;;  %vm851_vm3 = vcmp.le.f32.partialorder %v703_v38, 2.0 }
  0xaf   :  { %v314_v33 = vadd.f32 %v313_v25, %v248_v23  ;;  %v378_v35 = vpop.f32.mrf.mxu2  ;;  %v559_v36 = vsub.f32 %v1942_v19, %v543_v20  ;;  %v826_v25 = vand.u32 2147483647, %v810_v17  ;;  %vm873_vm12 = vmand %vm841_vm6, %vm857_vm7  ;;  %vm849_vm1 = vcmp.le.f32.partialorder %v701_v28, 2.0 }
  0xb0   :  { %v1945_v18 = vpop.permute.xlu2 %749 }
  0xb1   :  { %v379_v37 = vadd.f32 %v378_v35, %v314_v33  ;;  %v1947_v43 = vpop.permute.xlu1 %759  ;;  %v1949_v45 = vpop.permute.xlu0 %754  ;;  %v1951_v46 = vsel %vm871_vm2, %v559_v36, 1e+30  ;;  %vm858_vm0 = vcmp.le.f32.partialorder %v826_v25, 2.0  ;;  %v811_v48 = vsub.f32 %v1923_v58, %v1945_v18 }
  0xb2   :  { %v443_v49 = vpop.f32.mrf.mxu3  ;;  %903 = vmin.xlane.f32.xlu2 %v1951_v46  ;;  %vm850_vm2 = vcmp.le.f32.partialorder %v702_v47, 2.0  ;;  %v812_v28 = vsub.f32 %v1923_v58, %v1949_v45 }
  0xb3   :  { %v444_v56 = vadd.f32 %v443_v49, %v379_v37  ;;  %v827_v7 = vand.u32 2147483647, %v811_v48 }
  0xb5   :  { %v544_v57 = vmul.f32 2.0, %v444_v56 }
  0xb6   :  { %v251_v63 = vpop.f32.mrf.mxu0  ;;  %v316_v2 = vpop.f32.mrf.mxu1 }
  0xb7   :  { %v317_v5 = vadd.f32 %v316_v2, %v251_v63  ;;  %v381_v6 = vpop.f32.mrf.mxu2  ;;  %v560_v12 = vsub.f32 %v1942_v19, %v544_v57 }
  0xb8   :  { %v1963_v8 = vpop.permute.xlu2 %764 }
  0xb9   :  { %v382_v10 = vadd.f32 %v381_v6, %v317_v5  ;;  %v775_v14 = vpop.permute.xlu1 %774  ;;  %v770_v15 = vpop.permute.xlu0 %769  ;;  %v1968_v13 = vsel %vm872_vm5, %v560_v12, 1e+30  ;;  %vm2004_vm5 = vmand %vm842_vm14, %vm858_vm0  ;;  %v695_v12 = vand.u32 2147483647, %v679_v24  ;;  %v705_v24 = vand.u32 2147483647, %v689_v60 }
  0xba   :  { %v816_v16 = vsub.f32 %v1923_v58, %v775_v14  ;;  %v815_v1 = vsub.f32 %v1923_v58, %v770_v15  ;;  %v446_v20 = vpop.f32.mrf.mxu3  ;;  %905 = vmin.xlane.f32.xlu0 %v1968_v13  ;;  %v704_v15 = vand.u32 2147483647, %v688_v53 }
  0xbb   :  { %v447_v44 = vadd.f32 %v446_v20, %v382_v10  ;;  %vm853_vm0 = vcmp.le.f32.partialorder %v705_v24, 2.0 }
  0xbc   :  { %v832_v40 = vand.u32 2147483647, %v816_v16  ;;  %v831_v42 = vand.u32 2147483647, %v815_v1  ;;  %vm852_vm14 = vcmp.le.f32.partialorder %v704_v15, 2.0  ;;  %v814_v15 = vsub.f32 %v1923_v58, %v1963_v8 }
  0xbd   :  { %v545_v23 = vmul.f32 2.0, %v447_v44 }
  0xbe   :  { %vm864_vm10 = vcmp.le.f32.partialorder %v832_v40, 2.0  ;;  %vm863_vm11 = vcmp.le.f32.partialorder %v831_v42, 2.0  ;;  %v254_v11 = vpop.f32.mrf.mxu0  ;;  %v319_v27 = vpop.f32.mrf.mxu1 }
  0xbf   :  { %v320_v33 = vadd.f32 %v319_v27, %v254_v11  ;;  %v384_v35 = vpop.f32.mrf.mxu2  ;;  %v561_v36 = vsub.f32 %v1942_v19, %v545_v23  ;;  %vm1979_vm13 = vmand %vm847_vm8, %vm863_vm11  ;;  %vm843_vm11 = vcmp.le.f32.partialorder %v695_v12, 2.0 }
  0xc0   :  { %v780_v49 = vpop.permute.xlu2 %779  ;;  %vm1987_vm15 = vmand %vm848_vm9, %vm864_vm10 }
  0xc1   :  { %v385_v39 = vadd.f32 %v384_v35, %v320_v33  ;;  %v817_v56 = vsub.f32 %v1923_v58, %v780_v49  ;;  %v790_v57 = vpop.permute.xlu1 %789  ;;  %v785_v61 = vpop.permute.xlu0 %784  ;;  %v1995_v63 = vsel %vm873_vm12, %v561_v36, 1e+30  ;;  %vm859_vm12 = vcmp.le.f32.partialorder %v827_v7, 2.0 }
  0xc2   :  { %v819_v50 = vsub.f32 %v1923_v58, %v790_v57  ;;  %v818_v2 = vsub.f32 %v1923_v58, %v785_v61  ;;  %v449_v3 = vpop.f32.mrf.mxu3  ;;  %907 = vmin.xlane.f32.xlu1 %v1995_v63  ;;  %v696_v57 = vand.u32 2147483647, %v680_v34  ;;  %v828_v61 = vand.u32 2147483647, %v812_v28 }
  0xc3   :  { %v833_v52 = vand.u32 2147483647, %v817_v56  ;;  %v450_v54 = vadd.f32 %v449_v3, %v385_v39  ;;  %v697_v34 = vand.u32 2147483647, %v681_v31  ;;  %v698_v31 = vand.u32 2147483647, %v682_v29 }
  0xc4   :  { %v835_v4 = vand.u32 2147483647, %v819_v50  ;;  %v834_v5 = vand.u32 2147483647, %v818_v2 }
  0xc5   :  { %vm865_vm4 = vcmp.le.f32.partialorder %v833_v52, 2.0  ;;  %v546_v6 = vmul.f32 2.0, %v450_v54  ;;  %v813_v52 = vsub.f32 %v1923_v58, %v1947_v43 }
  0xc6   :  { %vm867_vm6 = vcmp.le.f32.partialorder %v835_v4, 2.0  ;;  %vm866_vm7 = vcmp.le.f32.partialorder %v834_v5, 2.0  ;;  %v257_v9 = vpop.f32.mrf.mxu0  ;;  %v322_v10 = vpop.f32.mrf.mxu1  ;;  %vm2012_vm8 = vmand %vm849_vm1, %vm865_vm4  ;;  %vm854_vm1 = vcmp.le.f32.partialorder %v706_v51, 2.0  ;;  %v830_v51 = vand.u32 2147483647, %v814_v15 }
  0xc7   :  { %v323_v17 = vadd.f32 %v322_v10, %v257_v9  ;;  %v387_v16 = vpop.f32.mrf.mxu2  ;;  %v562_v1 = vsub.f32 %v1942_v19, %v546_v6  ;;  %vm2021_vm9 = vmand %vm850_vm2, %vm866_vm7  ;;  %v829_v12 = vand.u32 2147483647, %v813_v52 }
  0xc8   :  { %v795_v20 = vpop.permute.xlu2 %794  ;;  %vm2029_vm10 = vmand %vm851_vm3, %vm867_vm6 }
  0xc9   :  { %v2546_v41 = vsel %vm2029_vm10, 4294967295, %v2545_v41  ;;  %v388_v53 = vadd.f32 %v387_v16, %v323_v17  ;;  %v820_v44 = vsub.f32 %v1923_v58, %v795_v20  ;;  %v805_v40 = vpop.permute.xlu1 %804  ;;  %v800_v42 = vpop.permute.xlu0 %799  ;;  %v2039_v23 = vsel %vm2004_vm5, %v562_v1, 1e+30  ;;  %vm875_vm3 = vmand %vm843_vm11, %vm859_vm12 }
  0xca   :  { %v822_v59 = vsub.f32 %v1923_v58, %v805_v40  ;;  %v821_v60 = vsub.f32 %v1923_v58, %v800_v42  ;;  %v452_v25 = vpop.f32.mrf.mxu3  ;;  %909 = vmin.xlane.f32.xlu2 %v2039_v23  ;;  %vm844_vm11 = vcmp.le.f32.partialorder %v696_v57, 2.0  ;;  %vm860_vm12 = vcmp.le.f32.partialorder %v828_v61, 2.0 }
  0xcb   :  { %v836_v62 = vand.u32 2147483647, %v820_v44  ;;  %v453_v0 = vadd.f32 %v452_v25, %v388_v53 }
  0xcc   :  { %v838_v11 = vand.u32 2147483647, %v822_v59  ;;  %v837_v27 = vand.u32 2147483647, %v821_v60 }
  0xcd   :  { %vm868_vm2 = vcmp.le.f32.partialorder %v836_v62, 2.0  ;;  %v547_v33 = vmul.f32 2.0, %v453_v0 }
  0xce   :  { %vm870_vm4 = vcmp.le.f32.partialorder %v838_v11, 2.0  ;;  %vm869_vm5 = vcmp.le.f32.partialorder %v837_v27, 2.0  ;;  %v260_v35 = vpop.f32.mrf.mxu0  ;;  %v325_v36 = vpop.f32.mrf.mxu1  ;;  %vm2049_vm6 = vmand %vm852_vm14, %vm868_vm2 }
  0xcf   :  { %v326_v49 = vadd.f32 %v325_v36, %v260_v35  ;;  %v390_v38 = vpop.f32.mrf.mxu2  ;;  %v563_v39 = vsub.f32 %v1942_v19, %v547_v33  ;;  %vm2055_vm7 = vmand %vm853_vm0, %vm869_vm5  ;;  %vm845_vm0 = vcmp.le.f32.partialorder %v697_v34, 2.0 }
  0xd0   :  { %vm2059_vm10 = vmand %vm854_vm1, %vm870_vm4  ;;  %vm861_vm1 = vcmp.le.f32.partialorder %v829_v12, 2.0  ;;  %vm862_vm4 = vcmp.le.f32.partialorder %v830_v51, 2.0  ;;  %v1342_v12 = vmov 3e+38  }
  0xd1   :  { %v391_v48 = vadd.f32 %v390_v38, %v326_v49  ;;  %v2066_v50 = vsel %vm875_vm3, %v563_v39, 1e+30  ;;  %vm876_vm14 = vmand %vm844_vm11, %vm860_vm12  ;;  %vm846_vm3 = vcmp.le.f32.partialorder %v698_v31, 2.0 }
  0xd2   :  { %v455_v2 = vpop.f32.mrf.mxu3  ;;  %911 = vmin.xlane.f32.xlu2 %v2066_v50  ;;  %vm877_vm2 = vmand %vm845_vm0, %vm861_vm1 }
  0xd3   :  { %v456_v3 = vadd.f32 %v455_v2, %v391_v48  ;;  %vm878_vm5 = vmand %vm846_vm3, %vm862_vm4 }
  0xd5   :  { %v548_v54 = vmul.f32 2.0, %v456_v3 }
  0xd6   :  { %v263_v4 = vpop.f32.mrf.mxu0  ;;  %v328_v5 = vpop.f32.mrf.mxu1 }
  0xd7   :  { %v329_v6 = vadd.f32 %v328_v5, %v263_v4  ;;  %v393_v18 = vpop.f32.mrf.mxu2  ;;  %v564_v32 = vsub.f32 %v1942_v19, %v548_v54 }
  0xd9   :  { %v394_v7 = vadd.f32 %v393_v18, %v329_v6  ;;  %v2075_v9 = vsel %vm876_vm14, %v564_v32, 1e+30 }
  0xda   :  { %v458_v10 = vpop.f32.mrf.mxu3  ;;  %913 = vmin.xlane.f32.xlu0 %v2075_v9 }
  0xdb   :  { %v459_v43 = vadd.f32 %v458_v10, %v394_v7 }
  0xdd   :  { %v549_v17 = vmul.f32 2.0, %v459_v43 }
  0xde   :  { %v266_v16 = vpop.f32.mrf.mxu0  ;;  %v331_v1 = vpop.f32.mrf.mxu1 }
  0xdf   :  { %v332_v24 = vadd.f32 %v331_v1, %v266_v16  ;;  %v396_v20 = vpop.f32.mrf.mxu2  ;;  %v565_v30 = vsub.f32 %v1942_v19, %v549_v17 }
  0xe1   :  { %v397_v53 = vadd.f32 %v396_v20, %v332_v24  ;;  %v2084_v44 = vsel %vm877_vm2, %v565_v30, 1e+30 }
  0xe2   :  { %v461_v40 = vpop.f32.mrf.mxu3  ;;  %915 = vmin.xlane.f32.xlu1 %v2084_v44 }
  0xe3   :  { %v462_v58 = vadd.f32 %v461_v40, %v397_v53 }
  0xe5   :  { %v550_v8 = vmul.f32 2.0, %v462_v58 }
  0xe6   :  { %v269_v42 = vpop.f32.mrf.mxu0  ;;  %v334_v59 = vpop.f32.mrf.mxu1 }
  0xe7   :  { %v335_v60 = vadd.f32 %v334_v59, %v269_v42  ;;  %v399_v25 = vpop.f32.mrf.mxu2  ;;  %v566_v62 = vsub.f32 %v1942_v19, %v550_v8 }
  0xe9   :  { %v400_v21 = vadd.f32 %v399_v25, %v335_v60  ;;  %v2088_v26 = vsel %vm878_vm5, %v566_v62, 1e+30 }
  0xea   :  { %v464_v29 = vpop.f32.mrf.mxu3  ;;  %917 = vmin.xlane.f32.xlu2 %v2088_v26 }
  0xeb   :  { %v465_v0 = vadd.f32 %v464_v29, %v400_v21 }
  0xed   :  { %v551_v11 = vmul.f32 2.0, %v465_v0 }
  0xee   :  { %v272_v27 = vpop.f32.mrf.mxu0  ;;  %v337_v28 = vpop.f32.mrf.mxu1 }
  0xef   :  { %v338_v33 = vadd.f32 %v337_v28, %v272_v27  ;;  %v402_v35 = vpop.f32.mrf.mxu2  ;;  %v567_v36 = vsub.f32 %v1942_v19, %v551_v11 }
  0xf1   :  { %v403_v49 = vadd.f32 %v402_v35, %v338_v33  ;;  %v2094_v38 = vsel %vm1979_vm13, %v567_v36, 1e+30  ;;  %vm32_vm13 = vcmask 7168  }
  0xf2   :  { %v467_v39 = vpop.f32.mrf.mxu3  ;;  %919 = vmin.xlane.f32.xlu0 %v2094_v38  ;;  %33 = vst.msk [vmem:[#allocation3] sm:$0xff] %vm32_vm13, %v1342_v12 }
  0xf3   :  { %v468_v57 = vadd.f32 %v467_v39, %v403_v49  ;;  %34 = vst.msk [vmem:[#allocation3 + $0x8] sm:$0xff] %vm32_vm13, %v1342_v12 }
  0xf4   :  { %35 = vst.msk [vmem:[#allocation3 + $0x10] sm:$0xff] %vm32_vm13, %v1342_v12 }
  0xf5   :  { %v552_v61 = vmul.f32 2.0, %v468_v57  ;;  %36 = vst.msk [vmem:[#allocation3 + $0x18] sm:$0xff] %vm32_vm13, %v1342_v12 }
  0xf6   :  { %v275_v48 = vpop.f32.mrf.mxu0  ;;  %v340_v2 = vpop.f32.mrf.mxu1  ;;  %37 = vst.msk [vmem:[#allocation3 + $0x20] sm:$0xff] %vm32_vm13, %v1342_v12 }
  0xf7   :  { %v341_v3 = vadd.f32 %v340_v2, %v275_v48  ;;  %v405_v52 = vpop.f32.mrf.mxu2  ;;  %v568_v54 = vsub.f32 %v1942_v19, %v552_v61  ;;  %38 = vst.msk [vmem:[#allocation3 + $0x28] sm:$0xff] %vm32_vm13, %v1342_v12  ;;  %v935_v61 = vlaneseq }
  0xf8   :  { %39 = vst.msk [vmem:[#allocation3 + $0x30] sm:$0xff] %vm32_vm13, %v1342_v12 }
  0xf9   :  { %v406_v4 = vadd.f32 %v405_v52, %v341_v3  ;;  %v2100_v5 = vsel %vm1987_vm15, %v568_v54, 1e+30  ;;  %40 = vst.msk [vmem:[#allocation3 + $0x38] sm:$0xff] %vm32_vm13, %v1342_v12  ;;  %vm2553_vm15 = vnez %v2546_v41 }
  0xfa   :  { %v470_v6 = vpop.f32.mrf.mxu3  ;;  %921 = vmin.xlane.f32.xlu1 %v2100_v5  ;;  %41 = vst.msk [vmem:[#allocation3 + $0x40] sm:$0xff] %vm32_vm13, %v1342_v12 }
  0xfb   :  { %v471_v37 = vadd.f32 %v470_v6, %v406_v4  ;;  %42 = vst.msk [vmem:[#allocation3 + $0x48] sm:$0xff] %vm32_vm13, %v1342_v12  ;;  %v936_v6 = vand.u32 127, %v935_v61 }
  0xfc   :  { %43 = vst.msk [vmem:[#allocation3 + $0x50] sm:$0xff] %vm32_vm13, %v1342_v12 }
  0xfd   :  { %v553_v18 = vmul.f32 2.0, %v471_v37  ;;  %44 = vst.msk [vmem:[#allocation3 + $0x58] sm:$0xff] %vm32_vm13, %v1342_v12 }
  0xfe   :  { %v278_v32 = vpop.f32.mrf.mxu0  ;;  %v343_v34 = vpop.f32.mrf.mxu1  ;;  %45 = vst.msk [vmem:[#allocation3 + $0x60] sm:$0xff] %vm32_vm13, %v1342_v12 }
  0xff   :  { %v344_v7 = vadd.f32 %v343_v34, %v278_v32  ;;  %v408_v10 = vpop.f32.mrf.mxu2  ;;  %v569_v43 = vsub.f32 %v1942_v19, %v553_v18  ;;  %46 = vst.msk [vmem:[#allocation3 + $0x68] sm:$0xff] %vm32_vm13, %v1342_v12  ;;  %v2149_v34 = vld [vmem:[#allocation3] sm:$0xff] }
 0x100   :  { %47 = vst.msk [vmem:[#allocation3 + $0x70] sm:$0xff] %vm32_vm13, %v1342_v12 }
 0x101   :  { %v409_v55 = vadd.f32 %v408_v10, %v344_v7  ;;  %v2109_v15 = vsel %vm2012_vm8, %v569_v43, 1e+30  ;;  %48 = vst.msk [vmem:[#allocation3 + $0x78] sm:$0xff] %vm32_vm13, %v1342_v12  ;;  %v2151_v12 = vcvt.s32.f32 %v936_v6 }
 0x102   :  { %v473_v17 = vpop.f32.mrf.mxu3  ;;  %923 = vmin.xlane.f32.xlu2 %v2109_v15 }
 0x103   :  { %v474_v16 = vadd.f32 %v473_v17, %v409_v55 }
 0x105   :  { %v554_v1 = vmul.f32 2.0, %v474_v16 }
 0x106   :  { %v281_v24 = vpop.f32.mrf.mxu0  ;;  %v346_v20 = vpop.f32.mrf.mxu1  ;;  %v2368_v6 = vld [vmem:[#allocation3 + $0x68] sm:$0xff] }
 0x107   :  { %v347_v14 = vadd.f32 %v346_v20, %v281_v24  ;;  %v411_v30 = vpop.f32.mrf.mxu2  ;;  %v570_v31 = vsub.f32 %v1942_v19, %v554_v1  ;;  %v2187_v1 = vld [vmem:[#allocation3 + $0x10] sm:$0xff] }
 0x109   :  { %v412_v51 = vadd.f32 %v411_v30, %v347_v14  ;;  %v2123_v53 = vsel %vm2021_vm9, %v570_v31, 1e+30  ;;  %v2202_v14 = vld [vmem:[#allocation3 + $0x18] sm:$0xff] }
 0x10a   :  { %v476_v40 = vpop.f32.mrf.mxu3  ;;  %925 = vmin.xlane.f32.xlu0 %v2123_v53 }
 0x10b   :  { %v477_v58 = vadd.f32 %v476_v40, %v412_v51  ;;  %v2217_v51 = vld [vmem:[#allocation3 + $0x20] sm:$0xff] }
 0x10d   :  { %v555_v8 = vmul.f32 2.0, %v477_v58 }
 0x10e   :  { %v284_v42 = vpop.f32.mrf.mxu0  ;;  %v349_v59 = vpop.f32.mrf.mxu1 }
 0x10f   :  { %v350_v22 = vadd.f32 %v349_v59, %v284_v42  ;;  %v414_v60 = vpop.f32.mrf.mxu2  ;;  %v571_v25 = vsub.f32 %v1942_v19, %v555_v8  ;;  %v2232_v8 = vld [vmem:[#allocation3 + $0x28] sm:$0xff] }
 0x111   :  { %v415_v62 = vadd.f32 %v414_v60, %v350_v22  ;;  %v2134_v21 = vsel %vm2553_vm15, %v571_v25, 1e+30  ;;  %v2247_v22 = vld [vmem:[#allocation3 + $0x30] sm:$0xff] }
 0x112   :  { %v479_v29 = vpop.f32.mrf.mxu3  ;;  %927 = vmin.xlane.f32.xlu1 %v2134_v21 }
 0x113   :  { %v480_v0 = vadd.f32 %v479_v29, %v415_v62  ;;  %v2262_v62 = vld [vmem:[#allocation3 + $0x38] sm:$0xff] }
 0x115   :  { %v556_v11 = vmul.f32 2.0, %v480_v0 }
 0x116   :  { %v287_v27 = vpop.f32.mrf.mxu0  ;;  %v352_v28 = vpop.f32.mrf.mxu1 }
 0x117   :  { %v353_v33 = vadd.f32 %v352_v28, %v287_v27  ;;  %v417_v35 = vpop.f32.mrf.mxu2  ;;  %v572_v36 = vsub.f32 %v1942_v19, %v556_v11  ;;  %v2277_v11 = vld [vmem:[#allocation3 + $0x40] sm:$0xff] }
 0x119   :  { %v418_v49 = vadd.f32 %v417_v35, %v353_v33  ;;  %v2140_v39 = vsel %vm2049_vm6, %v572_v36, 1e+30  ;;  %v2292_v33 = vld [vmem:[#allocation3 + $0x48] sm:$0xff] }
 0x11a   :  { %v482_v57 = vpop.f32.mrf.mxu3  ;;  %929 = vmin.xlane.f32.xlu2 %v2140_v39 }
 0x11b   :  { %v483_v41 = vadd.f32 %v482_v57, %v418_v49  ;;  %v2307_v49 = vld [vmem:[#allocation3 + $0x50] sm:$0xff]  ;;  %v1343_v57 = vmov 0.0  }
 0x11c   :  { %49 = vst.msk [vmem:[#allocation4] sm:$0xff] %vm32_vm13, %v1343_v57 }
 0x11d   :  { %v557_v48 = vmul.f32 2.0, %v483_v41  ;;  %50 = vst.msk [vmem:[#allocation4 + $0x8] sm:$0xff] %vm32_vm13, %v1343_v57 }
 0x11e   :  { %v290_v2 = vpop.f32.mrf.mxu0  ;;  %v355_v3 = vpop.f32.mrf.mxu1  ;;  %51 = vst.msk [vmem:[#allocation4 + $0x10] sm:$0xff] %vm32_vm13, %v1343_v57 }
 0x11f   :  { %v356_v52 = vadd.f32 %v355_v3, %v290_v2  ;;  %v420_v54 = vpop.f32.mrf.mxu2  ;;  %v573_v4 = vsub.f32 %v1942_v19, %v557_v48  ;;  %52 = vst.msk [vmem:[#allocation4 + $0x18] sm:$0xff] %vm32_vm13, %v1343_v57 }
 0x120   :  { %53 = vst.msk [vmem:[#allocation4 + $0x20] sm:$0xff] %vm32_vm13, %v1343_v57 }
 0x121   :  { %v421_v37 = vadd.f32 %v420_v54, %v356_v52  ;;  %v2146_v18 = vsel %vm2055_vm7, %v573_v4, 1e+30  ;;  %54 = vst.msk [vmem:[#allocation4 + $0x28] sm:$0xff] %vm32_vm13, %v1343_v57 }
 0x122   :  { %v485_v47 = vpop.f32.mrf.mxu3  ;;  %931 = vmin.xlane.f32.xlu0 %v2146_v18  ;;  %55 = vst.msk [vmem:[#allocation4 + $0x30] sm:$0xff] %vm32_vm13, %v1343_v57 }
 0x123   :  { %v486_v32 = vadd.f32 %v485_v47, %v421_v37  ;;  %56 = vst.msk [vmem:[#allocation4 + $0x38] sm:$0xff] %vm32_vm13, %v1343_v57 }
 0x124   :  { %57 = vst.msk [vmem:[#allocation4 + $0x40] sm:$0xff] %vm32_vm13, %v1343_v57 }
 0x125   :  { %v558_v7 = vmul.f32 2.0, %v486_v32  ;;  %v2153_v10 = vpop.xlane.xlu2 %903  ;;  %58 = vst.msk [vmem:[#allocation4 + $0x48] sm:$0xff] %vm32_vm13, %v1343_v57  ;;  %v2383_v32 = vld [vmem:[#allocation3 + $0x70] sm:$0xff] }
 0x126   :  { %vm1021_vm8 = vcmp.lt.f32.partialorder %v2153_v10, %v2149_v34  ;;  %vm941_vm9 = vcmp.eq.f32.partialorder %v1951_v46, %v2153_v10  ;;  %v2172_v46 = vld [vmem:[#allocation3 + $0x8] sm:$0xff]  ;;  %59 = vst.msk [vmem:[#allocation4 + $0x50] sm:$0xff] %vm32_vm13, %v1343_v57 }
 0x127   :  { %v1037_v45 = vsel %vm1021_vm8, %v2153_v10, %v2149_v34  ;;  %v957_v43 = vsel %vm941_vm9, %v2151_v12, 1e+09  ;;  %v574_v55 = vsub.f32 %v1942_v19, %v558_v7  ;;  %60 = vst.msk [vmem:[#allocation4 + $0x58] sm:$0xff] %vm32_vm13, %v1343_v57  ;;  %v1071_v34 = vld [vmem:[#allocation4 + $0x8] sm:$0xff] }
 0x128   :  { %1054 = vst.msk [vmem:[#allocation3] sm:$0xff] %vm32_vm13, %v1037_v45  ;;  %973 = vmin.xlane.f32.xlu2 %v957_v43  ;;  %v1070_v43 = vld [vmem:[#allocation4] sm:$0xff] }
 0x129   :  { %v2169_v17 = vsel %vm2059_vm10, %v574_v55, 1e+30  ;;  %61 = vst.msk [vmem:[#allocation4 + $0x60] sm:$0xff] %vm32_vm13, %v1343_v57 }
 0x12a   :  { %933 = vmin.xlane.f32.xlu1 %v2169_v17  ;;  %62 = vst.msk [vmem:[#allocation4 + $0x68] sm:$0xff] %vm32_vm13, %v1343_v57 }
 0x12b   :  { %63 = vst.msk [vmem:[#allocation4 + $0x70] sm:$0xff] %vm32_vm13, %v1343_v57 }
 0x12c   :  { %64 = vst.msk [vmem:[#allocation4 + $0x78] sm:$0xff] %vm32_vm13, %v1343_v57  ;;  %v1078_v57 = vld [vmem:[#allocation4 + $0x40] sm:$0xff] }
 0x12d   :  { %v2174_v16 = vpop.xlane.xlu0 %905 }
 0x12e   :  { %vm1022_vm6 = vcmp.lt.f32.partialorder %v2174_v16, %v2172_v46  ;;  %vm942_vm7 = vcmp.eq.f32.partialorder %v1968_v13, %v2174_v16 }
 0x12f   :  { %v1038_v19 = vsel %vm1022_vm6, %v2174_v16, %v2172_v46  ;;  %v958_v56 = vsel %vm942_vm7, %v2151_v12, 1e+09 }
 0x130   :  { %1055 = vst.msk [vmem:[#allocation3 + $0x8] sm:$0xff] %vm32_vm13, %v1038_v19  ;;  %975 = vmin.xlane.f32.xlu0 %v958_v56  ;;  %v2398_v19 = vld [vmem:[#allocation3 + $0x78] sm:$0xff] }
 0x135   :  { %v2189_v24 = vpop.xlane.xlu1 %907 }
 0x136   :  { %vm1023_vm10 = vcmp.lt.f32.partialorder %v2189_v24, %v2187_v1  ;;  %vm943_vm11 = vcmp.eq.f32.partialorder %v1995_v63, %v2189_v24 }
 0x137   :  { %v1039_v13 = vsel %vm1023_vm10, %v2189_v24, %v2187_v1  ;;  %v959_v20 = vsel %vm943_vm11, %v2151_v12, 1e+09 }
 0x138   :  { %1056 = vst.msk [vmem:[#allocation3 + $0x10] sm:$0xff] %vm32_vm13, %v1039_v13  ;;  %977 = vmin.xlane.f32.xlu1 %v959_v20 }
 0x13d   :  { %v2204_v30 = vpop.xlane.xlu2 %909 }
 0x13e   :  { %vm1024_vm12 = vcmp.lt.f32.partialorder %v2204_v30, %v2202_v14  ;;  %vm944_vm14 = vcmp.eq.f32.partialorder %v2039_v23, %v2204_v30 }
 0x13f   :  { %v1040_v63 = vsel %vm1024_vm12, %v2204_v30, %v2202_v14  ;;  %v960_v31 = vsel %vm944_vm14, %v2151_v12, 1e+09 }
 0x140   :  { %1057 = vst.msk [vmem:[#allocation3 + $0x18] sm:$0xff] %vm32_vm13, %v1040_v63  ;;  %979 = vmin.xlane.f32.xlu2 %v960_v31 }
 0x145   :  { %v2219_v40 = vpop.xlane.xlu2 %911 }
 0x146   :  { %vm1025_vm0 = vcmp.lt.f32.partialorder %v2219_v40, %v2217_v51  ;;  %vm945_vm1 = vcmp.eq.f32.partialorder %v2066_v50, %v2219_v40 }
 0x147   :  { %v1041_v23 = vsel %vm1025_vm0, %v2219_v40, %v2217_v51  ;;  %v961_v58 = vsel %vm945_vm1, %v2151_v12, 1e+09 }
 0x148   :  { %1058 = vst.msk [vmem:[#allocation3 + $0x20] sm:$0xff] %vm32_vm13, %v1041_v23  ;;  %981 = vmin.xlane.f32.xlu0 %v961_v58 }
 0x14d   :  { %v2234_v42 = vpop.xlane.xlu0 %913 }
 0x14e   :  { %vm1026_vm2 = vcmp.lt.f32.partialorder %v2234_v42, %v2232_v8  ;;  %vm946_vm3 = vcmp.eq.f32.partialorder %v2075_v9, %v2234_v42 }
 0x14f   :  { %v1042_v50 = vsel %vm1026_vm2, %v2234_v42, %v2232_v8  ;;  %v962_v59 = vsel %vm946_vm3, %v2151_v12, 1e+09 }
 0x150   :  { %1059 = vst.msk [vmem:[#allocation3 + $0x28] sm:$0xff] %vm32_vm13, %v1042_v50  ;;  %983 = vmin.xlane.f32.xlu1 %v962_v59  ;;  %v1073_v50 = vld [vmem:[#allocation4 + $0x18] sm:$0xff] }
 0x155   :  { %v2249_v60 = vpop.xlane.xlu1 %915 }
 0x156   :  { %vm1027_vm4 = vcmp.lt.f32.partialorder %v2249_v60, %v2247_v22  ;;  %vm947_vm5 = vcmp.eq.f32.partialorder %v2084_v44, %v2249_v60 }
 0x157   :  { %v1043_v9 = vsel %vm1027_vm4, %v2249_v60, %v2247_v22  ;;  %v963_v25 = vsel %vm947_vm5, %v2151_v12, 1e+09 }
 0x158   :  { %1060 = vst.msk [vmem:[#allocation3 + $0x30] sm:$0xff] %vm32_vm13, %v1043_v9  ;;  %985 = vmin.xlane.f32.xlu2 %v963_v25  ;;  %v1074_v9 = vld [vmem:[#allocation4 + $0x20] sm:$0xff] }
 0x15d   :  { %v2264_v29 = vpop.xlane.xlu2 %917 }
 0x15e   :  { %vm1028_vm15 = vcmp.lt.f32.partialorder %v2264_v29, %v2262_v62  ;;  %vm948_vm9 = vcmp.eq.f32.partialorder %v2088_v26, %v2264_v29 }
 0x15f   :  { %v1044_v44 = vsel %vm1028_vm15, %v2264_v29, %v2262_v62  ;;  %v964_v0 = vsel %vm948_vm9, %v2151_v12, 1e+09 }
 0x160   :  { %1061 = vst.msk [vmem:[#allocation3 + $0x38] sm:$0xff] %vm32_vm13, %v1044_v44  ;;  %987 = vmin.xlane.f32.xlu0 %v964_v0  ;;  %v1075_v44 = vld [vmem:[#allocation4 + $0x28] sm:$0xff] }
 0x165   :  { %v2279_v27 = vpop.xlane.xlu0 %919 }
 0x166   :  { %vm1029_vm7 = vcmp.lt.f32.partialorder %v2279_v27, %v2277_v11  ;;  %vm949_vm11 = vcmp.eq.f32.partialorder %v2094_v38, %v2279_v27 }
 0x167   :  { %v1045_v26 = vsel %vm1029_vm7, %v2279_v27, %v2277_v11  ;;  %v965_v28 = vsel %vm949_vm11, %v2151_v12, 1e+09 }
 0x168   :  { %1062 = vst.msk [vmem:[#allocation3 + $0x40] sm:$0xff] %vm32_vm13, %v1045_v26  ;;  %989 = vmin.xlane.f32.xlu1 %v965_v28  ;;  %v1076_v26 = vld [vmem:[#allocation4 + $0x30] sm:$0xff] }
 0x16d   :  { %v2294_v35 = vpop.xlane.xlu1 %921 }
 0x16e   :  { %vm1030_vm14 = vcmp.lt.f32.partialorder %v2294_v35, %v2292_v33  ;;  %vm950_vm1 = vcmp.eq.f32.partialorder %v2100_v5, %v2294_v35 }
 0x16f   :  { %v1046_v38 = vsel %vm1030_vm14, %v2294_v35, %v2292_v33  ;;  %v966_v36 = vsel %vm950_vm1, %v2151_v12, 1e+09 }
 0x170   :  { %1063 = vst.msk [vmem:[#allocation3 + $0x48] sm:$0xff] %vm32_vm13, %v1046_v38  ;;  %991 = vmin.xlane.f32.xlu2 %v966_v36  ;;  %v1077_v38 = vld [vmem:[#allocation4 + $0x38] sm:$0xff] }
 0x175   :  { %v2310_v41 = vpop.xlane.xlu2 %923 }
 0x176   :  { %vm1031_vm3 = vcmp.lt.f32.partialorder %v2310_v41, %v2307_v49  ;;  %vm951_vm5 = vcmp.eq.f32.partialorder %v2109_v15, %v2310_v41  ;;  %v2328_v15 = vld [vmem:[#allocation3 + $0x58] sm:$0xff] }
 0x177   :  { %v1047_v5 = vsel %vm1031_vm3, %v2310_v41, %v2307_v49  ;;  %v967_v61 = vsel %vm951_vm5, %v2151_v12, 1e+09 }
 0x178   :  { %1064 = vst.msk [vmem:[#allocation3 + $0x50] sm:$0xff] %vm32_vm13, %v1047_v5  ;;  %993 = vmin.xlane.f32.xlu0 %v967_v61  ;;  %v1079_v61 = vld [vmem:[#allocation4 + $0x48] sm:$0xff] }
 0x17d   :  { %v2332_v48 = vpop.xlane.xlu0 %925 }
 0x17e   :  { %vm2533_vm9 = vcmp.lt.f32.partialorder %v2332_v48, %v2328_v15  ;;  %vm952_vm11 = vcmp.eq.f32.partialorder %v2123_v53, %v2332_v48  ;;  %v2350_v53 = vld [vmem:[#allocation3 + $0x60] sm:$0xff] }
 0x17f   :  { %v1048_v2 = vsel %vm2533_vm9, %v2332_v48, %v2328_v15  ;;  %v968_v3 = vsel %vm952_vm11, %v2151_v12, 1e+09 }
 0x180   :  { %1065 = vst.msk [vmem:[#allocation3 + $0x58] sm:$0xff] %vm32_vm13, %v1048_v2  ;;  %995 = vmin.xlane.f32.xlu1 %v968_v3  ;;  %v1080_v3 = vld [vmem:[#allocation4 + $0x50] sm:$0xff] }
 0x185   :  { %v2354_v52 = vpop.xlane.xlu1 %927 }
 0x186   :  { %vm2534_vm1 = vcmp.lt.f32.partialorder %v2354_v52, %v2350_v53  ;;  %vm953_vm5 = vcmp.eq.f32.partialorder %v2134_v21, %v2354_v52 }
 0x187   :  { %v1049_v54 = vsel %vm2534_vm1, %v2354_v52, %v2350_v53  ;;  %v969_v4 = vsel %vm953_vm5, %v2151_v12, 1e+09 }
 0x188   :  { %1066 = vst.msk [vmem:[#allocation3 + $0x60] sm:$0xff] %vm32_vm13, %v1049_v54  ;;  %997 = vmin.xlane.f32.xlu2 %v969_v4  ;;  %v1081_v4 = vld [vmem:[#allocation4 + $0x58] sm:$0xff] }
 0x18d   :  { %v2370_v37 = vpop.xlane.xlu2 %929 }
 0x18e   :  { %vm1034_vm11 = vcmp.lt.f32.partialorder %v2370_v37, %v2368_v6  ;;  %vm954_vm9 = vcmp.eq.f32.partialorder %v2140_v39, %v2370_v37 }
 0x18f   :  { %v1050_v21 = vsel %vm1034_vm11, %v2370_v37, %v2368_v6  ;;  %v970_v47 = vsel %vm954_vm9, %v2151_v12, 1e+09 }
 0x190   :  { %1067 = vst.msk [vmem:[#allocation3 + $0x68] sm:$0xff] %vm32_vm13, %v1050_v21  ;;  %999 = vmin.xlane.f32.xlu0 %v970_v47  ;;  %v1082_v47 = vld [vmem:[#allocation4 + $0x60] sm:$0xff] }
 0x195   :  { %v2385_v7 = vpop.xlane.xlu0 %931 }
 0x196   :  { %vm1035_vm5 = vcmp.lt.f32.partialorder %v2385_v7, %v2383_v32  ;;  %vm955_vm1 = vcmp.eq.f32.partialorder %v2146_v18, %v2385_v7 }
 0x197   :  { %v1051_v39 = vsel %vm1035_vm5, %v2385_v7, %v2383_v32  ;;  %v971_v45 = vsel %vm955_vm1, %v2151_v12, 1e+09 }
 0x198   :  { %1068 = vst.msk [vmem:[#allocation3 + $0x70] sm:$0xff] %vm32_vm13, %v1051_v39  ;;  %1001 = vmin.xlane.f32.xlu1 %v971_v45  ;;  %v1083_v45 = vld [vmem:[#allocation4 + $0x68] sm:$0xff] }
 0x19b   :  { %v974_v55 = vpop.xlane.xlu2 %973 }
 0x19c   :  { %v1086_v56 = vsel %vm1021_vm8, %v974_v55, %v1070_v43  ;;  %vm2554_vm8 = vcmp.lt.f32.partialorder %v2332_v48, %v2328_v15  ;;  %v1084_v55 = vld [vmem:[#allocation4 + $0x70] sm:$0xff] }
 0x19d   :  { %1102 = vst.msk [vmem:[#allocation4] sm:$0xff] %vm32_vm13, %v1086_v56  ;;  %v2404_v18 = vpop.xlane.xlu1 %933 }
 0x19e   :  { %vm1036_vm9 = vcmp.lt.f32.partialorder %v2404_v18, %v2398_v19  ;;  %vm956_vm1 = vcmp.eq.f32.partialorder %v2169_v17, %v2404_v18  ;;  %v1072_v17 = vld [vmem:[#allocation4 + $0x10] sm:$0xff] }
 0x19f   :  { %v1052_v13 = vsel %vm1036_vm9, %v2404_v18, %v2398_v19  ;;  %v972_v20 = vsel %vm956_vm1, %v2151_v12, 1e+09 }
 0x1a0   :  { %1069 = vst.msk [vmem:[#allocation3 + $0x78] sm:$0xff] %vm32_vm13, %v1052_v13  ;;  %1003 = vmin.xlane.f32.xlu2 %v972_v20  ;;  %v1085_v13 = vld [vmem:[#allocation4 + $0x78] sm:$0xff] }
 0x1a3   :  { %v976_v10 = vpop.xlane.xlu0 %975 }
 0x1a4   :  { %v1087_v63 = vsel %vm1022_vm6, %v976_v10, %v1071_v34  ;;  %v1120_v31 = vld [vmem:[#allocation4] sm:$0xff]  ;;  %vm2555_vm6 = vcmp.lt.f32.partialorder %v2354_v52, %v2350_v53 }
 0x1a5   :  { %1103 = vst.msk [vmem:[#allocation4 + $0x8] sm:$0xff] %vm32_vm13, %v1087_v63  ;;  %1138 = vperm.xlu0 %1335, %v1120_v31  }
 0x1ab   :  { %v978_v23 = vpop.xlane.xlu1 %977 }
 0x1ac   :  { %v1088_v58 = vsel %vm1023_vm10, %v978_v23, %v1072_v17  ;;  %v1121_v12 = vld [vmem:[#allocation4 + $0x8] sm:$0xff] }
 0x1ad   :  { %1104 = vst.msk [vmem:[#allocation4 + $0x10] sm:$0xff] %vm32_vm13, %v1088_v58 }
 0x1b1   :  { %1143 = vperm.xlu1 %1336, %v1121_v12  }
 0x1b3   :  { %v980_v59 = vpop.xlane.xlu2 %979 }
 0x1b4   :  { %v1089_v46 = vsel %vm1024_vm12, %v980_v59, %v1073_v50  ;;  %v1122_v16 = vld [vmem:[#allocation4 + $0x10] sm:$0xff] }
 0x1b5   :  { %1105 = vst.msk [vmem:[#allocation4 + $0x18] sm:$0xff] %vm32_vm13, %v1089_v46 }
 0x1b8   :  { %1148 = vperm.xlu2 %1337, %v1122_v16  }
 0x1bb   :  { %v982_v25 = vpop.xlane.xlu0 %981 }
 0x1bc   :  { %v1090_v1 = vsel %vm1025_vm0, %v982_v25, %v1074_v9  ;;  %v1123_v24 = vld [vmem:[#allocation4 + $0x18] sm:$0xff] }
 0x1bd   :  { %1106 = vst.msk [vmem:[#allocation4 + $0x20] sm:$0xff] %vm32_vm13, %v1090_v1  ;;  %1153 = vperm.xlu0 %1335, %v1123_v24  }
 0x1c3   :  { %v984_v0 = vpop.xlane.xlu1 %983 }
 0x1c4   :  { %v1091_v14 = vsel %vm1026_vm2, %v984_v0, %v1075_v44  ;;  %v1124_v30 = vld [vmem:[#allocation4 + $0x20] sm:$0xff] }
 0x1c5   :  { %1107 = vst.msk [vmem:[#allocation4 + $0x28] sm:$0xff] %vm32_vm13, %v1091_v14  ;;  %1158 = vperm.xlu1 %1336, %v1124_v30  }
 0x1cb   :  { %v986_v28 = vpop.xlane.xlu2 %985 }
 0x1cc   :  { %v1092_v51 = vsel %vm1027_vm4, %v986_v28, %v1076_v26  ;;  %v1125_v40 = vld [vmem:[#allocation4 + $0x28] sm:$0xff] }
 0x1cd   :  { %1108 = vst.msk [vmem:[#allocation4 + $0x30] sm:$0xff] %vm32_vm13, %v1092_v51  ;;  %1163 = vperm.xlu0 %1335, %v1125_v40  }
 0x1d3   :  { %v988_v36 = vpop.xlane.xlu0 %987 }
 0x1d4   :  { %v1093_v8 = vsel %vm1028_vm15, %v988_v36, %v1077_v38  ;;  %v1126_v42 = vld [vmem:[#allocation4 + $0x30] sm:$0xff] }
 0x1d5   :  { %1109 = vst.msk [vmem:[#allocation4 + $0x38] sm:$0xff] %vm32_vm13, %v1093_v8  ;;  %1168 = vperm.xlu2 %1337, %v1126_v42  }
 0x1db   :  { %v990_v5 = vpop.xlane.xlu1 %989 }
 0x1dc   :  { %v1094_v22 = vsel %vm1029_vm7, %v990_v5, %v1078_v57  ;;  %v1127_v60 = vld [vmem:[#allocation4 + $0x38] sm:$0xff] }
 0x1dd   :  { %1110 = vst.msk [vmem:[#allocation4 + $0x40] sm:$0xff] %vm32_vm13, %v1094_v22  ;;  %1173 = vperm.xlu1 %1336, %v1127_v60  }
 0x1e3   :  { %v992_v2 = vpop.xlane.xlu2 %991 }
 0x1e4   :  { %v1095_v62 = vsel %vm1030_vm14, %v992_v2, %v1079_v61  ;;  %v1128_v29 = vld [vmem:[#allocation4 + $0x40] sm:$0xff] }
 0x1e5   :  { %1111 = vst.msk [vmem:[#allocation4 + $0x48] sm:$0xff] %vm32_vm13, %v1095_v62  ;;  %1178 = vperm.xlu0 %1335, %v1128_v29  }
 0x1eb   :  { %v994_v54 = vpop.xlane.xlu0 %993 }
 0x1ec   :  { %v1096_v11 = vsel %vm1031_vm3, %v994_v54, %v1080_v3  ;;  %v1129_v27 = vld [vmem:[#allocation4 + $0x48] sm:$0xff] }
 0x1ed   :  { %1112 = vst.msk [vmem:[#allocation4 + $0x50] sm:$0xff] %vm32_vm13, %v1096_v11  ;;  %1183 = vperm.xlu2 %1337, %v1129_v27  }
 0x1f3   :  { %v996_v21 = vpop.xlane.xlu1 %995 }
 0x1f4   :  { %v1097_v33 = vsel %vm2554_vm8, %v996_v21, %v1081_v4  ;;  %v1130_v35 = vld [vmem:[#allocation4 + $0x50] sm:$0xff] }
 0x1f5   :  { %1113 = vst.msk [vmem:[#allocation4 + $0x58] sm:$0xff] %vm32_vm13, %v1097_v33  ;;  %1188 = vperm.xlu1 %1336, %v1130_v35  }
 0x1fb   :  { %v998_v39 = vpop.xlane.xlu2 %997 }
 0x1fc   :  { %v1098_v49 = vsel %vm2555_vm6, %v998_v39, %v1082_v47  ;;  %v1131_v41 = vld [vmem:[#allocation4 + $0x58] sm:$0xff] }
 0x1fd   :  { %1114 = vst.msk [vmem:[#allocation4 + $0x60] sm:$0xff] %vm32_vm13, %v1098_v49  ;;  %1193 = vperm.xlu0 %1335, %v1131_v41  }
 0x203   :  { %v1000_v43 = vpop.xlane.xlu0 %999 }
 0x204   :  { %v1099_v15 = vsel %vm1034_vm11, %v1000_v43, %v1083_v45  ;;  %v1132_v48 = vld [vmem:[#allocation4 + $0x60] sm:$0xff] }
 0x205   :  { %1115 = vst.msk [vmem:[#allocation4 + $0x68] sm:$0xff] %vm32_vm13, %v1099_v15  ;;  %1198 = vperm.xlu2 %1337, %v1132_v48  }
 0x20b   :  { %v1002_v56 = vpop.xlane.xlu1 %1001 }
 0x20c   :  { %v1100_v53 = vsel %vm1035_vm5, %v1002_v56, %v1084_v55  ;;  %v1133_v52 = vld [vmem:[#allocation4 + $0x68] sm:$0xff] }
 0x20d   :  { %1116 = vst.msk [vmem:[#allocation4 + $0x70] sm:$0xff] %vm32_vm13, %v1100_v53  ;;  %1203 = vperm.xlu1 %1336, %v1133_v52  }
 0x213   :  { %v1004_v20 = vpop.xlane.xlu2 %1003 }
 0x214   :  { %v1101_v6 = vsel %vm1036_vm9, %v1004_v20, %v1085_v13  ;;  %v1134_v37 = vld [vmem:[#allocation4 + $0x70] sm:$0xff] }
 0x215   :  { %1117 = vst.msk [vmem:[#allocation4 + $0x78] sm:$0xff] %vm32_vm13, %v1101_v6  ;;  %1208 = vperm.xlu0 %1335, %v1134_v37  }
 0x217   :  { %v1139_v34 = vpop.permute.xlu0 %1138 }
 0x218   :  { %vm1252_vm10 = vcmp.lt.s32.totalorder %v1139_v34, 0  ;;  %v1253_v10 = vceil.f32 %v1139_v34  ;;  %v1254_v63 = vfloor.f32 %v1139_v34 }
 0x21a   :  { %v1255_v32 = vsel %vm1252_vm10, %v1253_v10, %v1254_v63 }
 0x21b   :  { %v1256_v7 = vcvt.f32.s32 %v1255_v32  ;;  %v1149_v31 = vpop.permute.xlu2 %1148 }
 0x21c   :  { %vm1262_vm12 = vcmp.lt.s32.totalorder %v1149_v31, 0  ;;  %v1263_v17 = vceil.f32 %v1149_v31  ;;  %v1264_v23 = vfloor.f32 %v1149_v31  ;;  %v1135_v58 = vld [vmem:[#allocation4 + $0x78] sm:$0xff] }
 0x21d   :  { %1232 = vst [vmem:[%s2532_s7] sm:$0xff] %v1256_v7  ;;  %1213 = vperm.xlu2 %1337, %v1135_v58  }
 0x21e   :  { %v1265_v19 = vsel %vm1262_vm12, %v1263_v17, %v1264_v23 }
 0x21f   :  { %v1266_v18 = vcvt.f32.s32 %v1265_v19 }
 0x221   :  { %1234 = vst [vmem:[%s2532_s7 + $0x10] sm:$0xff] %v1266_v18 }
 0x223   :  { %v1144_v12 = vpop.permute.xlu1 %1143 }
 0x224   :  { %vm1257_vm13 = vcmp.lt.s32.totalorder %v1144_v12, 0  ;;  %v1258_v50 = vceil.f32 %v1144_v12  ;;  %v1259_v59 = vfloor.f32 %v1144_v12 }
 0x226   :  { %v1260_v46 = vsel %vm1257_vm13, %v1258_v50, %v1259_v59 }
 0x227   :  { %v1261_v16 = vcvt.f32.s32 %v1260_v46 }
 0x229   :  { %1233 = vst [vmem:[%s2532_s7 + $0x8] sm:$0xff] %v1261_v16 }
 0x22f   :  { %v1154_v9 = vpop.permute.xlu0 %1153  ;;  %v1169_v25 = vpop.permute.xlu2 %1168 }
 0x230   :  { %vm1267_vm0 = vcmp.lt.s32.totalorder %v1154_v9, 0  ;;  %v1268_v1 = vceil.f32 %v1154_v9  ;;  %v1269_v24 = vfloor.f32 %v1154_v9  ;;  %vm1282_vm2 = vcmp.lt.s32.totalorder %v1169_v25, 0 }
 0x231   :  { %v1283_v44 = vceil.f32 %v1169_v25  ;;  %v1284_v0 = vfloor.f32 %v1169_v25 }
 0x232   :  { %v1270_v14 = vsel %vm1267_vm0, %v1268_v1, %v1269_v24 }
 0x233   :  { %v1271_v30 = vcvt.f32.s32 %v1270_v14  ;;  %v1285_v26 = vsel %vm1282_vm2, %v1283_v44, %v1284_v0 }
 0x234   :  { %v1286_v28 = vcvt.f32.s32 %v1285_v26 }
 0x235   :  { %1235 = vst [vmem:[%s2532_s7 + $0x18] sm:$0xff] %v1271_v30 }
 0x236   :  { %1238 = vst [vmem:[%s2532_s7 + $0x30] sm:$0xff] %v1286_v28 }
 0x237   :  { %v1159_v51 = vpop.permute.xlu1 %1158 }
 0x238   :  { %vm1272_vm4 = vcmp.lt.s32.totalorder %v1159_v51, 0  ;;  %v1273_v40 = vceil.f32 %v1159_v51  ;;  %v1274_v38 = vfloor.f32 %v1159_v51 }
 0x23a   :  { %v1275_v36 = vsel %vm1272_vm4, %v1273_v40, %v1274_v38 }
 0x23b   :  { %v1276_v8 = vcvt.f32.s32 %v1275_v36 }
 0x23d   :  { %1236 = vst [vmem:[%s2532_s7 + $0x20] sm:$0xff] %v1276_v8 }
 0x23f   :  { %v1164_v42 = vpop.permute.xlu0 %1163 }
 0x240   :  { %vm1277_vm15 = vcmp.lt.s32.totalorder %v1164_v42, 0  ;;  %v1278_v57 = vceil.f32 %v1164_v42  ;;  %v1279_v5 = vfloor.f32 %v1164_v42 }
 0x242   :  { %v1280_v22 = vsel %vm1277_vm15, %v1278_v57, %v1279_v5 }
 0x243   :  { %v1281_v60 = vcvt.f32.s32 %v1280_v22 }
 0x245   :  { %1237 = vst [vmem:[%s2532_s7 + $0x28] sm:$0xff] %v1281_v60 }
 0x247   :  { %v1184_v61 = vpop.permute.xlu2 %1183 }
 0x248   :  { %vm1297_vm7 = vcmp.lt.s32.totalorder %v1184_v61, 0  ;;  %v1298_v2 = vceil.f32 %v1184_v61  ;;  %v1299_v62 = vfloor.f32 %v1184_v61 }
 0x24a   :  { %v1300_v29 = vsel %vm1297_vm7, %v1298_v2, %v1299_v62 }
 0x24b   :  { %v1301_v3 = vcvt.f32.s32 %v1300_v29 }
 0x24d   :  { %1241 = vst [vmem:[%s2532_s7 + $0x48] sm:$0xff] %v1301_v3 }
 0x24f   :  { %v1174_v54 = vpop.permute.xlu1 %1173 }
 0x250   :  { %vm1287_vm14 = vcmp.lt.s32.totalorder %v1174_v54, 0  ;;  %v1288_v11 = vceil.f32 %v1174_v54  ;;  %v1289_v27 = vfloor.f32 %v1174_v54 }
 0x252   :  { %v1290_v4 = vsel %vm1287_vm14, %v1288_v11, %v1289_v27 }
 0x253   :  { %v1291_v21 = vcvt.f32.s32 %v1290_v4 }
 0x255   :  { %1239 = vst [vmem:[%s2532_s7 + $0x38] sm:$0xff] %v1291_v21 }
 0x257   :  { %v1179_v33 = vpop.permute.xlu0 %1178 }
 0x258   :  { %vm1292_vm3 = vcmp.lt.s32.totalorder %v1179_v33, 0  ;;  %v1293_v35 = vceil.f32 %v1179_v33  ;;  %v1294_v47 = vfloor.f32 %v1179_v33 }
 0x25a   :  { %v1295_v39 = vsel %vm1292_vm3, %v1293_v35, %v1294_v47 }
 0x25b   :  { %v1296_v49 = vcvt.f32.s32 %v1295_v39 }
 0x25d   :  { %1240 = vst [vmem:[%s2532_s7 + $0x40] sm:$0xff] %v1296_v49 }
 0x25f   :  { %v1199_v41 = vpop.permute.xlu2 %1198 }
 0x260   :  { %vm1312_vm11 = vcmp.lt.s32.totalorder %v1199_v41, 0  ;;  %v1313_v45 = vceil.f32 %v1199_v41  ;;  %v1314_v43 = vfloor.f32 %v1199_v41 }
 0x262   :  { %v1315_v15 = vsel %vm1312_vm11, %v1313_v45, %v1314_v43 }
 0x263   :  { %v1316_v48 = vcvt.f32.s32 %v1315_v15 }
 0x265   :  { %1244 = vst [vmem:[%s2532_s7 + $0x60] sm:$0xff] %v1316_v48 }
 0x267   :  { %v1189_v55 = vpop.permute.xlu1 %1188 }
 0x268   :  { %vm1302_vm5 = vcmp.lt.s32.totalorder %v1189_v55, 0  ;;  %v1303_v56 = vceil.f32 %v1189_v55  ;;  %v1304_v53 = vfloor.f32 %v1189_v55 }
 0x26a   :  { %v1305_v52 = vsel %vm1302_vm5, %v1303_v56, %v1304_v53 }
 0x26b   :  { %v1306_v13 = vcvt.f32.s32 %v1305_v52 }
 0x26d   :  { %1242 = vst [vmem:[%s2532_s7 + $0x50] sm:$0xff] %v1306_v13 }
 0x26f   :  { %v1194_v20 = vpop.permute.xlu0 %1193 }
 0x270   :  { %vm1307_vm9 = vcmp.lt.s32.totalorder %v1194_v20, 0  ;;  %v1308_v6 = vceil.f32 %v1194_v20  ;;  %v1309_v37 = vfloor.f32 %v1194_v20 }
 0x272   :  { %v1310_v34 = vsel %vm1307_vm9, %v1308_v6, %v1309_v37 }
 0x273   :  { %v1311_v10 = vcvt.f32.s32 %v1310_v34 }
 0x275   :  { %1243 = vst [vmem:[%s2532_s7 + $0x58] sm:$0xff] %v1311_v10 }
 0x277   :  { %v1214_v63 = vpop.permute.xlu2 %1213 }
 0x278   :  { %vm1327_vm1 = vcmp.lt.s32.totalorder %v1214_v63, 0  ;;  %v1328_v32 = vceil.f32 %v1214_v63  ;;  %v1329_v7 = vfloor.f32 %v1214_v63 }
 0x27a   :  { %v1330_v31 = vsel %vm1327_vm1, %v1328_v32, %v1329_v7 }
 0x27b   :  { %v1331_v17 = vcvt.f32.s32 %v1330_v31 }
 0x27d   :  { %1247 = vst [vmem:[%s2532_s7 + $0x78] sm:$0xff] %v1331_v17 }
 0x27f   :  { %v1204_v23 = vpop.permute.xlu1 %1203 }
 0x280   :  { %vm1317_vm8 = vcmp.lt.s32.totalorder %v1204_v23, 0  ;;  %v1318_v58 = vceil.f32 %v1204_v23  ;;  %v1319_v19 = vfloor.f32 %v1204_v23 }
 0x282   :  { %v1320_v18 = vsel %vm1317_vm8, %v1318_v58, %v1319_v19 }
 0x283   :  { %v1321_v12 = vcvt.f32.s32 %v1320_v18 }
 0x285   :  { %1245 = vst [vmem:[%s2532_s7 + $0x68] sm:$0xff] %v1321_v12 }
 0x287   :  { %v1209_v50 = vpop.permute.xlu0 %1208 }
 0x288   :  { %vm1322_vm6 = vcmp.lt.s32.totalorder %v1209_v50, 0  ;;  %v1323_v59 = vceil.f32 %v1209_v50  ;;  %v1324_v46 = vfloor.f32 %v1209_v50 }
 0x28a   :  { %v1325_v16 = vsel %vm1322_vm6, %v1323_v59, %v1324_v46 }
 0x28b   :  { %v1326_v9 = vcvt.f32.s32 %v1325_v16 }
 0x28d   :  { %1246 = vst [vmem:[%s2532_s7 + $0x70] sm:$0xff] %v1326_v9 }

</bundles_post_ra>
